<compile_context>
chip_gen: v5e
topology: v5e:2x2
jax: 0.10.0
libtpu: 0.0.40
codegen_flags: <defaults>
</compile_context>

<pallas_src>
import math

import jax
import jax.numpy as jnp
from jax import lax
from jax.experimental import pallas as pl
from jax.experimental.pallas import tpu as pltpu

# ----- hyper-params implied by the module (small, synthetic) ---------------
HIDDEN = 32       # args.hidden_size
NUM_BLOCKS = 2    # args.num_blocks
NUM_HEADS = 2     # args.num_heads
SEQ_LEN = 8
BATCH = 2
NUM_ITEMS = 50
LN_EPS = 1e-8     # SASRec uses eps=1e-8 in its LayerNorms


def _layernorm(x, g, b):
    mu = jnp.mean(x, axis=-1, keepdims=True)
    var = jnp.mean((x - mu) ** 2, axis=-1, keepdims=True)
    return (x - mu) * lax.rsqrt(var + LN_EPS) * g + b


def make_encoder_kernel(B, S, H, L, NH):
    BS = B * S
    NT = 2                       # two towers: mu, logvar
    bf16 = jnp.bfloat16
    f32 = jnp.float32

    def kernel(mask_ref, abias_ref, seqs_ref, whead_ref, bhead_ref,
               wmat_ref, vecs_ref, lnf_ref, o_ref):
        m = mask_ref[...]                    # (BS, H) timeline mask (0/1)
        abias = abias_ref[...]               # (BS, BS) additive causal mask
        x0 = seqs_ref[...] * m               # (BS, H) masked input, f32

        for t in range(NT):                  # static unroll over towers
            x = x0
            for l in range(L):               # static unroll over blocks
                vbase = (t * L + l) * 7
                ln1_g = vecs_ref[vbase + 0]  # (BS, H) pre-broadcast params
                ln1_b = vecs_ref[vbase + 1]
                ln2_g = vecs_ref[vbase + 2]
                ln2_b = vecs_ref[vbase + 3]
                bo = vecs_ref[vbase + 4]
                b1 = vecs_ref[vbase + 5]
                b2 = vecs_ref[vbase + 6]

                q_in = _layernorm(x, ln1_g, ln1_b)      # f32
                q_in_bf = q_in.astype(bf16)
                x_bf = x.astype(bf16)

                heads = []
                for h in range(NH):
                    hbase = ((t * L + l) * NH + h) * 3
                    # per-head projections -> outputs start at lane 0
                    q_h = (jnp.dot(q_in_bf, whead_ref[hbase + 0],
                                   preferred_element_type=f32)
                           + bhead_ref[hbase + 0])
                    k_h = (jnp.dot(x_bf, whead_ref[hbase + 1],
                                   preferred_element_type=f32)
                           + bhead_ref[hbase + 1])
                    v_h = (jnp.dot(x_bf, whead_ref[hbase + 2],
                                   preferred_element_type=f32)
                           + bhead_ref[hbase + 2])
                    # q_h . k_h^T via transposed contraction (no explicit .T)
                    sc = lax.dot_general(
                        q_h.astype(bf16), k_h.astype(bf16),
                        dimension_numbers=(((1,), (1,)), ((), ())),
                        preferred_element_type=f32)
                    sc = sc + abias
                    sc = sc - jnp.max(sc, axis=-1, keepdims=True)
                    p = jnp.exp(sc)
                    p = p * pl.reciprocal(
                        jnp.sum(p, axis=-1, keepdims=True), approx=True)
                    heads.append(jnp.dot(p.astype(bf16), v_h.astype(bf16),
                                         preferred_element_type=f32))

                mha = jnp.concatenate(heads, axis=-1)   # (BS, H)
                mbase = (t * L + l) * 3
                mha = jnp.dot(mha.astype(bf16), wmat_ref[mbase + 0],
                              preferred_element_type=f32) + bo
                x = q_in + mha               # residual from the LN'ed query

                # PointWiseFeedForward (two 1x1 Conv1d == per-position linears)
                h1 = _layernorm(x, ln2_g, ln2_b)
                f = jnp.dot(h1.astype(bf16), wmat_ref[mbase + 1],
                            preferred_element_type=f32) + b1
                f = jnp.maximum(f, 0.0)
                f = jnp.dot(f.astype(bf16), wmat_ref[mbase + 2],
                            preferred_element_type=f32) + b2
                x = (h1 + f) * m             # FFN residual + timeline mask

            o_ref[t] = _layernorm(x, lnf_ref[t * 2 + 0], lnf_ref[t * 2 + 1])

    return kernel


def pack_params(params_list, B, S, H, NH):
    """Pack both towers' 18 arrays each into 5 consolidated tensors.

    Weights are cast to bf16 (MXU operands); all biases / LN params stay f32
    and are pre-broadcast to full (B*S, ...) tiles so the kernel never slices
    single sublanes.  The 1/sqrt(HD) attention scale is folded into wq / bq.
    """
    L = params_list[0]["wq"].shape[0]
    HD = H // NH
    BS = B * S
    scale = 1.0 / math.sqrt(HD)

    wheads, bheads, wmats, vecss, lnfs = [], [], [], [], []
    for p in params_list:
        def split_w(w):   # (L, H, H) -> (L, NH, H, HD) head-major columns
            return w.reshape(L, H, NH, HD).transpose(0, 2, 1, 3)

        def split_b(b):   # (L, H) -> (L, NH, HD)
            return b.reshape(L, NH, HD)

        wh = jnp.stack([split_w(p["wq"] * scale), split_w(p["wk"]),
                        split_w(p["wv"])], axis=2)           # (L, NH, 3, H, HD)
        bh = jnp.stack([split_b(p["bq"] * scale), split_b(p["bk"]),
                        split_b(p["bv"])], axis=2)           # (L, NH, 3, HD)
        bh = jnp.broadcast_to(bh[:, :, :, None, :], (L, NH, 3, BS, HD))
        wm = jnp.stack([p["wo"], p["w1"], p["w2"]], axis=1)  # (L, 3, H, H)
        vc = jnp.stack([p["ln1_g"], p["ln1_b"], p["ln2_g"], p["ln2_b"],
                        p["bo"], p["b1"], p["b2"]], axis=1)  # (L, 7, H)
        vc = jnp.broadcast_to(vc[:, :, None, :], (L, 7, BS, H))
        lf = jnp.concatenate([p["lnf_g"], p["lnf_b"]], axis=0)   # (2, H)
        lf = jnp.broadcast_to(lf[:, None, :], (2, BS, H))

        wheads.append(wh); bheads.append(bh); wmats.append(wm)
        vecss.append(vc); lnfs.append(lf)

    whead = jnp.stack(wheads).reshape(2 * L * NH * 3, H, HD).astype(jnp.bfloat16)
    bhead = jnp.stack(bheads).reshape(2 * L * NH * 3, BS, HD).astype(jnp.float32)
    wmat = jnp.stack(wmats).reshape(2 * L * 3, H, H).astype(jnp.bfloat16)
    vecs = jnp.stack(vecss).reshape(2 * L * 7, BS, H).astype(jnp.float32)
    lnf = jnp.stack(lnfs).reshape(2 * 2, BS, H).astype(jnp.float32)
    return whead, bhead, wmat, vecs, lnf


def encoder_forward(seqs, seqs_data, mu_params, logvar_params):
    """Encoder.forward: returns (mu, logvar), each (B, S, H)."""
    B, S, H = seqs.shape
    L = mu_params["wq"].shape[0]
    NH = NUM_HEADS
    HD = H // NH
    BS = B * S

    # timeline mask, pre-broadcast to full (BS, H) tile
    # (PyTorch masks `seqs` in place in encoder_mu; masking is idempotent, so
    # applying it independently in both towers is equivalent.)
    mask = jnp.broadcast_to(
        (seqs_data != 0).astype(jnp.float32).reshape(BS, 1), (BS, H))
    x = seqs.reshape(BS, H).astype(jnp.float32)

    # block-diagonal causal mask as an additive bias, built once on the host
    r = jnp.arange(BS)
    attend = (((r[:, None] // S) == (r[None, :] // S))
              & ((r[None, :] % S) <= (r[:, None] % S)))
    abias = jnp.where(attend, 0.0, -1e30).astype(jnp.float32)

    whead, bhead, wmat, vecs, lnf = pack_params(
        [mu_params, logvar_params], B, S, H, NH)

    kernel = make_encoder_kernel(B, S, H, L, NH)

    out = pl.pallas_call(
        kernel,
        out_shape=jax.ShapeDtypeStruct((2, BS, H), jnp.float32),
        grid=(1,),                            # single invocation, both towers
        in_specs=[
            pl.BlockSpec((BS, H), lambda i: (0, 0)),                 # mask
            pl.BlockSpec((BS, BS), lambda i: (0, 0)),                # attn bias
            pl.BlockSpec((BS, H), lambda i: (0, 0)),                 # folded seqs
            pl.BlockSpec((2 * L * NH * 3, H, HD), lambda i: (0, 0, 0)),
            pl.BlockSpec((2 * L * NH * 3, BS, HD), lambda i: (0, 0, 0)),
            pl.BlockSpec((2 * L * 3, H, H), lambda i: (0, 0, 0)),
            pl.BlockSpec((2 * L * 7, BS, H), lambda i: (0, 0, 0)),
            pl.BlockSpec((4, BS, H), lambda i: (0, 0, 0)),
        ],
        out_specs=pl.BlockSpec((2, BS, H), lambda i: (0, 0, 0)),
        compiler_params=pltpu.CompilerParams(
            dimension_semantics=("arbitrary",)),
    )(mask, abias, x, whead, bhead, wmat, vecs, lnf)

    mu = out[0].reshape(B, S, H)
    logvar = out[1].reshape(B, S, H)
    return mu, logvar


def init_selfattn_params(key, H, L):
    """Deterministic synthetic parameters (weights pre-transposed to x @ W)."""
    keys = jax.random.split(key, 6)

    def w(k, shape):
        return (0.02 * jax.random.normal(k, shape)).astype(jnp.float32)

    return {
        "ln1_g": jnp.ones((L, H), jnp.float32),
        "ln1_b": jnp.zeros((L, H), jnp.float32),
        "wq": w(keys[0], (L, H, H)), "bq": jnp.zeros((L, H), jnp.float32),
        "wk": w(keys[1], (L, H, H)), "bk": jnp.zeros((L, H), jnp.float32),
        "wv": w(keys[2], (L, H, H)), "bv": jnp.zeros((L, H), jnp.float32),
        "wo": w(keys[3], (L, H, H)), "bo": jnp.zeros((L, H), jnp.float32),
        "ln2_g": jnp.ones((L, H), jnp.float32),
        "ln2_b": jnp.zeros((L, H), jnp.float32),
        "w1": w(keys[4], (L, H, H)), "b1": jnp.zeros((L, H), jnp.float32),
        "w2": w(keys[5], (L, H, H)), "b2": jnp.zeros((L, H), jnp.float32),
        "lnf_g": jnp.ones((1, H), jnp.float32),
        "lnf_b": jnp.zeros((1, H), jnp.float32),
    }


if __name__ == "__main__":
    key = jax.random.PRNGKey(0)
    k1, k2, k3, k4 = jax.random.split(key, 4)

    seqs = jax.random.normal(k1, (BATCH, SEQ_LEN, HIDDEN), jnp.float32)
    seqs_data = jax.random.randint(k2, (BATCH, SEQ_LEN), 0, NUM_ITEMS)
    seqs_data = seqs_data.at[:, :2].set(0)   # a few padded positions

    mu_params = init_selfattn_params(k3, HIDDEN, NUM_BLOCKS)
    logvar_params = init_selfattn_params(k4, HIDDEN, NUM_BLOCKS)

    mu, logvar = jax.jit(encoder_forward)(seqs, seqs_data,
                                          mu_params, logvar_params)
    jax.block_until_ready((mu, logvar))

    assert mu.shape == (BATCH, SEQ_LEN, HIDDEN)
    assert logvar.shape == (BATCH, SEQ_LEN, HIDDEN)
    assert bool(jnp.isfinite(mu).all()) and bool(jnp.isfinite(logvar).all())
    print("KERNEL_OK")
</pallas_src>

<mosaic_0001>
module attributes {stable_mosaic.version = 11 : i64} {
  func.func @kernel(%arg0: i32, %arg1: memref<16x32xf32, #tpu.memory_space<vmem>>, %arg2: memref<16x16xf32, #tpu.memory_space<vmem>>, %arg3: memref<16x32xf32, #tpu.memory_space<vmem>>, %arg4: memref<24x32x16xbf16, #tpu.memory_space<vmem>>, %arg5: memref<24x16x16xf32, #tpu.memory_space<vmem>>, %arg6: memref<12x32x32xbf16, #tpu.memory_space<vmem>>, %arg7: memref<28x16x32xf32, #tpu.memory_space<vmem>>, %arg8: memref<4x16x32xf32, #tpu.memory_space<vmem>>, %arg9: memref<2x16x32xf32, #tpu.memory_space<vmem>>) attributes {dimension_semantics = [#tpu.dimension_semantics<arbitrary>], iteration_bounds = array<i64: 1>, scalar_prefetch = 0 : i64, scratch_operands = 0 : i64, tpu.core_type = #tpu.core_type<tc>, window_params = [{pipeline_mode = #tpu.pipeline_mode<synchronous>, transform_indices = @transform_0, window_bounds = array<i64: 16, 32>}, {pipeline_mode = #tpu.pipeline_mode<synchronous>, transform_indices = @transform_1, window_bounds = array<i64: 16, 16>}, {pipeline_mode = #tpu.pipeline_mode<synchronous>, transform_indices = @transform_2, window_bounds = array<i64: 16, 32>}, {pipeline_mode = #tpu.pipeline_mode<synchronous>, transform_indices = @transform_3, window_bounds = array<i64: 24, 32, 16>}, {pipeline_mode = #tpu.pipeline_mode<synchronous>, transform_indices = @transform_4, window_bounds = array<i64: 24, 16, 16>}, {pipeline_mode = #tpu.pipeline_mode<synchronous>, transform_indices = @transform_5, window_bounds = array<i64: 12, 32, 32>}, {pipeline_mode = #tpu.pipeline_mode<synchronous>, transform_indices = @transform_6, window_bounds = array<i64: 28, 16, 32>}, {pipeline_mode = #tpu.pipeline_mode<synchronous>, transform_indices = @transform_7, window_bounds = array<i64: 4, 16, 32>}, {pipeline_mode = #tpu.pipeline_mode<synchronous>, transform_indices = @transform_8, window_bounds = array<i64: 2, 16, 32>}]} {
    %c0 = arith.constant 0 : index
    %c0_0 = arith.constant 0 : index
    %0 = vector.load %arg1[%c0, %c0_0] : memref<16x32xf32, #tpu.memory_space<vmem>>, vector<16x32xf32>
    %c0_1 = arith.constant 0 : index
    %c0_2 = arith.constant 0 : index
    %1 = vector.load %arg2[%c0_1, %c0_2] : memref<16x16xf32, #tpu.memory_space<vmem>>, vector<16x16xf32>
    %c0_3 = arith.constant 0 : index
    %c0_4 = arith.constant 0 : index
    %2 = vector.load %arg3[%c0_3, %c0_4] : memref<16x32xf32, #tpu.memory_space<vmem>>, vector<16x32xf32>
    %3 = arith.mulf %2, %0 : vector<16x32xf32>
    %c0_5 = arith.constant 0 : index
    %c0_6 = arith.constant 0 : index
    %c0_7 = arith.constant 0 : index
    %4 = vector.load %arg7[%c0_5, %c0_6, %c0_7] : memref<28x16x32xf32, #tpu.memory_space<vmem>>, vector<1x16x32xf32>
    %5 = vector.shape_cast %4 : vector<1x16x32xf32> to vector<16x32xf32>
    %c1 = arith.constant 1 : index
    %c0_8 = arith.constant 0 : index
    %c0_9 = arith.constant 0 : index
    %6 = vector.load %arg7[%c1, %c0_8, %c0_9] : memref<28x16x32xf32, #tpu.memory_space<vmem>>, vector<1x16x32xf32>
    %7 = vector.shape_cast %6 : vector<1x16x32xf32> to vector<16x32xf32>
    %c2 = arith.constant 2 : index
    %c0_10 = arith.constant 0 : index
    %c0_11 = arith.constant 0 : index
    %8 = vector.load %arg7[%c2, %c0_10, %c0_11] : memref<28x16x32xf32, #tpu.memory_space<vmem>>, vector<1x16x32xf32>
    %9 = vector.shape_cast %8 : vector<1x16x32xf32> to vector<16x32xf32>
    %c3 = arith.constant 3 : index
    %c0_12 = arith.constant 0 : index
    %c0_13 = arith.constant 0 : index
    %10 = vector.load %arg7[%c3, %c0_12, %c0_13] : memref<28x16x32xf32, #tpu.memory_space<vmem>>, vector<1x16x32xf32>
    %11 = vector.shape_cast %10 : vector<1x16x32xf32> to vector<16x32xf32>
    %c4 = arith.constant 4 : index
    %c0_14 = arith.constant 0 : index
    %c0_15 = arith.constant 0 : index
    %12 = vector.load %arg7[%c4, %c0_14, %c0_15] : memref<28x16x32xf32, #tpu.memory_space<vmem>>, vector<1x16x32xf32>
    %13 = vector.shape_cast %12 : vector<1x16x32xf32> to vector<16x32xf32>
    %c5 = arith.constant 5 : index
    %c0_16 = arith.constant 0 : index
    %c0_17 = arith.constant 0 : index
    %14 = vector.load %arg7[%c5, %c0_16, %c0_17] : memref<28x16x32xf32, #tpu.memory_space<vmem>>, vector<1x16x32xf32>
    %15 = vector.shape_cast %14 : vector<1x16x32xf32> to vector<16x32xf32>
    %c6 = arith.constant 6 : index
    %c0_18 = arith.constant 0 : index
    %c0_19 = arith.constant 0 : index
    %16 = vector.load %arg7[%c6, %c0_18, %c0_19] : memref<28x16x32xf32, #tpu.memory_space<vmem>>, vector<1x16x32xf32>
    %17 = vector.shape_cast %16 : vector<1x16x32xf32> to vector<16x32xf32>
    %cst = arith.constant dense<0.000000e+00> : vector<16xf32>
    %18 = vector.multi_reduction <add>, %3, %cst [1] : vector<16x32xf32> to vector<16xf32>
    %19 = vector.shape_cast %18 : vector<16xf32> to vector<16x1xf32>
    %cst_20 = arith.constant 3.200000e+01 : f32
    %20 = vector.broadcast %cst_20 : f32 to vector<16x1xf32>
    %21 = arith.divf %19, %20 : vector<16x1xf32>
    %22 = vector.broadcast %21 : vector<16x1xf32> to vector<16x32xf32>
    %23 = arith.subf %3, %22 : vector<16x32xf32>
    %24 = arith.mulf %23, %23 : vector<16x32xf32>
    %cst_21 = arith.constant dense<0.000000e+00> : vector<16xf32>
    %25 = vector.multi_reduction <add>, %24, %cst_21 [1] : vector<16x32xf32> to vector<16xf32>
    %26 = vector.shape_cast %25 : vector<16xf32> to vector<16x1xf32>
    %cst_22 = arith.constant 3.200000e+01 : f32
    %27 = vector.broadcast %cst_22 : f32 to vector<16x1xf32>
    %28 = arith.divf %26, %27 : vector<16x1xf32>
    %29 = vector.broadcast %21 : vector<16x1xf32> to vector<16x32xf32>
    %30 = arith.subf %3, %29 : vector<16x32xf32>
    %cst_23 = arith.constant 9.99999993E-9 : f32
    %31 = vector.broadcast %cst_23 : f32 to vector<16x1xf32>
    %32 = arith.addf %28, %31 : vector<16x1xf32>
    %33 = math.rsqrt %32 : vector<16x1xf32>
    %34 = vector.broadcast %33 : vector<16x1xf32> to vector<16x32xf32>
    %35 = arith.mulf %30, %34 : vector<16x32xf32>
    %36 = arith.mulf %35, %5 : vector<16x32xf32>
    %37 = arith.addf %36, %7 : vector<16x32xf32>
    %38 = arith.truncf %37 : vector<16x32xf32> to vector<16x32xbf16>
    %39 = arith.truncf %3 : vector<16x32xf32> to vector<16x32xbf16>
    %c0_24 = arith.constant 0 : index
    %c0_25 = arith.constant 0 : index
    %c0_26 = arith.constant 0 : index
    %40 = vector.load %arg4[%c0_24, %c0_25, %c0_26] : memref<24x32x16xbf16, #tpu.memory_space<vmem>>, vector<1x32x16xbf16>
    %41 = vector.shape_cast %40 : vector<1x32x16xbf16> to vector<32x16xbf16>
    %cst_27 = arith.constant dense<0.000000e+00> : vector<16x16xf32>
    %42 = tpu.matmul %38, %41, %cst_27 {dimension_numbers = #tpu.dot_dimension_numbers<[1], [0], [0], [1], [0, 0, 1, 1], [], []>} : vector<16x32xbf16>, vector<32x16xbf16>, vector<16x16xf32> -> vector<16x16xf32>
    %c0_28 = arith.constant 0 : index
    %c0_29 = arith.constant 0 : index
    %c0_30 = arith.constant 0 : index
    %43 = vector.load %arg5[%c0_28, %c0_29, %c0_30] : memref<24x16x16xf32, #tpu.memory_space<vmem>>, vector<1x16x16xf32>
    %44 = vector.shape_cast %43 : vector<1x16x16xf32> to vector<16x16xf32>
    %45 = arith.addf %42, %44 : vector<16x16xf32>
    %c1_31 = arith.constant 1 : index
    %c0_32 = arith.constant 0 : index
    %c0_33 = arith.constant 0 : index
    %46 = vector.load %arg4[%c1_31, %c0_32, %c0_33] : memref<24x32x16xbf16, #tpu.memory_space<vmem>>, vector<1x32x16xbf16>
    %47 = vector.shape_cast %46 : vector<1x32x16xbf16> to vector<32x16xbf16>
    %cst_34 = arith.constant dense<0.000000e+00> : vector<16x16xf32>
    %48 = tpu.matmul %39, %47, %cst_34 {dimension_numbers = #tpu.dot_dimension_numbers<[1], [0], [0], [1], [0, 0, 1, 1], [], []>} : vector<16x32xbf16>, vector<32x16xbf16>, vector<16x16xf32> -> vector<16x16xf32>
    %c1_35 = arith.constant 1 : index
    %c0_36 = arith.constant 0 : index
    %c0_37 = arith.constant 0 : index
    %49 = vector.load %arg5[%c1_35, %c0_36, %c0_37] : memref<24x16x16xf32, #tpu.memory_space<vmem>>, vector<1x16x16xf32>
    %50 = vector.shape_cast %49 : vector<1x16x16xf32> to vector<16x16xf32>
    %51 = arith.addf %48, %50 : vector<16x16xf32>
    %c2_38 = arith.constant 2 : index
    %c0_39 = arith.constant 0 : index
    %c0_40 = arith.constant 0 : index
    %52 = vector.load %arg4[%c2_38, %c0_39, %c0_40] : memref<24x32x16xbf16, #tpu.memory_space<vmem>>, vector<1x32x16xbf16>
    %53 = vector.shape_cast %52 : vector<1x32x16xbf16> to vector<32x16xbf16>
    %cst_41 = arith.constant dense<0.000000e+00> : vector<16x16xf32>
    %54 = tpu.matmul %39, %53, %cst_41 {dimension_numbers = #tpu.dot_dimension_numbers<[1], [0], [0], [1], [0, 0, 1, 1], [], []>} : vector<16x32xbf16>, vector<32x16xbf16>, vector<16x16xf32> -> vector<16x16xf32>
    %c2_42 = arith.constant 2 : index
    %c0_43 = arith.constant 0 : index
    %c0_44 = arith.constant 0 : index
    %55 = vector.load %arg5[%c2_42, %c0_43, %c0_44] : memref<24x16x16xf32, #tpu.memory_space<vmem>>, vector<1x16x16xf32>
    %56 = vector.shape_cast %55 : vector<1x16x16xf32> to vector<16x16xf32>
    %57 = arith.addf %54, %56 : vector<16x16xf32>
    %58 = arith.truncf %45 : vector<16x16xf32> to vector<16x16xbf16>
    %59 = arith.truncf %51 : vector<16x16xf32> to vector<16x16xbf16>
    %cst_45 = arith.constant dense<0.000000e+00> : vector<16x16xf32>
    %60 = tpu.matmul %58, %59, %cst_45 {dimension_numbers = #tpu.dot_dimension_numbers<[1], [1], [0], [0], [0, 0, 1, 0], [], []>} : vector<16x16xbf16>, vector<16x16xbf16>, vector<16x16xf32> -> vector<16x16xf32>
    %61 = arith.addf %60, %1 : vector<16x16xf32>
    %cst_46 = arith.constant dense<0xFF800000> : vector<16xf32>
    %62 = vector.multi_reduction <maximumf>, %61, %cst_46 [1] : vector<16x16xf32> to vector<16xf32>
    %63 = vector.shape_cast %62 : vector<16xf32> to vector<16x1xf32>
    %64 = vector.broadcast %63 : vector<16x1xf32> to vector<16x16xf32>
    %65 = arith.subf %61, %64 : vector<16x16xf32>
    %66 = math.exp %65 : vector<16x16xf32>
    %cst_47 = arith.constant dense<0.000000e+00> : vector<16xf32>
    %67 = vector.multi_reduction <add>, %66, %cst_47 [1] : vector<16x16xf32> to vector<16xf32>
    %68 = vector.shape_cast %67 : vector<16xf32> to vector<16x1xf32>
    %69 = tpu.reciprocal %68 {approx = true} : vector<16x1xf32> -> vector<16x1xf32>
    %70 = vector.broadcast %69 : vector<16x1xf32> to vector<16x16xf32>
    %71 = arith.mulf %66, %70 : vector<16x16xf32>
    %72 = arith.truncf %71 : vector<16x16xf32> to vector<16x16xbf16>
    %73 = arith.truncf %57 : vector<16x16xf32> to vector<16x16xbf16>
    %cst_48 = arith.constant dense<0.000000e+00> : vector<16x16xf32>
    %74 = tpu.matmul %72, %73, %cst_48 {dimension_numbers = #tpu.dot_dimension_numbers<[1], [0], [0], [1], [0, 0, 1, 1], [], []>} : vector<16x16xbf16>, vector<16x16xbf16>, vector<16x16xf32> -> vector<16x16xf32>
    %c3_49 = arith.constant 3 : index
    %c0_50 = arith.constant 0 : index
    %c0_51 = arith.constant 0 : index
    %75 = vector.load %arg4[%c3_49, %c0_50, %c0_51] : memref<24x32x16xbf16, #tpu.memory_space<vmem>>, vector<1x32x16xbf16>
    %76 = vector.shape_cast %75 : vector<1x32x16xbf16> to vector<32x16xbf16>
    %cst_52 = arith.constant dense<0.000000e+00> : vector<16x16xf32>
    %77 = tpu.matmul %38, %76, %cst_52 {dimension_numbers = #tpu.dot_dimension_numbers<[1], [0], [0], [1], [0, 0, 1, 1], [], []>} : vector<16x32xbf16>, vector<32x16xbf16>, vector<16x16xf32> -> vector<16x16xf32>
    %c3_53 = arith.constant 3 : index
    %c0_54 = arith.constant 0 : index
    %c0_55 = arith.constant 0 : index
    %78 = vector.load %arg5[%c3_53, %c0_54, %c0_55] : memref<24x16x16xf32, #tpu.memory_space<vmem>>, vector<1x16x16xf32>
    %79 = vector.shape_cast %78 : vector<1x16x16xf32> to vector<16x16xf32>
    %80 = arith.addf %77, %79 : vector<16x16xf32>
    %c4_56 = arith.constant 4 : index
    %c0_57 = arith.constant 0 : index
    %c0_58 = arith.constant 0 : index
    %81 = vector.load %arg4[%c4_56, %c0_57, %c0_58] : memref<24x32x16xbf16, #tpu.memory_space<vmem>>, vector<1x32x16xbf16>
    %82 = vector.shape_cast %81 : vector<1x32x16xbf16> to vector<32x16xbf16>
    %cst_59 = arith.constant dense<0.000000e+00> : vector<16x16xf32>
    %83 = tpu.matmul %39, %82, %cst_59 {dimension_numbers = #tpu.dot_dimension_numbers<[1], [0], [0], [1], [0, 0, 1, 1], [], []>} : vector<16x32xbf16>, vector<32x16xbf16>, vector<16x16xf32> -> vector<16x16xf32>
    %c4_60 = arith.constant 4 : index
    %c0_61 = arith.constant 0 : index
    %c0_62 = arith.constant 0 : index
    %84 = vector.load %arg5[%c4_60, %c0_61, %c0_62] : memref<24x16x16xf32, #tpu.memory_space<vmem>>, vector<1x16x16xf32>
    %85 = vector.shape_cast %84 : vector<1x16x16xf32> to vector<16x16xf32>
    %86 = arith.addf %83, %85 : vector<16x16xf32>
    %c5_63 = arith.constant 5 : index
    %c0_64 = arith.constant 0 : index
    %c0_65 = arith.constant 0 : index
    %87 = vector.load %arg4[%c5_63, %c0_64, %c0_65] : memref<24x32x16xbf16, #tpu.memory_space<vmem>>, vector<1x32x16xbf16>
    %88 = vector.shape_cast %87 : vector<1x32x16xbf16> to vector<32x16xbf16>
    %cst_66 = arith.constant dense<0.000000e+00> : vector<16x16xf32>
    %89 = tpu.matmul %39, %88, %cst_66 {dimension_numbers = #tpu.dot_dimension_numbers<[1], [0], [0], [1], [0, 0, 1, 1], [], []>} : vector<16x32xbf16>, vector<32x16xbf16>, vector<16x16xf32> -> vector<16x16xf32>
    %c5_67 = arith.constant 5 : index
    %c0_68 = arith.constant 0 : index
    %c0_69 = arith.constant 0 : index
    %90 = vector.load %arg5[%c5_67, %c0_68, %c0_69] : memref<24x16x16xf32, #tpu.memory_space<vmem>>, vector<1x16x16xf32>
    %91 = vector.shape_cast %90 : vector<1x16x16xf32> to vector<16x16xf32>
    %92 = arith.addf %89, %91 : vector<16x16xf32>
    %93 = arith.truncf %80 : vector<16x16xf32> to vector<16x16xbf16>
    %94 = arith.truncf %86 : vector<16x16xf32> to vector<16x16xbf16>
    %cst_70 = arith.constant dense<0.000000e+00> : vector<16x16xf32>
    %95 = tpu.matmul %93, %94, %cst_70 {dimension_numbers = #tpu.dot_dimension_numbers<[1], [1], [0], [0], [0, 0, 1, 0], [], []>} : vector<16x16xbf16>, vector<16x16xbf16>, vector<16x16xf32> -> vector<16x16xf32>
    %96 = arith.addf %95, %1 : vector<16x16xf32>
    %cst_71 = arith.constant dense<0xFF800000> : vector<16xf32>
    %97 = vector.multi_reduction <maximumf>, %96, %cst_71 [1] : vector<16x16xf32> to vector<16xf32>
    %98 = vector.shape_cast %97 : vector<16xf32> to vector<16x1xf32>
    %99 = vector.broadcast %98 : vector<16x1xf32> to vector<16x16xf32>
    %100 = arith.subf %96, %99 : vector<16x16xf32>
    %101 = math.exp %100 : vector<16x16xf32>
    %cst_72 = arith.constant dense<0.000000e+00> : vector<16xf32>
    %102 = vector.multi_reduction <add>, %101, %cst_72 [1] : vector<16x16xf32> to vector<16xf32>
    %103 = vector.shape_cast %102 : vector<16xf32> to vector<16x1xf32>
    %104 = tpu.reciprocal %103 {approx = true} : vector<16x1xf32> -> vector<16x1xf32>
    %105 = vector.broadcast %104 : vector<16x1xf32> to vector<16x16xf32>
    %106 = arith.mulf %101, %105 : vector<16x16xf32>
    %107 = arith.truncf %106 : vector<16x16xf32> to vector<16x16xbf16>
    %108 = arith.truncf %92 : vector<16x16xf32> to vector<16x16xbf16>
    %cst_73 = arith.constant dense<0.000000e+00> : vector<16x16xf32>
    %109 = tpu.matmul %107, %108, %cst_73 {dimension_numbers = #tpu.dot_dimension_numbers<[1], [0], [0], [1], [0, 0, 1, 1], [], []>} : vector<16x16xbf16>, vector<16x16xbf16>, vector<16x16xf32> -> vector<16x16xf32>
    %110 = tpu.concatenate %74, %109 in 1 : vector<16x16xf32>, vector<16x16xf32> -> vector<16x32xf32>
    %111 = arith.truncf %110 : vector<16x32xf32> to vector<16x32xbf16>
    %c0_74 = arith.constant 0 : index
    %c0_75 = arith.constant 0 : index
    %c0_76 = arith.constant 0 : index
    %112 = vector.load %arg6[%c0_74, %c0_75, %c0_76] : memref<12x32x32xbf16, #tpu.memory_space<vmem>>, vector<1x32x32xbf16>
    %113 = vector.shape_cast %112 : vector<1x32x32xbf16> to vector<32x32xbf16>
    %cst_77 = arith.constant dense<0.000000e+00> : vector<16x32xf32>
    %114 = tpu.matmul %111, %113, %cst_77 {dimension_numbers = #tpu.dot_dimension_numbers<[1], [0], [0], [1], [0, 0, 1, 1], [], []>} : vector<16x32xbf16>, vector<32x32xbf16>, vector<16x32xf32> -> vector<16x32xf32>
    %115 = arith.addf %114, %13 : vector<16x32xf32>
    %116 = arith.addf %37, %115 : vector<16x32xf32>
    %cst_78 = arith.constant dense<0.000000e+00> : vector<16xf32>
    %117 = vector.multi_reduction <add>, %116, %cst_78 [1] : vector<16x32xf32> to vector<16xf32>
    %118 = vector.shape_cast %117 : vector<16xf32> to vector<16x1xf32>
    %cst_79 = arith.constant 3.200000e+01 : f32
    %119 = vector.broadcast %cst_79 : f32 to vector<16x1xf32>
    %120 = arith.divf %118, %119 : vector<16x1xf32>
    %121 = vector.broadcast %120 : vector<16x1xf32> to vector<16x32xf32>
    %122 = arith.subf %116, %121 : vector<16x32xf32>
    %123 = arith.mulf %122, %122 : vector<16x32xf32>
    %cst_80 = arith.constant dense<0.000000e+00> : vector<16xf32>
    %124 = vector.multi_reduction <add>, %123, %cst_80 [1] : vector<16x32xf32> to vector<16xf32>
    %125 = vector.shape_cast %124 : vector<16xf32> to vector<16x1xf32>
    %cst_81 = arith.constant 3.200000e+01 : f32
    %126 = vector.broadcast %cst_81 : f32 to vector<16x1xf32>
    %127 = arith.divf %125, %126 : vector<16x1xf32>
    %128 = vector.broadcast %120 : vector<16x1xf32> to vector<16x32xf32>
    %129 = arith.subf %116, %128 : vector<16x32xf32>
    %cst_82 = arith.constant 9.99999993E-9 : f32
    %130 = vector.broadcast %cst_82 : f32 to vector<16x1xf32>
    %131 = arith.addf %127, %130 : vector<16x1xf32>
    %132 = math.rsqrt %131 : vector<16x1xf32>
    %133 = vector.broadcast %132 : vector<16x1xf32> to vector<16x32xf32>
    %134 = arith.mulf %129, %133 : vector<16x32xf32>
    %135 = arith.mulf %134, %9 : vector<16x32xf32>
    %136 = arith.addf %135, %11 : vector<16x32xf32>
    %137 = arith.truncf %136 : vector<16x32xf32> to vector<16x32xbf16>
    %c1_83 = arith.constant 1 : index
    %c0_84 = arith.constant 0 : index
    %c0_85 = arith.constant 0 : index
    %138 = vector.load %arg6[%c1_83, %c0_84, %c0_85] : memref<12x32x32xbf16, #tpu.memory_space<vmem>>, vector<1x32x32xbf16>
    %139 = vector.shape_cast %138 : vector<1x32x32xbf16> to vector<32x32xbf16>
    %cst_86 = arith.constant dense<0.000000e+00> : vector<16x32xf32>
    %140 = tpu.matmul %137, %139, %cst_86 {dimension_numbers = #tpu.dot_dimension_numbers<[1], [0], [0], [1], [0, 0, 1, 1], [], []>} : vector<16x32xbf16>, vector<32x32xbf16>, vector<16x32xf32> -> vector<16x32xf32>
    %141 = arith.addf %140, %15 : vector<16x32xf32>
    %cst_87 = arith.constant 0.000000e+00 : f32
    %142 = vector.broadcast %cst_87 : f32 to vector<16x32xf32>
    %143 = arith.maximumf %141, %142 : vector<16x32xf32>
    %144 = arith.truncf %143 : vector<16x32xf32> to vector<16x32xbf16>
    %c2_88 = arith.constant 2 : index
    %c0_89 = arith.constant 0 : index
    %c0_90 = arith.constant 0 : index
    %145 = vector.load %arg6[%c2_88, %c0_89, %c0_90] : memref<12x32x32xbf16, #tpu.memory_space<vmem>>, vector<1x32x32xbf16>
    %146 = vector.shape_cast %145 : vector<1x32x32xbf16> to vector<32x32xbf16>
    %cst_91 = arith.constant dense<0.000000e+00> : vector<16x32xf32>
    %147 = tpu.matmul %144, %146, %cst_91 {dimension_numbers = #tpu.dot_dimension_numbers<[1], [0], [0], [1], [0, 0, 1, 1], [], []>} : vector<16x32xbf16>, vector<32x32xbf16>, vector<16x32xf32> -> vector<16x32xf32>
    %148 = arith.addf %147, %17 : vector<16x32xf32>
    %149 = arith.addf %136, %148 : vector<16x32xf32>
    %150 = arith.mulf %149, %0 : vector<16x32xf32>
    %c7 = arith.constant 7 : index
    %c0_92 = arith.constant 0 : index
    %c0_93 = arith.constant 0 : index
    %151 = vector.load %arg7[%c7, %c0_92, %c0_93] : memref<28x16x32xf32, #tpu.memory_space<vmem>>, vector<1x16x32xf32>
    %152 = vector.shape_cast %151 : vector<1x16x32xf32> to vector<16x32xf32>
    %c8 = arith.constant 8 : index
    %c0_94 = arith.constant 0 : index
    %c0_95 = arith.constant 0 : index
    %153 = vector.load %arg7[%c8, %c0_94, %c0_95] : memref<28x16x32xf32, #tpu.memory_space<vmem>>, vector<1x16x32xf32>
    %154 = vector.shape_cast %153 : vector<1x16x32xf32> to vector<16x32xf32>
    %c9 = arith.constant 9 : index
    %c0_96 = arith.constant 0 : index
    %c0_97 = arith.constant 0 : index
    %155 = vector.load %arg7[%c9, %c0_96, %c0_97] : memref<28x16x32xf32, #tpu.memory_space<vmem>>, vector<1x16x32xf32>
    %156 = vector.shape_cast %155 : vector<1x16x32xf32> to vector<16x32xf32>
    %c10 = arith.constant 10 : index
    %c0_98 = arith.constant 0 : index
    %c0_99 = arith.constant 0 : index
    %157 = vector.load %arg7[%c10, %c0_98, %c0_99] : memref<28x16x32xf32, #tpu.memory_space<vmem>>, vector<1x16x32xf32>
    %158 = vector.shape_cast %157 : vector<1x16x32xf32> to vector<16x32xf32>
    %c11 = arith.constant 11 : index
    %c0_100 = arith.constant 0 : index
    %c0_101 = arith.constant 0 : index
    %159 = vector.load %arg7[%c11, %c0_100, %c0_101] : memref<28x16x32xf32, #tpu.memory_space<vmem>>, vector<1x16x32xf32>
    %160 = vector.shape_cast %159 : vector<1x16x32xf32> to vector<16x32xf32>
    %c12 = arith.constant 12 : index
    %c0_102 = arith.constant 0 : index
    %c0_103 = arith.constant 0 : index
    %161 = vector.load %arg7[%c12, %c0_102, %c0_103] : memref<28x16x32xf32, #tpu.memory_space<vmem>>, vector<1x16x32xf32>
    %162 = vector.shape_cast %161 : vector<1x16x32xf32> to vector<16x32xf32>
    %c13 = arith.constant 13 : index
    %c0_104 = arith.constant 0 : index
    %c0_105 = arith.constant 0 : index
    %163 = vector.load %arg7[%c13, %c0_104, %c0_105] : memref<28x16x32xf32, #tpu.memory_space<vmem>>, vector<1x16x32xf32>
    %164 = vector.shape_cast %163 : vector<1x16x32xf32> to vector<16x32xf32>
    %cst_106 = arith.constant dense<0.000000e+00> : vector<16xf32>
    %165 = vector.multi_reduction <add>, %150, %cst_106 [1] : vector<16x32xf32> to vector<16xf32>
    %166 = vector.shape_cast %165 : vector<16xf32> to vector<16x1xf32>
    %cst_107 = arith.constant 3.200000e+01 : f32
    %167 = vector.broadcast %cst_107 : f32 to vector<16x1xf32>
    %168 = arith.divf %166, %167 : vector<16x1xf32>
    %169 = vector.broadcast %168 : vector<16x1xf32> to vector<16x32xf32>
    %170 = arith.subf %150, %169 : vector<16x32xf32>
    %171 = arith.mulf %170, %170 : vector<16x32xf32>
    %cst_108 = arith.constant dense<0.000000e+00> : vector<16xf32>
    %172 = vector.multi_reduction <add>, %171, %cst_108 [1] : vector<16x32xf32> to vector<16xf32>
    %173 = vector.shape_cast %172 : vector<16xf32> to vector<16x1xf32>
    %cst_109 = arith.constant 3.200000e+01 : f32
    %174 = vector.broadcast %cst_109 : f32 to vector<16x1xf32>
    %175 = arith.divf %173, %174 : vector<16x1xf32>
    %176 = vector.broadcast %168 : vector<16x1xf32> to vector<16x32xf32>
    %177 = arith.subf %150, %176 : vector<16x32xf32>
    %cst_110 = arith.constant 9.99999993E-9 : f32
    %178 = vector.broadcast %cst_110 : f32 to vector<16x1xf32>
    %179 = arith.addf %175, %178 : vector<16x1xf32>
    %180 = math.rsqrt %179 : vector<16x1xf32>
    %181 = vector.broadcast %180 : vector<16x1xf32> to vector<16x32xf32>
    %182 = arith.mulf %177, %181 : vector<16x32xf32>
    %183 = arith.mulf %182, %152 : vector<16x32xf32>
    %184 = arith.addf %183, %154 : vector<16x32xf32>
    %185 = arith.truncf %184 : vector<16x32xf32> to vector<16x32xbf16>
    %186 = arith.truncf %150 : vector<16x32xf32> to vector<16x32xbf16>
    %c6_111 = arith.constant 6 : index
    %c0_112 = arith.constant 0 : index
    %c0_113 = arith.constant 0 : index
    %187 = vector.load %arg4[%c6_111, %c0_112, %c0_113] : memref<24x32x16xbf16, #tpu.memory_space<vmem>>, vector<1x32x16xbf16>
    %188 = vector.shape_cast %187 : vector<1x32x16xbf16> to vector<32x16xbf16>
    %cst_114 = arith.constant dense<0.000000e+00> : vector<16x16xf32>
    %189 = tpu.matmul %185, %188, %cst_114 {dimension_numbers = #tpu.dot_dimension_numbers<[1], [0], [0], [1], [0, 0, 1, 1], [], []>} : vector<16x32xbf16>, vector<32x16xbf16>, vector<16x16xf32> -> vector<16x16xf32>
    %c6_115 = arith.constant 6 : index
    %c0_116 = arith.constant 0 : index
    %c0_117 = arith.constant 0 : index
    %190 = vector.load %arg5[%c6_115, %c0_116, %c0_117] : memref<24x16x16xf32, #tpu.memory_space<vmem>>, vector<1x16x16xf32>
    %191 = vector.shape_cast %190 : vector<1x16x16xf32> to vector<16x16xf32>
    %192 = arith.addf %189, %191 : vector<16x16xf32>
    %c7_118 = arith.constant 7 : index
    %c0_119 = arith.constant 0 : index
    %c0_120 = arith.constant 0 : index
    %193 = vector.load %arg4[%c7_118, %c0_119, %c0_120] : memref<24x32x16xbf16, #tpu.memory_space<vmem>>, vector<1x32x16xbf16>
    %194 = vector.shape_cast %193 : vector<1x32x16xbf16> to vector<32x16xbf16>
    %cst_121 = arith.constant dense<0.000000e+00> : vector<16x16xf32>
    %195 = tpu.matmul %186, %194, %cst_121 {dimension_numbers = #tpu.dot_dimension_numbers<[1], [0], [0], [1], [0, 0, 1, 1], [], []>} : vector<16x32xbf16>, vector<32x16xbf16>, vector<16x16xf32> -> vector<16x16xf32>
    %c7_122 = arith.constant 7 : index
    %c0_123 = arith.constant 0 : index
    %c0_124 = arith.constant 0 : index
    %196 = vector.load %arg5[%c7_122, %c0_123, %c0_124] : memref<24x16x16xf32, #tpu.memory_space<vmem>>, vector<1x16x16xf32>
    %197 = vector.shape_cast %196 : vector<1x16x16xf32> to vector<16x16xf32>
    %198 = arith.addf %195, %197 : vector<16x16xf32>
    %c8_125 = arith.constant 8 : index
    %c0_126 = arith.constant 0 : index
    %c0_127 = arith.constant 0 : index
    %199 = vector.load %arg4[%c8_125, %c0_126, %c0_127] : memref<24x32x16xbf16, #tpu.memory_space<vmem>>, vector<1x32x16xbf16>
    %200 = vector.shape_cast %199 : vector<1x32x16xbf16> to vector<32x16xbf16>
    %cst_128 = arith.constant dense<0.000000e+00> : vector<16x16xf32>
    %201 = tpu.matmul %186, %200, %cst_128 {dimension_numbers = #tpu.dot_dimension_numbers<[1], [0], [0], [1], [0, 0, 1, 1], [], []>} : vector<16x32xbf16>, vector<32x16xbf16>, vector<16x16xf32> -> vector<16x16xf32>
    %c8_129 = arith.constant 8 : index
    %c0_130 = arith.constant 0 : index
    %c0_131 = arith.constant 0 : index
    %202 = vector.load %arg5[%c8_129, %c0_130, %c0_131] : memref<24x16x16xf32, #tpu.memory_space<vmem>>, vector<1x16x16xf32>
    %203 = vector.shape_cast %202 : vector<1x16x16xf32> to vector<16x16xf32>
    %204 = arith.addf %201, %203 : vector<16x16xf32>
    %205 = arith.truncf %192 : vector<16x16xf32> to vector<16x16xbf16>
    %206 = arith.truncf %198 : vector<16x16xf32> to vector<16x16xbf16>
    %cst_132 = arith.constant dense<0.000000e+00> : vector<16x16xf32>
    %207 = tpu.matmul %205, %206, %cst_132 {dimension_numbers = #tpu.dot_dimension_numbers<[1], [1], [0], [0], [0, 0, 1, 0], [], []>} : vector<16x16xbf16>, vector<16x16xbf16>, vector<16x16xf32> -> vector<16x16xf32>
    %208 = arith.addf %207, %1 : vector<16x16xf32>
    %cst_133 = arith.constant dense<0xFF800000> : vector<16xf32>
    %209 = vector.multi_reduction <maximumf>, %208, %cst_133 [1] : vector<16x16xf32> to vector<16xf32>
    %210 = vector.shape_cast %209 : vector<16xf32> to vector<16x1xf32>
    %211 = vector.broadcast %210 : vector<16x1xf32> to vector<16x16xf32>
    %212 = arith.subf %208, %211 : vector<16x16xf32>
    %213 = math.exp %212 : vector<16x16xf32>
    %cst_134 = arith.constant dense<0.000000e+00> : vector<16xf32>
    %214 = vector.multi_reduction <add>, %213, %cst_134 [1] : vector<16x16xf32> to vector<16xf32>
    %215 = vector.shape_cast %214 : vector<16xf32> to vector<16x1xf32>
    %216 = tpu.reciprocal %215 {approx = true} : vector<16x1xf32> -> vector<16x1xf32>
    %217 = vector.broadcast %216 : vector<16x1xf32> to vector<16x16xf32>
    %218 = arith.mulf %213, %217 : vector<16x16xf32>
    %219 = arith.truncf %218 : vector<16x16xf32> to vector<16x16xbf16>
    %220 = arith.truncf %204 : vector<16x16xf32> to vector<16x16xbf16>
    %cst_135 = arith.constant dense<0.000000e+00> : vector<16x16xf32>
    %221 = tpu.matmul %219, %220, %cst_135 {dimension_numbers = #tpu.dot_dimension_numbers<[1], [0], [0], [1], [0, 0, 1, 1], [], []>} : vector<16x16xbf16>, vector<16x16xbf16>, vector<16x16xf32> -> vector<16x16xf32>
    %c9_136 = arith.constant 9 : index
    %c0_137 = arith.constant 0 : index
    %c0_138 = arith.constant 0 : index
    %222 = vector.load %arg4[%c9_136, %c0_137, %c0_138] : memref<24x32x16xbf16, #tpu.memory_space<vmem>>, vector<1x32x16xbf16>
    %223 = vector.shape_cast %222 : vector<1x32x16xbf16> to vector<32x16xbf16>
    %cst_139 = arith.constant dense<0.000000e+00> : vector<16x16xf32>
    %224 = tpu.matmul %185, %223, %cst_139 {dimension_numbers = #tpu.dot_dimension_numbers<[1], [0], [0], [1], [0, 0, 1, 1], [], []>} : vector<16x32xbf16>, vector<32x16xbf16>, vector<16x16xf32> -> vector<16x16xf32>
    %c9_140 = arith.constant 9 : index
    %c0_141 = arith.constant 0 : index
    %c0_142 = arith.constant 0 : index
    %225 = vector.load %arg5[%c9_140, %c0_141, %c0_142] : memref<24x16x16xf32, #tpu.memory_space<vmem>>, vector<1x16x16xf32>
    %226 = vector.shape_cast %225 : vector<1x16x16xf32> to vector<16x16xf32>
    %227 = arith.addf %224, %226 : vector<16x16xf32>
    %c10_143 = arith.constant 10 : index
    %c0_144 = arith.constant 0 : index
    %c0_145 = arith.constant 0 : index
    %228 = vector.load %arg4[%c10_143, %c0_144, %c0_145] : memref<24x32x16xbf16, #tpu.memory_space<vmem>>, vector<1x32x16xbf16>
    %229 = vector.shape_cast %228 : vector<1x32x16xbf16> to vector<32x16xbf16>
    %cst_146 = arith.constant dense<0.000000e+00> : vector<16x16xf32>
    %230 = tpu.matmul %186, %229, %cst_146 {dimension_numbers = #tpu.dot_dimension_numbers<[1], [0], [0], [1], [0, 0, 1, 1], [], []>} : vector<16x32xbf16>, vector<32x16xbf16>, vector<16x16xf32> -> vector<16x16xf32>
    %c10_147 = arith.constant 10 : index
    %c0_148 = arith.constant 0 : index
    %c0_149 = arith.constant 0 : index
    %231 = vector.load %arg5[%c10_147, %c0_148, %c0_149] : memref<24x16x16xf32, #tpu.memory_space<vmem>>, vector<1x16x16xf32>
    %232 = vector.shape_cast %231 : vector<1x16x16xf32> to vector<16x16xf32>
    %233 = arith.addf %230, %232 : vector<16x16xf32>
    %c11_150 = arith.constant 11 : index
    %c0_151 = arith.constant 0 : index
    %c0_152 = arith.constant 0 : index
    %234 = vector.load %arg4[%c11_150, %c0_151, %c0_152] : memref<24x32x16xbf16, #tpu.memory_space<vmem>>, vector<1x32x16xbf16>
    %235 = vector.shape_cast %234 : vector<1x32x16xbf16> to vector<32x16xbf16>
    %cst_153 = arith.constant dense<0.000000e+00> : vector<16x16xf32>
    %236 = tpu.matmul %186, %235, %cst_153 {dimension_numbers = #tpu.dot_dimension_numbers<[1], [0], [0], [1], [0, 0, 1, 1], [], []>} : vector<16x32xbf16>, vector<32x16xbf16>, vector<16x16xf32> -> vector<16x16xf32>
    %c11_154 = arith.constant 11 : index
    %c0_155 = arith.constant 0 : index
    %c0_156 = arith.constant 0 : index
    %237 = vector.load %arg5[%c11_154, %c0_155, %c0_156] : memref<24x16x16xf32, #tpu.memory_space<vmem>>, vector<1x16x16xf32>
    %238 = vector.shape_cast %237 : vector<1x16x16xf32> to vector<16x16xf32>
    %239 = arith.addf %236, %238 : vector<16x16xf32>
    %240 = arith.truncf %227 : vector<16x16xf32> to vector<16x16xbf16>
    %241 = arith.truncf %233 : vector<16x16xf32> to vector<16x16xbf16>
    %cst_157 = arith.constant dense<0.000000e+00> : vector<16x16xf32>
    %242 = tpu.matmul %240, %241, %cst_157 {dimension_numbers = #tpu.dot_dimension_numbers<[1], [1], [0], [0], [0, 0, 1, 0], [], []>} : vector<16x16xbf16>, vector<16x16xbf16>, vector<16x16xf32> -> vector<16x16xf32>
    %243 = arith.addf %242, %1 : vector<16x16xf32>
    %cst_158 = arith.constant dense<0xFF800000> : vector<16xf32>
    %244 = vector.multi_reduction <maximumf>, %243, %cst_158 [1] : vector<16x16xf32> to vector<16xf32>
    %245 = vector.shape_cast %244 : vector<16xf32> to vector<16x1xf32>
    %246 = vector.broadcast %245 : vector<16x1xf32> to vector<16x16xf32>
    %247 = arith.subf %243, %246 : vector<16x16xf32>
    %248 = math.exp %247 : vector<16x16xf32>
    %cst_159 = arith.constant dense<0.000000e+00> : vector<16xf32>
    %249 = vector.multi_reduction <add>, %248, %cst_159 [1] : vector<16x16xf32> to vector<16xf32>
    %250 = vector.shape_cast %249 : vector<16xf32> to vector<16x1xf32>
    %251 = tpu.reciprocal %250 {approx = true} : vector<16x1xf32> -> vector<16x1xf32>
    %252 = vector.broadcast %251 : vector<16x1xf32> to vector<16x16xf32>
    %253 = arith.mulf %248, %252 : vector<16x16xf32>
    %254 = arith.truncf %253 : vector<16x16xf32> to vector<16x16xbf16>
    %255 = arith.truncf %239 : vector<16x16xf32> to vector<16x16xbf16>
    %cst_160 = arith.constant dense<0.000000e+00> : vector<16x16xf32>
    %256 = tpu.matmul %254, %255, %cst_160 {dimension_numbers = #tpu.dot_dimension_numbers<[1], [0], [0], [1], [0, 0, 1, 1], [], []>} : vector<16x16xbf16>, vector<16x16xbf16>, vector<16x16xf32> -> vector<16x16xf32>
    %257 = tpu.concatenate %221, %256 in 1 : vector<16x16xf32>, vector<16x16xf32> -> vector<16x32xf32>
    %258 = arith.truncf %257 : vector<16x32xf32> to vector<16x32xbf16>
    %c3_161 = arith.constant 3 : index
    %c0_162 = arith.constant 0 : index
    %c0_163 = arith.constant 0 : index
    %259 = vector.load %arg6[%c3_161, %c0_162, %c0_163] : memref<12x32x32xbf16, #tpu.memory_space<vmem>>, vector<1x32x32xbf16>
    %260 = vector.shape_cast %259 : vector<1x32x32xbf16> to vector<32x32xbf16>
    %cst_164 = arith.constant dense<0.000000e+00> : vector<16x32xf32>
    %261 = tpu.matmul %258, %260, %cst_164 {dimension_numbers = #tpu.dot_dimension_numbers<[1], [0], [0], [1], [0, 0, 1, 1], [], []>} : vector<16x32xbf16>, vector<32x32xbf16>, vector<16x32xf32> -> vector<16x32xf32>
    %262 = arith.addf %261, %160 : vector<16x32xf32>
    %263 = arith.addf %184, %262 : vector<16x32xf32>
    %cst_165 = arith.constant dense<0.000000e+00> : vector<16xf32>
    %264 = vector.multi_reduction <add>, %263, %cst_165 [1] : vector<16x32xf32> to vector<16xf32>
    %265 = vector.shape_cast %264 : vector<16xf32> to vector<16x1xf32>
    %cst_166 = arith.constant 3.200000e+01 : f32
    %266 = vector.broadcast %cst_166 : f32 to vector<16x1xf32>
    %267 = arith.divf %265, %266 : vector<16x1xf32>
    %268 = vector.broadcast %267 : vector<16x1xf32> to vector<16x32xf32>
    %269 = arith.subf %263, %268 : vector<16x32xf32>
    %270 = arith.mulf %269, %269 : vector<16x32xf32>
    %cst_167 = arith.constant dense<0.000000e+00> : vector<16xf32>
    %271 = vector.multi_reduction <add>, %270, %cst_167 [1] : vector<16x32xf32> to vector<16xf32>
    %272 = vector.shape_cast %271 : vector<16xf32> to vector<16x1xf32>
    %cst_168 = arith.constant 3.200000e+01 : f32
    %273 = vector.broadcast %cst_168 : f32 to vector<16x1xf32>
    %274 = arith.divf %272, %273 : vector<16x1xf32>
    %275 = vector.broadcast %267 : vector<16x1xf32> to vector<16x32xf32>
    %276 = arith.subf %263, %275 : vector<16x32xf32>
    %cst_169 = arith.constant 9.99999993E-9 : f32
    %277 = vector.broadcast %cst_169 : f32 to vector<16x1xf32>
    %278 = arith.addf %274, %277 : vector<16x1xf32>
    %279 = math.rsqrt %278 : vector<16x1xf32>
    %280 = vector.broadcast %279 : vector<16x1xf32> to vector<16x32xf32>
    %281 = arith.mulf %276, %280 : vector<16x32xf32>
    %282 = arith.mulf %281, %156 : vector<16x32xf32>
    %283 = arith.addf %282, %158 : vector<16x32xf32>
    %284 = arith.truncf %283 : vector<16x32xf32> to vector<16x32xbf16>
    %c4_170 = arith.constant 4 : index
    %c0_171 = arith.constant 0 : index
    %c0_172 = arith.constant 0 : index
    %285 = vector.load %arg6[%c4_170, %c0_171, %c0_172] : memref<12x32x32xbf16, #tpu.memory_space<vmem>>, vector<1x32x32xbf16>
    %286 = vector.shape_cast %285 : vector<1x32x32xbf16> to vector<32x32xbf16>
    %cst_173 = arith.constant dense<0.000000e+00> : vector<16x32xf32>
    %287 = tpu.matmul %284, %286, %cst_173 {dimension_numbers = #tpu.dot_dimension_numbers<[1], [0], [0], [1], [0, 0, 1, 1], [], []>} : vector<16x32xbf16>, vector<32x32xbf16>, vector<16x32xf32> -> vector<16x32xf32>
    %288 = arith.addf %287, %162 : vector<16x32xf32>
    %cst_174 = arith.constant 0.000000e+00 : f32
    %289 = vector.broadcast %cst_174 : f32 to vector<16x32xf32>
    %290 = arith.maximumf %288, %289 : vector<16x32xf32>
    %291 = arith.truncf %290 : vector<16x32xf32> to vector<16x32xbf16>
    %c5_175 = arith.constant 5 : index
    %c0_176 = arith.constant 0 : index
    %c0_177 = arith.constant 0 : index
    %292 = vector.load %arg6[%c5_175, %c0_176, %c0_177] : memref<12x32x32xbf16, #tpu.memory_space<vmem>>, vector<1x32x32xbf16>
    %293 = vector.shape_cast %292 : vector<1x32x32xbf16> to vector<32x32xbf16>
    %cst_178 = arith.constant dense<0.000000e+00> : vector<16x32xf32>
    %294 = tpu.matmul %291, %293, %cst_178 {dimension_numbers = #tpu.dot_dimension_numbers<[1], [0], [0], [1], [0, 0, 1, 1], [], []>} : vector<16x32xbf16>, vector<32x32xbf16>, vector<16x32xf32> -> vector<16x32xf32>
    %295 = arith.addf %294, %164 : vector<16x32xf32>
    %296 = arith.addf %283, %295 : vector<16x32xf32>
    %297 = arith.mulf %296, %0 : vector<16x32xf32>
    %c0_179 = arith.constant 0 : index
    %c0_180 = arith.constant 0 : index
    %c0_181 = arith.constant 0 : index
    %298 = vector.load %arg8[%c0_179, %c0_180, %c0_181] : memref<4x16x32xf32, #tpu.memory_space<vmem>>, vector<1x16x32xf32>
    %299 = vector.shape_cast %298 : vector<1x16x32xf32> to vector<16x32xf32>
    %c1_182 = arith.constant 1 : index
    %c0_183 = arith.constant 0 : index
    %c0_184 = arith.constant 0 : index
    %300 = vector.load %arg8[%c1_182, %c0_183, %c0_184] : memref<4x16x32xf32, #tpu.memory_space<vmem>>, vector<1x16x32xf32>
    %301 = vector.shape_cast %300 : vector<1x16x32xf32> to vector<16x32xf32>
    %cst_185 = arith.constant dense<0.000000e+00> : vector<16xf32>
    %302 = vector.multi_reduction <add>, %297, %cst_185 [1] : vector<16x32xf32> to vector<16xf32>
    %303 = vector.shape_cast %302 : vector<16xf32> to vector<16x1xf32>
    %cst_186 = arith.constant 3.200000e+01 : f32
    %304 = vector.broadcast %cst_186 : f32 to vector<16x1xf32>
    %305 = arith.divf %303, %304 : vector<16x1xf32>
    %306 = vector.broadcast %305 : vector<16x1xf32> to vector<16x32xf32>
    %307 = arith.subf %297, %306 : vector<16x32xf32>
    %308 = arith.mulf %307, %307 : vector<16x32xf32>
    %cst_187 = arith.constant dense<0.000000e+00> : vector<16xf32>
    %309 = vector.multi_reduction <add>, %308, %cst_187 [1] : vector<16x32xf32> to vector<16xf32>
    %310 = vector.shape_cast %309 : vector<16xf32> to vector<16x1xf32>
    %cst_188 = arith.constant 3.200000e+01 : f32
    %311 = vector.broadcast %cst_188 : f32 to vector<16x1xf32>
    %312 = arith.divf %310, %311 : vector<16x1xf32>
    %313 = vector.broadcast %305 : vector<16x1xf32> to vector<16x32xf32>
    %314 = arith.subf %297, %313 : vector<16x32xf32>
    %cst_189 = arith.constant 9.99999993E-9 : f32
    %315 = vector.broadcast %cst_189 : f32 to vector<16x1xf32>
    %316 = arith.addf %312, %315 : vector<16x1xf32>
    %317 = math.rsqrt %316 : vector<16x1xf32>
    %318 = vector.broadcast %317 : vector<16x1xf32> to vector<16x32xf32>
    %319 = arith.mulf %314, %318 : vector<16x32xf32>
    %320 = arith.mulf %319, %299 : vector<16x32xf32>
    %321 = arith.addf %320, %301 : vector<16x32xf32>
    %c0_190 = arith.constant 0 : index
    %c0_191 = arith.constant 0 : index
    %c0_192 = arith.constant 0 : index
    %322 = vector.load %arg9[%c0_190, %c0_191, %c0_192] : memref<2x16x32xf32, #tpu.memory_space<vmem>>, vector<1x16x32xf32>
    %323 = vector.shape_cast %322 : vector<1x16x32xf32> to vector<16x32xf32>
    %324 = vector.shape_cast %321 : vector<16x32xf32> to vector<1x16x32xf32>
    tpu.vector_store %arg9[%c0_190, %c0_191, %c0_192], %324 {strides = array<i32>} : memref<2x16x32xf32, #tpu.memory_space<vmem>>, vector<1x16x32xf32>,
    %c14 = arith.constant 14 : index
    %c0_193 = arith.constant 0 : index
    %c0_194 = arith.constant 0 : index
    %325 = vector.load %arg7[%c14, %c0_193, %c0_194] : memref<28x16x32xf32, #tpu.memory_space<vmem>>, vector<1x16x32xf32>
    %326 = vector.shape_cast %325 : vector<1x16x32xf32> to vector<16x32xf32>
    %c15 = arith.constant 15 : index
    %c0_195 = arith.constant 0 : index
    %c0_196 = arith.constant 0 : index
    %327 = vector.load %arg7[%c15, %c0_195, %c0_196] : memref<28x16x32xf32, #tpu.memory_space<vmem>>, vector<1x16x32xf32>
    %328 = vector.shape_cast %327 : vector<1x16x32xf32> to vector<16x32xf32>
    %c16 = arith.constant 16 : index
    %c0_197 = arith.constant 0 : index
    %c0_198 = arith.constant 0 : index
    %329 = vector.load %arg7[%c16, %c0_197, %c0_198] : memref<28x16x32xf32, #tpu.memory_space<vmem>>, vector<1x16x32xf32>
    %330 = vector.shape_cast %329 : vector<1x16x32xf32> to vector<16x32xf32>
    %c17 = arith.constant 17 : index
    %c0_199 = arith.constant 0 : index
    %c0_200 = arith.constant 0 : index
    %331 = vector.load %arg7[%c17, %c0_199, %c0_200] : memref<28x16x32xf32, #tpu.memory_space<vmem>>, vector<1x16x32xf32>
    %332 = vector.shape_cast %331 : vector<1x16x32xf32> to vector<16x32xf32>
    %c18 = arith.constant 18 : index
    %c0_201 = arith.constant 0 : index
    %c0_202 = arith.constant 0 : index
    %333 = vector.load %arg7[%c18, %c0_201, %c0_202] : memref<28x16x32xf32, #tpu.memory_space<vmem>>, vector<1x16x32xf32>
    %334 = vector.shape_cast %333 : vector<1x16x32xf32> to vector<16x32xf32>
    %c19 = arith.constant 19 : index
    %c0_203 = arith.constant 0 : index
    %c0_204 = arith.constant 0 : index
    %335 = vector.load %arg7[%c19, %c0_203, %c0_204] : memref<28x16x32xf32, #tpu.memory_space<vmem>>, vector<1x16x32xf32>
    %336 = vector.shape_cast %335 : vector<1x16x32xf32> to vector<16x32xf32>
    %c20 = arith.constant 20 : index
    %c0_205 = arith.constant 0 : index
    %c0_206 = arith.constant 0 : index
    %337 = vector.load %arg7[%c20, %c0_205, %c0_206] : memref<28x16x32xf32, #tpu.memory_space<vmem>>, vector<1x16x32xf32>
    %338 = vector.shape_cast %337 : vector<1x16x32xf32> to vector<16x32xf32>
    %cst_207 = arith.constant dense<0.000000e+00> : vector<16xf32>
    %339 = vector.multi_reduction <add>, %3, %cst_207 [1] : vector<16x32xf32> to vector<16xf32>
    %340 = vector.shape_cast %339 : vector<16xf32> to vector<16x1xf32>
    %cst_208 = arith.constant 3.200000e+01 : f32
    %341 = vector.broadcast %cst_208 : f32 to vector<16x1xf32>
    %342 = arith.divf %340, %341 : vector<16x1xf32>
    %343 = vector.broadcast %342 : vector<16x1xf32> to vector<16x32xf32>
    %344 = arith.subf %3, %343 : vector<16x32xf32>
    %345 = arith.mulf %344, %344 : vector<16x32xf32>
    %cst_209 = arith.constant dense<0.000000e+00> : vector<16xf32>
    %346 = vector.multi_reduction <add>, %345, %cst_209 [1] : vector<16x32xf32> to vector<16xf32>
    %347 = vector.shape_cast %346 : vector<16xf32> to vector<16x1xf32>
    %cst_210 = arith.constant 3.200000e+01 : f32
    %348 = vector.broadcast %cst_210 : f32 to vector<16x1xf32>
    %349 = arith.divf %347, %348 : vector<16x1xf32>
    %350 = vector.broadcast %342 : vector<16x1xf32> to vector<16x32xf32>
    %351 = arith.subf %3, %350 : vector<16x32xf32>
    %cst_211 = arith.constant 9.99999993E-9 : f32
    %352 = vector.broadcast %cst_211 : f32 to vector<16x1xf32>
    %353 = arith.addf %349, %352 : vector<16x1xf32>
    %354 = math.rsqrt %353 : vector<16x1xf32>
    %355 = vector.broadcast %354 : vector<16x1xf32> to vector<16x32xf32>
    %356 = arith.mulf %351, %355 : vector<16x32xf32>
    %357 = arith.mulf %356, %326 : vector<16x32xf32>
    %358 = arith.addf %357, %328 : vector<16x32xf32>
    %359 = arith.truncf %358 : vector<16x32xf32> to vector<16x32xbf16>
    %360 = arith.truncf %3 : vector<16x32xf32> to vector<16x32xbf16>
    %c12_212 = arith.constant 12 : index
    %c0_213 = arith.constant 0 : index
    %c0_214 = arith.constant 0 : index
    %361 = vector.load %arg4[%c12_212, %c0_213, %c0_214] : memref<24x32x16xbf16, #tpu.memory_space<vmem>>, vector<1x32x16xbf16>
    %362 = vector.shape_cast %361 : vector<1x32x16xbf16> to vector<32x16xbf16>
    %cst_215 = arith.constant dense<0.000000e+00> : vector<16x16xf32>
    %363 = tpu.matmul %359, %362, %cst_215 {dimension_numbers = #tpu.dot_dimension_numbers<[1], [0], [0], [1], [0, 0, 1, 1], [], []>} : vector<16x32xbf16>, vector<32x16xbf16>, vector<16x16xf32> -> vector<16x16xf32>
    %c12_216 = arith.constant 12 : index
    %c0_217 = arith.constant 0 : index
    %c0_218 = arith.constant 0 : index
    %364 = vector.load %arg5[%c12_216, %c0_217, %c0_218] : memref<24x16x16xf32, #tpu.memory_space<vmem>>, vector<1x16x16xf32>
    %365 = vector.shape_cast %364 : vector<1x16x16xf32> to vector<16x16xf32>
    %366 = arith.addf %363, %365 : vector<16x16xf32>
    %c13_219 = arith.constant 13 : index
    %c0_220 = arith.constant 0 : index
    %c0_221 = arith.constant 0 : index
    %367 = vector.load %arg4[%c13_219, %c0_220, %c0_221] : memref<24x32x16xbf16, #tpu.memory_space<vmem>>, vector<1x32x16xbf16>
    %368 = vector.shape_cast %367 : vector<1x32x16xbf16> to vector<32x16xbf16>
    %cst_222 = arith.constant dense<0.000000e+00> : vector<16x16xf32>
    %369 = tpu.matmul %360, %368, %cst_222 {dimension_numbers = #tpu.dot_dimension_numbers<[1], [0], [0], [1], [0, 0, 1, 1], [], []>} : vector<16x32xbf16>, vector<32x16xbf16>, vector<16x16xf32> -> vector<16x16xf32>
    %c13_223 = arith.constant 13 : index
    %c0_224 = arith.constant 0 : index
    %c0_225 = arith.constant 0 : index
    %370 = vector.load %arg5[%c13_223, %c0_224, %c0_225] : memref<24x16x16xf32, #tpu.memory_space<vmem>>, vector<1x16x16xf32>
    %371 = vector.shape_cast %370 : vector<1x16x16xf32> to vector<16x16xf32>
    %372 = arith.addf %369, %371 : vector<16x16xf32>
    %c14_226 = arith.constant 14 : index
    %c0_227 = arith.constant 0 : index
    %c0_228 = arith.constant 0 : index
    %373 = vector.load %arg4[%c14_226, %c0_227, %c0_228] : memref<24x32x16xbf16, #tpu.memory_space<vmem>>, vector<1x32x16xbf16>
    %374 = vector.shape_cast %373 : vector<1x32x16xbf16> to vector<32x16xbf16>
    %cst_229 = arith.constant dense<0.000000e+00> : vector<16x16xf32>
    %375 = tpu.matmul %360, %374, %cst_229 {dimension_numbers = #tpu.dot_dimension_numbers<[1], [0], [0], [1], [0, 0, 1, 1], [], []>} : vector<16x32xbf16>, vector<32x16xbf16>, vector<16x16xf32> -> vector<16x16xf32>
    %c14_230 = arith.constant 14 : index
    %c0_231 = arith.constant 0 : index
    %c0_232 = arith.constant 0 : index
    %376 = vector.load %arg5[%c14_230, %c0_231, %c0_232] : memref<24x16x16xf32, #tpu.memory_space<vmem>>, vector<1x16x16xf32>
    %377 = vector.shape_cast %376 : vector<1x16x16xf32> to vector<16x16xf32>
    %378 = arith.addf %375, %377 : vector<16x16xf32>
    %379 = arith.truncf %366 : vector<16x16xf32> to vector<16x16xbf16>
    %380 = arith.truncf %372 : vector<16x16xf32> to vector<16x16xbf16>
    %cst_233 = arith.constant dense<0.000000e+00> : vector<16x16xf32>
    %381 = tpu.matmul %379, %380, %cst_233 {dimension_numbers = #tpu.dot_dimension_numbers<[1], [1], [0], [0], [0, 0, 1, 0], [], []>} : vector<16x16xbf16>, vector<16x16xbf16>, vector<16x16xf32> -> vector<16x16xf32>
    %382 = arith.addf %381, %1 : vector<16x16xf32>
    %cst_234 = arith.constant dense<0xFF800000> : vector<16xf32>
    %383 = vector.multi_reduction <maximumf>, %382, %cst_234 [1] : vector<16x16xf32> to vector<16xf32>
    %384 = vector.shape_cast %383 : vector<16xf32> to vector<16x1xf32>
    %385 = vector.broadcast %384 : vector<16x1xf32> to vector<16x16xf32>
    %386 = arith.subf %382, %385 : vector<16x16xf32>
    %387 = math.exp %386 : vector<16x16xf32>
    %cst_235 = arith.constant dense<0.000000e+00> : vector<16xf32>
    %388 = vector.multi_reduction <add>, %387, %cst_235 [1] : vector<16x16xf32> to vector<16xf32>
    %389 = vector.shape_cast %388 : vector<16xf32> to vector<16x1xf32>
    %390 = tpu.reciprocal %389 {approx = true} : vector<16x1xf32> -> vector<16x1xf32>
    %391 = vector.broadcast %390 : vector<16x1xf32> to vector<16x16xf32>
    %392 = arith.mulf %387, %391 : vector<16x16xf32>
    %393 = arith.truncf %392 : vector<16x16xf32> to vector<16x16xbf16>
    %394 = arith.truncf %378 : vector<16x16xf32> to vector<16x16xbf16>
    %cst_236 = arith.constant dense<0.000000e+00> : vector<16x16xf32>
    %395 = tpu.matmul %393, %394, %cst_236 {dimension_numbers = #tpu.dot_dimension_numbers<[1], [0], [0], [1], [0, 0, 1, 1], [], []>} : vector<16x16xbf16>, vector<16x16xbf16>, vector<16x16xf32> -> vector<16x16xf32>
    %c15_237 = arith.constant 15 : index
    %c0_238 = arith.constant 0 : index
    %c0_239 = arith.constant 0 : index
    %396 = vector.load %arg4[%c15_237, %c0_238, %c0_239] : memref<24x32x16xbf16, #tpu.memory_space<vmem>>, vector<1x32x16xbf16>
    %397 = vector.shape_cast %396 : vector<1x32x16xbf16> to vector<32x16xbf16>
    %cst_240 = arith.constant dense<0.000000e+00> : vector<16x16xf32>
    %398 = tpu.matmul %359, %397, %cst_240 {dimension_numbers = #tpu.dot_dimension_numbers<[1], [0], [0], [1], [0, 0, 1, 1], [], []>} : vector<16x32xbf16>, vector<32x16xbf16>, vector<16x16xf32> -> vector<16x16xf32>
    %c15_241 = arith.constant 15 : index
    %c0_242 = arith.constant 0 : index
    %c0_243 = arith.constant 0 : index
    %399 = vector.load %arg5[%c15_241, %c0_242, %c0_243] : memref<24x16x16xf32, #tpu.memory_space<vmem>>, vector<1x16x16xf32>
    %400 = vector.shape_cast %399 : vector<1x16x16xf32> to vector<16x16xf32>
    %401 = arith.addf %398, %400 : vector<16x16xf32>
    %c16_244 = arith.constant 16 : index
    %c0_245 = arith.constant 0 : index
    %c0_246 = arith.constant 0 : index
    %402 = vector.load %arg4[%c16_244, %c0_245, %c0_246] : memref<24x32x16xbf16, #tpu.memory_space<vmem>>, vector<1x32x16xbf16>
    %403 = vector.shape_cast %402 : vector<1x32x16xbf16> to vector<32x16xbf16>
    %cst_247 = arith.constant dense<0.000000e+00> : vector<16x16xf32>
    %404 = tpu.matmul %360, %403, %cst_247 {dimension_numbers = #tpu.dot_dimension_numbers<[1], [0], [0], [1], [0, 0, 1, 1], [], []>} : vector<16x32xbf16>, vector<32x16xbf16>, vector<16x16xf32> -> vector<16x16xf32>
    %c16_248 = arith.constant 16 : index
    %c0_249 = arith.constant 0 : index
    %c0_250 = arith.constant 0 : index
    %405 = vector.load %arg5[%c16_248, %c0_249, %c0_250] : memref<24x16x16xf32, #tpu.memory_space<vmem>>, vector<1x16x16xf32>
    %406 = vector.shape_cast %405 : vector<1x16x16xf32> to vector<16x16xf32>
    %407 = arith.addf %404, %406 : vector<16x16xf32>
    %c17_251 = arith.constant 17 : index
    %c0_252 = arith.constant 0 : index
    %c0_253 = arith.constant 0 : index
    %408 = vector.load %arg4[%c17_251, %c0_252, %c0_253] : memref<24x32x16xbf16, #tpu.memory_space<vmem>>, vector<1x32x16xbf16>
    %409 = vector.shape_cast %408 : vector<1x32x16xbf16> to vector<32x16xbf16>
    %cst_254 = arith.constant dense<0.000000e+00> : vector<16x16xf32>
    %410 = tpu.matmul %360, %409, %cst_254 {dimension_numbers = #tpu.dot_dimension_numbers<[1], [0], [0], [1], [0, 0, 1, 1], [], []>} : vector<16x32xbf16>, vector<32x16xbf16>, vector<16x16xf32> -> vector<16x16xf32>
    %c17_255 = arith.constant 17 : index
    %c0_256 = arith.constant 0 : index
    %c0_257 = arith.constant 0 : index
    %411 = vector.load %arg5[%c17_255, %c0_256, %c0_257] : memref<24x16x16xf32, #tpu.memory_space<vmem>>, vector<1x16x16xf32>
    %412 = vector.shape_cast %411 : vector<1x16x16xf32> to vector<16x16xf32>
    %413 = arith.addf %410, %412 : vector<16x16xf32>
    %414 = arith.truncf %401 : vector<16x16xf32> to vector<16x16xbf16>
    %415 = arith.truncf %407 : vector<16x16xf32> to vector<16x16xbf16>
    %cst_258 = arith.constant dense<0.000000e+00> : vector<16x16xf32>
    %416 = tpu.matmul %414, %415, %cst_258 {dimension_numbers = #tpu.dot_dimension_numbers<[1], [1], [0], [0], [0, 0, 1, 0], [], []>} : vector<16x16xbf16>, vector<16x16xbf16>, vector<16x16xf32> -> vector<16x16xf32>
    %417 = arith.addf %416, %1 : vector<16x16xf32>
    %cst_259 = arith.constant dense<0xFF800000> : vector<16xf32>
    %418 = vector.multi_reduction <maximumf>, %417, %cst_259 [1] : vector<16x16xf32> to vector<16xf32>
    %419 = vector.shape_cast %418 : vector<16xf32> to vector<16x1xf32>
    %420 = vector.broadcast %419 : vector<16x1xf32> to vector<16x16xf32>
    %421 = arith.subf %417, %420 : vector<16x16xf32>
    %422 = math.exp %421 : vector<16x16xf32>
    %cst_260 = arith.constant dense<0.000000e+00> : vector<16xf32>
    %423 = vector.multi_reduction <add>, %422, %cst_260 [1] : vector<16x16xf32> to vector<16xf32>
    %424 = vector.shape_cast %423 : vector<16xf32> to vector<16x1xf32>
    %425 = tpu.reciprocal %424 {approx = true} : vector<16x1xf32> -> vector<16x1xf32>
    %426 = vector.broadcast %425 : vector<16x1xf32> to vector<16x16xf32>
    %427 = arith.mulf %422, %426 : vector<16x16xf32>
    %428 = arith.truncf %427 : vector<16x16xf32> to vector<16x16xbf16>
    %429 = arith.truncf %413 : vector<16x16xf32> to vector<16x16xbf16>
    %cst_261 = arith.constant dense<0.000000e+00> : vector<16x16xf32>
    %430 = tpu.matmul %428, %429, %cst_261 {dimension_numbers = #tpu.dot_dimension_numbers<[1], [0], [0], [1], [0, 0, 1, 1], [], []>} : vector<16x16xbf16>, vector<16x16xbf16>, vector<16x16xf32> -> vector<16x16xf32>
    %431 = tpu.concatenate %395, %430 in 1 : vector<16x16xf32>, vector<16x16xf32> -> vector<16x32xf32>
    %432 = arith.truncf %431 : vector<16x32xf32> to vector<16x32xbf16>
    %c6_262 = arith.constant 6 : index
    %c0_263 = arith.constant 0 : index
    %c0_264 = arith.constant 0 : index
    %433 = vector.load %arg6[%c6_262, %c0_263, %c0_264] : memref<12x32x32xbf16, #tpu.memory_space<vmem>>, vector<1x32x32xbf16>
    %434 = vector.shape_cast %433 : vector<1x32x32xbf16> to vector<32x32xbf16>
    %cst_265 = arith.constant dense<0.000000e+00> : vector<16x32xf32>
    %435 = tpu.matmul %432, %434, %cst_265 {dimension_numbers = #tpu.dot_dimension_numbers<[1], [0], [0], [1], [0, 0, 1, 1], [], []>} : vector<16x32xbf16>, vector<32x32xbf16>, vector<16x32xf32> -> vector<16x32xf32>
    %436 = arith.addf %435, %334 : vector<16x32xf32>
    %437 = arith.addf %358, %436 : vector<16x32xf32>
    %cst_266 = arith.constant dense<0.000000e+00> : vector<16xf32>
    %438 = vector.multi_reduction <add>, %437, %cst_266 [1] : vector<16x32xf32> to vector<16xf32>
    %439 = vector.shape_cast %438 : vector<16xf32> to vector<16x1xf32>
    %cst_267 = arith.constant 3.200000e+01 : f32
    %440 = vector.broadcast %cst_267 : f32 to vector<16x1xf32>
    %441 = arith.divf %439, %440 : vector<16x1xf32>
    %442 = vector.broadcast %441 : vector<16x1xf32> to vector<16x32xf32>
    %443 = arith.subf %437, %442 : vector<16x32xf32>
    %444 = arith.mulf %443, %443 : vector<16x32xf32>
    %cst_268 = arith.constant dense<0.000000e+00> : vector<16xf32>
    %445 = vector.multi_reduction <add>, %444, %cst_268 [1] : vector<16x32xf32> to vector<16xf32>
    %446 = vector.shape_cast %445 : vector<16xf32> to vector<16x1xf32>
    %cst_269 = arith.constant 3.200000e+01 : f32
    %447 = vector.broadcast %cst_269 : f32 to vector<16x1xf32>
    %448 = arith.divf %446, %447 : vector<16x1xf32>
    %449 = vector.broadcast %441 : vector<16x1xf32> to vector<16x32xf32>
    %450 = arith.subf %437, %449 : vector<16x32xf32>
    %cst_270 = arith.constant 9.99999993E-9 : f32
    %451 = vector.broadcast %cst_270 : f32 to vector<16x1xf32>
    %452 = arith.addf %448, %451 : vector<16x1xf32>
    %453 = math.rsqrt %452 : vector<16x1xf32>
    %454 = vector.broadcast %453 : vector<16x1xf32> to vector<16x32xf32>
    %455 = arith.mulf %450, %454 : vector<16x32xf32>
    %456 = arith.mulf %455, %330 : vector<16x32xf32>
    %457 = arith.addf %456, %332 : vector<16x32xf32>
    %458 = arith.truncf %457 : vector<16x32xf32> to vector<16x32xbf16>
    %c7_271 = arith.constant 7 : index
    %c0_272 = arith.constant 0 : index
    %c0_273 = arith.constant 0 : index
    %459 = vector.load %arg6[%c7_271, %c0_272, %c0_273] : memref<12x32x32xbf16, #tpu.memory_space<vmem>>, vector<1x32x32xbf16>
    %460 = vector.shape_cast %459 : vector<1x32x32xbf16> to vector<32x32xbf16>
    %cst_274 = arith.constant dense<0.000000e+00> : vector<16x32xf32>
    %461 = tpu.matmul %458, %460, %cst_274 {dimension_numbers = #tpu.dot_dimension_numbers<[1], [0], [0], [1], [0, 0, 1, 1], [], []>} : vector<16x32xbf16>, vector<32x32xbf16>, vector<16x32xf32> -> vector<16x32xf32>
    %462 = arith.addf %461, %336 : vector<16x32xf32>
    %cst_275 = arith.constant 0.000000e+00 : f32
    %463 = vector.broadcast %cst_275 : f32 to vector<16x32xf32>
    %464 = arith.maximumf %462, %463 : vector<16x32xf32>
    %465 = arith.truncf %464 : vector<16x32xf32> to vector<16x32xbf16>
    %c8_276 = arith.constant 8 : index
    %c0_277 = arith.constant 0 : index
    %c0_278 = arith.constant 0 : index
    %466 = vector.load %arg6[%c8_276, %c0_277, %c0_278] : memref<12x32x32xbf16, #tpu.memory_space<vmem>>, vector<1x32x32xbf16>
    %467 = vector.shape_cast %466 : vector<1x32x32xbf16> to vector<32x32xbf16>
    %cst_279 = arith.constant dense<0.000000e+00> : vector<16x32xf32>
    %468 = tpu.matmul %465, %467, %cst_279 {dimension_numbers = #tpu.dot_dimension_numbers<[1], [0], [0], [1], [0, 0, 1, 1], [], []>} : vector<16x32xbf16>, vector<32x32xbf16>, vector<16x32xf32> -> vector<16x32xf32>
    %469 = arith.addf %468, %338 : vector<16x32xf32>
    %470 = arith.addf %457, %469 : vector<16x32xf32>
    %471 = arith.mulf %470, %0 : vector<16x32xf32>
    %c21 = arith.constant 21 : index
    %c0_280 = arith.constant 0 : index
    %c0_281 = arith.constant 0 : index
    %472 = vector.load %arg7[%c21, %c0_280, %c0_281] : memref<28x16x32xf32, #tpu.memory_space<vmem>>, vector<1x16x32xf32>
    %473 = vector.shape_cast %472 : vector<1x16x32xf32> to vector<16x32xf32>
    %c22 = arith.constant 22 : index
    %c0_282 = arith.constant 0 : index
    %c0_283 = arith.constant 0 : index
    %474 = vector.load %arg7[%c22, %c0_282, %c0_283] : memref<28x16x32xf32, #tpu.memory_space<vmem>>, vector<1x16x32xf32>
    %475 = vector.shape_cast %474 : vector<1x16x32xf32> to vector<16x32xf32>
    %c23 = arith.constant 23 : index
    %c0_284 = arith.constant 0 : index
    %c0_285 = arith.constant 0 : index
    %476 = vector.load %arg7[%c23, %c0_284, %c0_285] : memref<28x16x32xf32, #tpu.memory_space<vmem>>, vector<1x16x32xf32>
    %477 = vector.shape_cast %476 : vector<1x16x32xf32> to vector<16x32xf32>
    %c24 = arith.constant 24 : index
    %c0_286 = arith.constant 0 : index
    %c0_287 = arith.constant 0 : index
    %478 = vector.load %arg7[%c24, %c0_286, %c0_287] : memref<28x16x32xf32, #tpu.memory_space<vmem>>, vector<1x16x32xf32>
    %479 = vector.shape_cast %478 : vector<1x16x32xf32> to vector<16x32xf32>
    %c25 = arith.constant 25 : index
    %c0_288 = arith.constant 0 : index
    %c0_289 = arith.constant 0 : index
    %480 = vector.load %arg7[%c25, %c0_288, %c0_289] : memref<28x16x32xf32, #tpu.memory_space<vmem>>, vector<1x16x32xf32>
    %481 = vector.shape_cast %480 : vector<1x16x32xf32> to vector<16x32xf32>
    %c26 = arith.constant 26 : index
    %c0_290 = arith.constant 0 : index
    %c0_291 = arith.constant 0 : index
    %482 = vector.load %arg7[%c26, %c0_290, %c0_291] : memref<28x16x32xf32, #tpu.memory_space<vmem>>, vector<1x16x32xf32>
    %483 = vector.shape_cast %482 : vector<1x16x32xf32> to vector<16x32xf32>
    %c27 = arith.constant 27 : index
    %c0_292 = arith.constant 0 : index
    %c0_293 = arith.constant 0 : index
    %484 = vector.load %arg7[%c27, %c0_292, %c0_293] : memref<28x16x32xf32, #tpu.memory_space<vmem>>, vector<1x16x32xf32>
    %485 = vector.shape_cast %484 : vector<1x16x32xf32> to vector<16x32xf32>
    %cst_294 = arith.constant dense<0.000000e+00> : vector<16xf32>
    %486 = vector.multi_reduction <add>, %471, %cst_294 [1] : vector<16x32xf32> to vector<16xf32>
    %487 = vector.shape_cast %486 : vector<16xf32> to vector<16x1xf32>
    %cst_295 = arith.constant 3.200000e+01 : f32
    %488 = vector.broadcast %cst_295 : f32 to vector<16x1xf32>
    %489 = arith.divf %487, %488 : vector<16x1xf32>
    %490 = vector.broadcast %489 : vector<16x1xf32> to vector<16x32xf32>
    %491 = arith.subf %471, %490 : vector<16x32xf32>
    %492 = arith.mulf %491, %491 : vector<16x32xf32>
    %cst_296 = arith.constant dense<0.000000e+00> : vector<16xf32>
    %493 = vector.multi_reduction <add>, %492, %cst_296 [1] : vector<16x32xf32> to vector<16xf32>
    %494 = vector.shape_cast %493 : vector<16xf32> to vector<16x1xf32>
    %cst_297 = arith.constant 3.200000e+01 : f32
    %495 = vector.broadcast %cst_297 : f32 to vector<16x1xf32>
    %496 = arith.divf %494, %495 : vector<16x1xf32>
    %497 = vector.broadcast %489 : vector<16x1xf32> to vector<16x32xf32>
    %498 = arith.subf %471, %497 : vector<16x32xf32>
    %cst_298 = arith.constant 9.99999993E-9 : f32
    %499 = vector.broadcast %cst_298 : f32 to vector<16x1xf32>
    %500 = arith.addf %496, %499 : vector<16x1xf32>
    %501 = math.rsqrt %500 : vector<16x1xf32>
    %502 = vector.broadcast %501 : vector<16x1xf32> to vector<16x32xf32>
    %503 = arith.mulf %498, %502 : vector<16x32xf32>
    %504 = arith.mulf %503, %473 : vector<16x32xf32>
    %505 = arith.addf %504, %475 : vector<16x32xf32>
    %506 = arith.truncf %505 : vector<16x32xf32> to vector<16x32xbf16>
    %507 = arith.truncf %471 : vector<16x32xf32> to vector<16x32xbf16>
    %c18_299 = arith.constant 18 : index
    %c0_300 = arith.constant 0 : index
    %c0_301 = arith.constant 0 : index
    %508 = vector.load %arg4[%c18_299, %c0_300, %c0_301] : memref<24x32x16xbf16, #tpu.memory_space<vmem>>, vector<1x32x16xbf16>
    %509 = vector.shape_cast %508 : vector<1x32x16xbf16> to vector<32x16xbf16>
    %cst_302 = arith.constant dense<0.000000e+00> : vector<16x16xf32>
    %510 = tpu.matmul %506, %509, %cst_302 {dimension_numbers = #tpu.dot_dimension_numbers<[1], [0], [0], [1], [0, 0, 1, 1], [], []>} : vector<16x32xbf16>, vector<32x16xbf16>, vector<16x16xf32> -> vector<16x16xf32>
    %c18_303 = arith.constant 18 : index
    %c0_304 = arith.constant 0 : index
    %c0_305 = arith.constant 0 : index
    %511 = vector.load %arg5[%c18_303, %c0_304, %c0_305] : memref<24x16x16xf32, #tpu.memory_space<vmem>>, vector<1x16x16xf32>
    %512 = vector.shape_cast %511 : vector<1x16x16xf32> to vector<16x16xf32>
    %513 = arith.addf %510, %512 : vector<16x16xf32>
    %c19_306 = arith.constant 19 : index
    %c0_307 = arith.constant 0 : index
    %c0_308 = arith.constant 0 : index
    %514 = vector.load %arg4[%c19_306, %c0_307, %c0_308] : memref<24x32x16xbf16, #tpu.memory_space<vmem>>, vector<1x32x16xbf16>
    %515 = vector.shape_cast %514 : vector<1x32x16xbf16> to vector<32x16xbf16>
    %cst_309 = arith.constant dense<0.000000e+00> : vector<16x16xf32>
    %516 = tpu.matmul %507, %515, %cst_309 {dimension_numbers = #tpu.dot_dimension_numbers<[1], [0], [0], [1], [0, 0, 1, 1], [], []>} : vector<16x32xbf16>, vector<32x16xbf16>, vector<16x16xf32> -> vector<16x16xf32>
    %c19_310 = arith.constant 19 : index
    %c0_311 = arith.constant 0 : index
    %c0_312 = arith.constant 0 : index
    %517 = vector.load %arg5[%c19_310, %c0_311, %c0_312] : memref<24x16x16xf32, #tpu.memory_space<vmem>>, vector<1x16x16xf32>
    %518 = vector.shape_cast %517 : vector<1x16x16xf32> to vector<16x16xf32>
    %519 = arith.addf %516, %518 : vector<16x16xf32>
    %c20_313 = arith.constant 20 : index
    %c0_314 = arith.constant 0 : index
    %c0_315 = arith.constant 0 : index
    %520 = vector.load %arg4[%c20_313, %c0_314, %c0_315] : memref<24x32x16xbf16, #tpu.memory_space<vmem>>, vector<1x32x16xbf16>
    %521 = vector.shape_cast %520 : vector<1x32x16xbf16> to vector<32x16xbf16>
    %cst_316 = arith.constant dense<0.000000e+00> : vector<16x16xf32>
    %522 = tpu.matmul %507, %521, %cst_316 {dimension_numbers = #tpu.dot_dimension_numbers<[1], [0], [0], [1], [0, 0, 1, 1], [], []>} : vector<16x32xbf16>, vector<32x16xbf16>, vector<16x16xf32> -> vector<16x16xf32>
    %c20_317 = arith.constant 20 : index
    %c0_318 = arith.constant 0 : index
    %c0_319 = arith.constant 0 : index
    %523 = vector.load %arg5[%c20_317, %c0_318, %c0_319] : memref<24x16x16xf32, #tpu.memory_space<vmem>>, vector<1x16x16xf32>
    %524 = vector.shape_cast %523 : vector<1x16x16xf32> to vector<16x16xf32>
    %525 = arith.addf %522, %524 : vector<16x16xf32>
    %526 = arith.truncf %513 : vector<16x16xf32> to vector<16x16xbf16>
    %527 = arith.truncf %519 : vector<16x16xf32> to vector<16x16xbf16>
    %cst_320 = arith.constant dense<0.000000e+00> : vector<16x16xf32>
    %528 = tpu.matmul %526, %527, %cst_320 {dimension_numbers = #tpu.dot_dimension_numbers<[1], [1], [0], [0], [0, 0, 1, 0], [], []>} : vector<16x16xbf16>, vector<16x16xbf16>, vector<16x16xf32> -> vector<16x16xf32>
    %529 = arith.addf %528, %1 : vector<16x16xf32>
    %cst_321 = arith.constant dense<0xFF800000> : vector<16xf32>
    %530 = vector.multi_reduction <maximumf>, %529, %cst_321 [1] : vector<16x16xf32> to vector<16xf32>
    %531 = vector.shape_cast %530 : vector<16xf32> to vector<16x1xf32>
    %532 = vector.broadcast %531 : vector<16x1xf32> to vector<16x16xf32>
    %533 = arith.subf %529, %532 : vector<16x16xf32>
    %534 = math.exp %533 : vector<16x16xf32>
    %cst_322 = arith.constant dense<0.000000e+00> : vector<16xf32>
    %535 = vector.multi_reduction <add>, %534, %cst_322 [1] : vector<16x16xf32> to vector<16xf32>
    %536 = vector.shape_cast %535 : vector<16xf32> to vector<16x1xf32>
    %537 = tpu.reciprocal %536 {approx = true} : vector<16x1xf32> -> vector<16x1xf32>
    %538 = vector.broadcast %537 : vector<16x1xf32> to vector<16x16xf32>
    %539 = arith.mulf %534, %538 : vector<16x16xf32>
    %540 = arith.truncf %539 : vector<16x16xf32> to vector<16x16xbf16>
    %541 = arith.truncf %525 : vector<16x16xf32> to vector<16x16xbf16>
    %cst_323 = arith.constant dense<0.000000e+00> : vector<16x16xf32>
    %542 = tpu.matmul %540, %541, %cst_323 {dimension_numbers = #tpu.dot_dimension_numbers<[1], [0], [0], [1], [0, 0, 1, 1], [], []>} : vector<16x16xbf16>, vector<16x16xbf16>, vector<16x16xf32> -> vector<16x16xf32>
    %c21_324 = arith.constant 21 : index
    %c0_325 = arith.constant 0 : index
    %c0_326 = arith.constant 0 : index
    %543 = vector.load %arg4[%c21_324, %c0_325, %c0_326] : memref<24x32x16xbf16, #tpu.memory_space<vmem>>, vector<1x32x16xbf16>
    %544 = vector.shape_cast %543 : vector<1x32x16xbf16> to vector<32x16xbf16>
    %cst_327 = arith.constant dense<0.000000e+00> : vector<16x16xf32>
    %545 = tpu.matmul %506, %544, %cst_327 {dimension_numbers = #tpu.dot_dimension_numbers<[1], [0], [0], [1], [0, 0, 1, 1], [], []>} : vector<16x32xbf16>, vector<32x16xbf16>, vector<16x16xf32> -> vector<16x16xf32>
    %c21_328 = arith.constant 21 : index
    %c0_329 = arith.constant 0 : index
    %c0_330 = arith.constant 0 : index
    %546 = vector.load %arg5[%c21_328, %c0_329, %c0_330] : memref<24x16x16xf32, #tpu.memory_space<vmem>>, vector<1x16x16xf32>
    %547 = vector.shape_cast %546 : vector<1x16x16xf32> to vector<16x16xf32>
    %548 = arith.addf %545, %547 : vector<16x16xf32>
    %c22_331 = arith.constant 22 : index
    %c0_332 = arith.constant 0 : index
    %c0_333 = arith.constant 0 : index
    %549 = vector.load %arg4[%c22_331, %c0_332, %c0_333] : memref<24x32x16xbf16, #tpu.memory_space<vmem>>, vector<1x32x16xbf16>
    %550 = vector.shape_cast %549 : vector<1x32x16xbf16> to vector<32x16xbf16>
    %cst_334 = arith.constant dense<0.000000e+00> : vector<16x16xf32>
    %551 = tpu.matmul %507, %550, %cst_334 {dimension_numbers = #tpu.dot_dimension_numbers<[1], [0], [0], [1], [0, 0, 1, 1], [], []>} : vector<16x32xbf16>, vector<32x16xbf16>, vector<16x16xf32> -> vector<16x16xf32>
    %c22_335 = arith.constant 22 : index
    %c0_336 = arith.constant 0 : index
    %c0_337 = arith.constant 0 : index
    %552 = vector.load %arg5[%c22_335, %c0_336, %c0_337] : memref<24x16x16xf32, #tpu.memory_space<vmem>>, vector<1x16x16xf32>
    %553 = vector.shape_cast %552 : vector<1x16x16xf32> to vector<16x16xf32>
    %554 = arith.addf %551, %553 : vector<16x16xf32>
    %c23_338 = arith.constant 23 : index
    %c0_339 = arith.constant 0 : index
    %c0_340 = arith.constant 0 : index
    %555 = vector.load %arg4[%c23_338, %c0_339, %c0_340] : memref<24x32x16xbf16, #tpu.memory_space<vmem>>, vector<1x32x16xbf16>
    %556 = vector.shape_cast %555 : vector<1x32x16xbf16> to vector<32x16xbf16>
    %cst_341 = arith.constant dense<0.000000e+00> : vector<16x16xf32>
    %557 = tpu.matmul %507, %556, %cst_341 {dimension_numbers = #tpu.dot_dimension_numbers<[1], [0], [0], [1], [0, 0, 1, 1], [], []>} : vector<16x32xbf16>, vector<32x16xbf16>, vector<16x16xf32> -> vector<16x16xf32>
    %c23_342 = arith.constant 23 : index
    %c0_343 = arith.constant 0 : index
    %c0_344 = arith.constant 0 : index
    %558 = vector.load %arg5[%c23_342, %c0_343, %c0_344] : memref<24x16x16xf32, #tpu.memory_space<vmem>>, vector<1x16x16xf32>
    %559 = vector.shape_cast %558 : vector<1x16x16xf32> to vector<16x16xf32>
    %560 = arith.addf %557, %559 : vector<16x16xf32>
    %561 = arith.truncf %548 : vector<16x16xf32> to vector<16x16xbf16>
    %562 = arith.truncf %554 : vector<16x16xf32> to vector<16x16xbf16>
    %cst_345 = arith.constant dense<0.000000e+00> : vector<16x16xf32>
    %563 = tpu.matmul %561, %562, %cst_345 {dimension_numbers = #tpu.dot_dimension_numbers<[1], [1], [0], [0], [0, 0, 1, 0], [], []>} : vector<16x16xbf16>, vector<16x16xbf16>, vector<16x16xf32> -> vector<16x16xf32>
    %564 = arith.addf %563, %1 : vector<16x16xf32>
    %cst_346 = arith.constant dense<0xFF800000> : vector<16xf32>
    %565 = vector.multi_reduction <maximumf>, %564, %cst_346 [1] : vector<16x16xf32> to vector<16xf32>
    %566 = vector.shape_cast %565 : vector<16xf32> to vector<16x1xf32>
    %567 = vector.broadcast %566 : vector<16x1xf32> to vector<16x16xf32>
    %568 = arith.subf %564, %567 : vector<16x16xf32>
    %569 = math.exp %568 : vector<16x16xf32>
    %cst_347 = arith.constant dense<0.000000e+00> : vector<16xf32>
    %570 = vector.multi_reduction <add>, %569, %cst_347 [1] : vector<16x16xf32> to vector<16xf32>
    %571 = vector.shape_cast %570 : vector<16xf32> to vector<16x1xf32>
    %572 = tpu.reciprocal %571 {approx = true} : vector<16x1xf32> -> vector<16x1xf32>
    %573 = vector.broadcast %572 : vector<16x1xf32> to vector<16x16xf32>
    %574 = arith.mulf %569, %573 : vector<16x16xf32>
    %575 = arith.truncf %574 : vector<16x16xf32> to vector<16x16xbf16>
    %576 = arith.truncf %560 : vector<16x16xf32> to vector<16x16xbf16>
    %cst_348 = arith.constant dense<0.000000e+00> : vector<16x16xf32>
    %577 = tpu.matmul %575, %576, %cst_348 {dimension_numbers = #tpu.dot_dimension_numbers<[1], [0], [0], [1], [0, 0, 1, 1], [], []>} : vector<16x16xbf16>, vector<16x16xbf16>, vector<16x16xf32> -> vector<16x16xf32>
    %578 = tpu.concatenate %542, %577 in 1 : vector<16x16xf32>, vector<16x16xf32> -> vector<16x32xf32>
    %579 = arith.truncf %578 : vector<16x32xf32> to vector<16x32xbf16>
    %c9_349 = arith.constant 9 : index
    %c0_350 = arith.constant 0 : index
    %c0_351 = arith.constant 0 : index
    %580 = vector.load %arg6[%c9_349, %c0_350, %c0_351] : memref<12x32x32xbf16, #tpu.memory_space<vmem>>, vector<1x32x32xbf16>
    %581 = vector.shape_cast %580 : vector<1x32x32xbf16> to vector<32x32xbf16>
    %cst_352 = arith.constant dense<0.000000e+00> : vector<16x32xf32>
    %582 = tpu.matmul %579, %581, %cst_352 {dimension_numbers = #tpu.dot_dimension_numbers<[1], [0], [0], [1], [0, 0, 1, 1], [], []>} : vector<16x32xbf16>, vector<32x32xbf16>, vector<16x32xf32> -> vector<16x32xf32>
    %583 = arith.addf %582, %481 : vector<16x32xf32>
    %584 = arith.addf %505, %583 : vector<16x32xf32>
    %cst_353 = arith.constant dense<0.000000e+00> : vector<16xf32>
    %585 = vector.multi_reduction <add>, %584, %cst_353 [1] : vector<16x32xf32> to vector<16xf32>
    %586 = vector.shape_cast %585 : vector<16xf32> to vector<16x1xf32>
    %cst_354 = arith.constant 3.200000e+01 : f32
    %587 = vector.broadcast %cst_354 : f32 to vector<16x1xf32>
    %588 = arith.divf %586, %587 : vector<16x1xf32>
    %589 = vector.broadcast %588 : vector<16x1xf32> to vector<16x32xf32>
    %590 = arith.subf %584, %589 : vector<16x32xf32>
    %591 = arith.mulf %590, %590 : vector<16x32xf32>
    %cst_355 = arith.constant dense<0.000000e+00> : vector<16xf32>
    %592 = vector.multi_reduction <add>, %591, %cst_355 [1] : vector<16x32xf32> to vector<16xf32>
    %593 = vector.shape_cast %592 : vector<16xf32> to vector<16x1xf32>
    %cst_356 = arith.constant 3.200000e+01 : f32
    %594 = vector.broadcast %cst_356 : f32 to vector<16x1xf32>
    %595 = arith.divf %593, %594 : vector<16x1xf32>
    %596 = vector.broadcast %588 : vector<16x1xf32> to vector<16x32xf32>
    %597 = arith.subf %584, %596 : vector<16x32xf32>
    %cst_357 = arith.constant 9.99999993E-9 : f32
    %598 = vector.broadcast %cst_357 : f32 to vector<16x1xf32>
    %599 = arith.addf %595, %598 : vector<16x1xf32>
    %600 = math.rsqrt %599 : vector<16x1xf32>
    %601 = vector.broadcast %600 : vector<16x1xf32> to vector<16x32xf32>
    %602 = arith.mulf %597, %601 : vector<16x32xf32>
    %603 = arith.mulf %602, %477 : vector<16x32xf32>
    %604 = arith.addf %603, %479 : vector<16x32xf32>
    %605 = arith.truncf %604 : vector<16x32xf32> to vector<16x32xbf16>
    %c10_358 = arith.constant 10 : index
    %c0_359 = arith.constant 0 : index
    %c0_360 = arith.constant 0 : index
    %606 = vector.load %arg6[%c10_358, %c0_359, %c0_360] : memref<12x32x32xbf16, #tpu.memory_space<vmem>>, vector<1x32x32xbf16>
    %607 = vector.shape_cast %606 : vector<1x32x32xbf16> to vector<32x32xbf16>
    %cst_361 = arith.constant dense<0.000000e+00> : vector<16x32xf32>
    %608 = tpu.matmul %605, %607, %cst_361 {dimension_numbers = #tpu.dot_dimension_numbers<[1], [0], [0], [1], [0, 0, 1, 1], [], []>} : vector<16x32xbf16>, vector<32x32xbf16>, vector<16x32xf32> -> vector<16x32xf32>
    %609 = arith.addf %608, %483 : vector<16x32xf32>
    %cst_362 = arith.constant 0.000000e+00 : f32
    %610 = vector.broadcast %cst_362 : f32 to vector<16x32xf32>
    %611 = arith.maximumf %609, %610 : vector<16x32xf32>
    %612 = arith.truncf %611 : vector<16x32xf32> to vector<16x32xbf16>
    %c11_363 = arith.constant 11 : index
    %c0_364 = arith.constant 0 : index
    %c0_365 = arith.constant 0 : index
    %613 = vector.load %arg6[%c11_363, %c0_364, %c0_365] : memref<12x32x32xbf16, #tpu.memory_space<vmem>>, vector<1x32x32xbf16>
    %614 = vector.shape_cast %613 : vector<1x32x32xbf16> to vector<32x32xbf16>
    %cst_366 = arith.constant dense<0.000000e+00> : vector<16x32xf32>
    %615 = tpu.matmul %612, %614, %cst_366 {dimension_numbers = #tpu.dot_dimension_numbers<[1], [0], [0], [1], [0, 0, 1, 1], [], []>} : vector<16x32xbf16>, vector<32x32xbf16>, vector<16x32xf32> -> vector<16x32xf32>
    %616 = arith.addf %615, %485 : vector<16x32xf32>
    %617 = arith.addf %604, %616 : vector<16x32xf32>
    %618 = arith.mulf %617, %0 : vector<16x32xf32>
    %c2_367 = arith.constant 2 : index
    %c0_368 = arith.constant 0 : index
    %c0_369 = arith.constant 0 : index
    %619 = vector.load %arg8[%c2_367, %c0_368, %c0_369] : memref<4x16x32xf32, #tpu.memory_space<vmem>>, vector<1x16x32xf32>
    %620 = vector.shape_cast %619 : vector<1x16x32xf32> to vector<16x32xf32>
    %c3_370 = arith.constant 3 : index
    %c0_371 = arith.constant 0 : index
    %c0_372 = arith.constant 0 : index
    %621 = vector.load %arg8[%c3_370, %c0_371, %c0_372] : memref<4x16x32xf32, #tpu.memory_space<vmem>>, vector<1x16x32xf32>
    %622 = vector.shape_cast %621 : vector<1x16x32xf32> to vector<16x32xf32>
    %cst_373 = arith.constant dense<0.000000e+00> : vector<16xf32>
    %623 = vector.multi_reduction <add>, %618, %cst_373 [1] : vector<16x32xf32> to vector<16xf32>
    %624 = vector.shape_cast %623 : vector<16xf32> to vector<16x1xf32>
    %cst_374 = arith.constant 3.200000e+01 : f32
    %625 = vector.broadcast %cst_374 : f32 to vector<16x1xf32>
    %626 = arith.divf %624, %625 : vector<16x1xf32>
    %627 = vector.broadcast %626 : vector<16x1xf32> to vector<16x32xf32>
    %628 = arith.subf %618, %627 : vector<16x32xf32>
    %629 = arith.mulf %628, %628 : vector<16x32xf32>
    %cst_375 = arith.constant dense<0.000000e+00> : vector<16xf32>
    %630 = vector.multi_reduction <add>, %629, %cst_375 [1] : vector<16x32xf32> to vector<16xf32>
    %631 = vector.shape_cast %630 : vector<16xf32> to vector<16x1xf32>
    %cst_376 = arith.constant 3.200000e+01 : f32
    %632 = vector.broadcast %cst_376 : f32 to vector<16x1xf32>
    %633 = arith.divf %631, %632 : vector<16x1xf32>
    %634 = vector.broadcast %626 : vector<16x1xf32> to vector<16x32xf32>
    %635 = arith.subf %618, %634 : vector<16x32xf32>
    %cst_377 = arith.constant 9.99999993E-9 : f32
    %636 = vector.broadcast %cst_377 : f32 to vector<16x1xf32>
    %637 = arith.addf %633, %636 : vector<16x1xf32>
    %638 = math.rsqrt %637 : vector<16x1xf32>
    %639 = vector.broadcast %638 : vector<16x1xf32> to vector<16x32xf32>
    %640 = arith.mulf %635, %639 : vector<16x32xf32>
    %641 = arith.mulf %640, %620 : vector<16x32xf32>
    %642 = arith.addf %641, %622 : vector<16x32xf32>
    %c1_378 = arith.constant 1 : index
    %c0_379 = arith.constant 0 : index
    %c0_380 = arith.constant 0 : index
    %643 = vector.load %arg9[%c1_378, %c0_379, %c0_380] : memref<2x16x32xf32, #tpu.memory_space<vmem>>, vector<1x16x32xf32>
    %644 = vector.shape_cast %643 : vector<1x16x32xf32> to vector<16x32xf32>
    %645 = vector.shape_cast %642 : vector<16x32xf32> to vector<1x16x32xf32>
    tpu.vector_store %arg9[%c1_378, %c0_379, %c0_380], %645 {strides = array<i32>} : memref<2x16x32xf32, #tpu.memory_space<vmem>>, vector<1x16x32xf32>,
    return
  }
  func.func @transform_0(%arg0: i32) -> (i32, i32) {
    %c0_i32 = arith.constant 0 : i32
    %c0_i32_0 = arith.constant 0 : i32
    %c0_i32_1 = arith.constant 0 : i32
    return %c0_i32, %c0_i32_0 : i32, i32
  }
  func.func @transform_1(%arg0: i32) -> (i32, i32) {
    %c0_i32 = arith.constant 0 : i32
    %c0_i32_0 = arith.constant 0 : i32
    %c0_i32_1 = arith.constant 0 : i32
    return %c0_i32, %c0_i32_0 : i32, i32
  }
  func.func @transform_2(%arg0: i32) -> (i32, i32) {
    %c0_i32 = arith.constant 0 : i32
    %c0_i32_0 = arith.constant 0 : i32
    %c0_i32_1 = arith.constant 0 : i32
    return %c0_i32, %c0_i32_0 : i32, i32
  }
  func.func @transform_3(%arg0: i32) -> (i32, i32, i32) {
    %c0_i32 = arith.constant 0 : i32
    %c0_i32_0 = arith.constant 0 : i32
    %c0_i32_1 = arith.constant 0 : i32
    %c0_i32_2 = arith.constant 0 : i32
    return %c0_i32, %c0_i32_0, %c0_i32_1 : i32, i32, i32
  }
  func.func @transform_4(%arg0: i32) -> (i32, i32, i32) {
    %c0_i32 = arith.constant 0 : i32
    %c0_i32_0 = arith.constant 0 : i32
    %c0_i32_1 = arith.constant 0 : i32
    %c0_i32_2 = arith.constant 0 : i32
    return %c0_i32, %c0_i32_0, %c0_i32_1 : i32, i32, i32
  }
  func.func @transform_5(%arg0: i32) -> (i32, i32, i32) {
    %c0_i32 = arith.constant 0 : i32
    %c0_i32_0 = arith.constant 0 : i32
    %c0_i32_1 = arith.constant 0 : i32
    %c0_i32_2 = arith.constant 0 : i32
    return %c0_i32, %c0_i32_0, %c0_i32_1 : i32, i32, i32
  }
  func.func @transform_6(%arg0: i32) -> (i32, i32, i32) {
    %c0_i32 = arith.constant 0 : i32
    %c0_i32_0 = arith.constant 0 : i32
    %c0_i32_1 = arith.constant 0 : i32
    %c0_i32_2 = arith.constant 0 : i32
    return %c0_i32, %c0_i32_0, %c0_i32_1 : i32, i32, i32
  }
  func.func @transform_7(%arg0: i32) -> (i32, i32, i32) {
    %c0_i32 = arith.constant 0 : i32
    %c0_i32_0 = arith.constant 0 : i32
    %c0_i32_1 = arith.constant 0 : i32
    %c0_i32_2 = arith.constant 0 : i32
    return %c0_i32, %c0_i32_0, %c0_i32_1 : i32, i32, i32
  }
  func.func @transform_8(%arg0: i32) -> (i32, i32, i32) {
    %c0_i32 = arith.constant 0 : i32
    %c0_i32_0 = arith.constant 0 : i32
    %c0_i32_1 = arith.constant 0 : i32
    %c0_i32_2 = arith.constant 0 : i32
    return %c0_i32, %c0_i32_0, %c0_i32_1 : i32, i32, i32
  }
}

</mosaic_0001>

<bundles_post_ra>
// kernel: encoder_forward.1
= control target key start
LH: loop header
LB: loop body
LE: loop exit
PB: predicated region body
PF: predicated region fallthrough
CT: control target
= control target key end

     0   :  { %vm58_vm0 = vcmask 261120   ;;  %v3207_v8 = vmov 32.0   ;;  %vm224_vm8 = vcmask 130048   ;;  %s3208_s30 = smov 16   ;;  %s4158_s0 = inlined_call_operand.vmem [shape: f32[16,32], index: 0, kind: input, shape index: {}]   ;;  %s4159_s2 = inlined_call_operand.vmem [shape: f32[16,32], index: 2, kind: input, shape index: {}]   ;;  %s4160_s3 = inlined_call_operand.vmem [shape: bf16[24,32,16], index: 3, kind: input, shape index: {}]   ;;  %s4161_s6 = inlined_call_operand.vmem [shape: f32[28,16,32], index: 6, kind: input, shape index: {}]   ;;  %s4162_s4 = inlined_call_operand.vmem [shape: f32[24,16,16], index: 4, kind: input, shape index: {}]   ;;  %s4163_s1 = inlined_call_operand.vmem [shape: f32[16,16], index: 1, kind: input, shape index: {}]   ;;  %s4164_s5 = inlined_call_operand.vmem [shape: bf16[12,32,32], index: 5, kind: input, shape index: {}]   ;;  %s4165_s7 = inlined_call_operand.vmem [shape: f32[4,16,32], index: 7, kind: input, shape index: {}]   ;;  %s4166_s8 = inlined_call_operand.vmem [shape: f32[2,16,32], index: 8, kind: output, shape index: {}]  }
   0x1   :  { %v3257_v0 = vld [vmem:[%s4158_s0] sm:$0xff]  ;;  %v3266_v3 = vld [vmem:[%s4158_s0 + $0x8] sm:$0xff]  ;;  %3101 = vrcp.f32 %v3207_v8  ;;  %v3010_v25 = vld [vmem:[%s4160_s3 + $0x18] sm:$0xff] }
   0x2   :  { %v34_v1 = vld [vmem:[%s4159_s2] sm:$0xff]  ;;  %v35_v4 = vld [vmem:[%s4159_s2 + $0x8] sm:$0xff]  ;;  %180 = vmatpush.bf16.msra.mxu1 %v3010_v25  ;;  %v3009_v26 = vld [vmem:[%s4160_s3 + $0x10] sm:$0xff] }
   0x3   :  { %v36_v2 = vmul.f32 %v34_v1, %v3257_v0  ;;  %v37_v6 = vmul.f32 %v35_v4, %v3266_v3  ;;  %v3008_v28 = vld [vmem:[%s4160_s3 + $0x8] sm:$0xff]  ;;  %v3014_v29 = vld [vmem:[%s4160_s3 + $0x38] sm:$0xff]  ;;  %v3007_v32 = vld [vmem:[%s4160_s3] sm:$0xff] }
   0x4   :  { %143 = vmatpush.bf16.msra.mxu0 %v3008_v28  ;;  %v3013_v33 = vld [vmem:[%s4160_s3 + $0x30] sm:$0xff]  ;;  %v38_v52 = vld [vmem:[%s4161_s6] sm:$0xff]  ;;  %v39_v54 = vld [vmem:[%s4161_s6 + $0x8] sm:$0xff] }
   0x5   :  { %v59_v5 = vsel %vm58_vm0, %v36_v2, 0.0  ;;  %v62_v7 = vsel %vm58_vm0, %v37_v6, 0.0  ;;  %v3286_v27 = vpack.c.bf16 %v37_v6, %v36_v2  ;;  %v2423_v57 = vld [vmem:[%s4161_s6 + $0x10] sm:$0xff]  ;;  %v2424_v58 = vld [vmem:[%s4161_s6 + $0x18] sm:$0xff]  ;;  %v3370_v25 = vld [vmem:[%s4163_s1 + $0x8] sm:$0xff] }
   0x6   :  { %60 = vadd.xlane.f32.xlu0 %v59_v5  ;;  %181 = vmatpush.bf16.msra.mxu1 %v3009_v26  ;;  %v2448_v1 = vld [vmem:[%s4162_s4 + $0x10] sm:$0xff] }
   0x7   :  { %v3102_v9 = vpop.eup %3101 }
   0x8   :  { %v66_v10 = vmul.f32 32.0, %v3102_v9  ;;  %vm70_vm1 = vweird.f32 %v3102_v9  ;;  %144 = vmatpush.bf16.msra.mxu0 %v3007_v32 }
   0x9   :  { %2458 = vmatmul.msk.bf16.vlgmr.msra.gmra.mxu1 %vm58_vm0, %v3286_v27 }
   0xa   :  { %v67_v11 = vsub.f32 1.0, %v66_v10  ;;  %312 = vmatpush.bf16.msrb.mxu1 %v3014_v29  ;;  %v120_v10 = vld [vmem:[%s4162_s4] sm:$0xff] }
   0xc   :  { %v68_v12 = vmul.f32 %v3102_v9, %v67_v11  ;;  %v121_v11 = vld [vmem:[%s4162_s4 + $0x8] sm:$0xff] }
   0xe   :  { %63 = vadd.xlane.f32.xlu0 %v62_v7  ;;  %v69_v13 = vadd.f32 %v3102_v9, %v68_v12  ;;  %313 = vmatpush.bf16.msrb.mxu1 %v3013_v33 }
  0x10   :  { %v3274_v14 = vsel %vm70_vm1, %v3102_v9, %v69_v13 }
  0x79   :  { %v61_v15 = vpop.xlane.xlu0 %60 }
  0x7a   :  { %v72_v16 = vmul.f32 %v3274_v14, %v61_v15 }
  0x7c   :  { %v74_v17 = vsub.f32 %v36_v2, %v72_v16  ;;  %v2449_v2 = vld [vmem:[%s4162_s4 + $0x18] sm:$0xff] }
  0x7e   :  { %v76_v18 = vmul.f32 %v74_v17, %v74_v17 }
  0x80   :  { %v78_v19 = vsel %vm58_vm0, %v76_v18, 0.0  ;;  %v3011_v18 = vld [vmem:[%s4160_s3 + $0x20] sm:$0xff] }
  0x81   :  { %79 = vadd.xlane.f32.xlu1 %v78_v19  ;;  %v64_v20 = vpop.xlane.xlu0 %63  ;;  %v3016_v19 = vld [vmem:[%s4160_s3 + $0x48] sm:$0xff] }
  0x82   :  { %v73_v21 = vmul.f32 %v3274_v14, %v64_v20  ;;  %v3015_v20 = vld [vmem:[%s4160_s3 + $0x40] sm:$0xff] }
  0x84   :  { %v75_v22 = vsub.f32 %v37_v6, %v73_v21  ;;  %v3361_v21 = vld [vmem:[%s4163_s1] sm:$0xff] }
  0x86   :  { %v77_v23 = vmul.f32 %v75_v22, %v75_v22  ;;  %v183_v63 = vpop.f32.mrf.mxu1 }
  0x87   :  { %v184_v4 = vadd.f32 %v2448_v1, %v183_v63 }
  0x88   :  { %v81_v24 = vsel %vm58_vm0, %v77_v23, 0.0 }
  0x89   :  { %82 = vadd.xlane.f32.xlu1 %v81_v24 }
  0x8e   :  { %v185_v5 = vpop.f32.mrf.mxu1 }
  0x8f   :  { %v186_v6 = vadd.f32 %v2449_v2, %v185_v5  ;;  %v2481_v5 = vld [vmem:[%s4162_s4 + $0x38] sm:$0xff] }
  0x91   :  { %v223_v7 = vpack.c.bf16 %v186_v6, %v184_v4 }
  0x93   :  { %v229_v8 = vsel %vm224_vm8, %v223_v7, 0  ;;  %v2480_v7 = vld [vmem:[%s4162_s4 + $0x30] sm:$0xff] }
  0x94   :  { %238 = vmatpush.bf16.xpose.msra.mxu3 %v229_v8 }
  0xf4   :  { %v80_v30 = vpop.xlane.xlu1 %79 }
  0xf5   :  { %v84_v31 = vmul.f32 %v80_v30, %v3274_v14 }
  0xf7   :  { %v86_v34 = vadd.f32 1e-08, %v84_v31 }
  0xf9   :  { %3103 = vrsqrt.f32 %v86_v34  ;;  %vm94_vm3 = vweird.f32 %v86_v34 }
  0xfc   :  { %v83_v35 = vpop.xlane.xlu1 %82 }
  0xfd   :  { %v85_v36 = vmul.f32 %v83_v35, %v3274_v14  ;;  %v2464_v35 = vld [vmem:[%s4162_s4 + $0x28] sm:$0xff] }
  0xff   :  { %v3104_v37 = vpop.eup %3103  ;;  %v87_v38 = vadd.f32 1e-08, %v85_v36 }
 0x100   :  { %v89_v39 = vmul.f32 %v3104_v37, %v86_v34  ;;  %vm95_vm2 = vweird.f32 %v3104_v37  ;;  %v2463_v34 = vld [vmem:[%s4162_s4 + $0x20] sm:$0xff] }
 0x101   :  { %3105 = vrsqrt.f32 %v87_v38  ;;  %vm96_vm4 = vmor %vm94_vm3, %vm95_vm2  ;;  %vm104_vm6 = vweird.f32 %v87_v38 }
 0x102   :  { %v90_v40 = vmul.f32 %v3104_v37, %v89_v39 }
 0x104   :  { %v91_v41 = vmul.f32 0.5, %v90_v40 }
 0x106   :  { %v92_v42 = vsub.f32 1.5, %v91_v41 }
 0x107   :  { %v3106_v43 = vpop.eup %3105 }
 0x108   :  { %v93_v44 = vmul.f32 %v3104_v37, %v92_v42  ;;  %v99_v45 = vmul.f32 %v3106_v43, %v87_v38  ;;  %vm105_vm5 = vweird.f32 %v3106_v43 }
 0x109   :  { %vm106_vm7 = vmor %vm104_vm6, %vm105_vm5 }
 0x10a   :  { %v100_v46 = vmul.f32 %v3106_v43, %v99_v45  ;;  %v97_v47 = vsel %vm96_vm4, %v3104_v37, %v93_v44 }
 0x10b   :  { %v3304_v50 = vmul.f32 %v97_v47, %v74_v17  ;;  %v3012_v17 = vld [vmem:[%s4160_s3 + $0x28] sm:$0xff] }
 0x10c   :  { %v101_v48 = vmul.f32 0.5, %v100_v46  ;;  %214 = vmatpush.bf16.msra.mxu2 %v3012_v17 }
 0x10d   :  { %v110_v56 = vmul.f32 %v3304_v50, %v38_v52 }
 0x10e   :  { %v102_v49 = vsub.f32 1.5, %v101_v48  ;;  %v2495_v48 = vld [vmem:[%s4162_s4 + $0x40] sm:$0xff] }
 0x10f   :  { %v3322_v60 = vadd.f32 %v2423_v57, %v110_v56 }
 0x110   :  { %v103_v51 = vmul.f32 %v3106_v43, %v102_v49  ;;  %215 = vmatpush.bf16.msra.mxu2 %v3011_v18 }
 0x112   :  { %v107_v53 = vsel %vm106_vm7, %v3106_v43, %v103_v51  ;;  %v2496_v51 = vld [vmem:[%s4162_s4 + $0x48] sm:$0xff] }
 0x113   :  { %v3312_v55 = vmul.f32 %v107_v53, %v75_v22  ;;  %2473 = vmatmul.msk.bf16.vlgmr.msra.gmra.mxu2 %vm58_vm0, %v3286_v27 }
 0x114   :  { %346 = vmatpush.bf16.msrb.mxu2 %v3016_v19 }
 0x115   :  { %v111_v59 = vmul.f32 %v3312_v55, %v39_v54 }
 0x117   :  { %v3324_v61 = vadd.f32 %v2424_v58, %v111_v59 }
 0x118   :  { %347 = vmatpush.bf16.msrb.mxu2 %v3015_v20 }
 0x119   :  { %v114_v62 = vpack.c.bf16 %v3324_v61, %v3322_v60 }
 0x11b   :  { %2443 = vmatmul.msk.bf16.vlgmr.msra.gmra.mxu0 %vm58_vm0, %v114_v62  ;;  %2490 = vmatmul.msk.bf16.vlgmr.msrb.gmra.mxu1 %vm58_vm0, %v114_v62 }
 0x123   :  { %2505 = vmatmul.msk.bf16.vlgmr.msrb.gmra.mxu2 %vm58_vm0, %v3286_v27 }
 0x196   :  { %v217_v32 = vpop.f32.mrf.mxu2 }
 0x197   :  { %v218_v37 = vadd.f32 %v2463_v34, %v217_v32 }
 0x198   :  { %v146_v9 = vpop.f32.mrf.mxu0  ;;  %v315_v2 = vpop.f32.mrf.mxu1 }
 0x199   :  { %v147_v13 = vadd.f32 %v146_v9, %v120_v10  ;;  %v316_v9 = vadd.f32 %v2480_v7, %v315_v2  ;;  %v2430_v7 = vld [vmem:[%s4161_s6 + $0x48] sm:$0xff] }
 0x19e   :  { %v219_v39 = vpop.f32.mrf.mxu2 }
 0x19f   :  { %v220_v40 = vadd.f32 %v2464_v35, %v219_v39 }
 0x1a0   :  { %v148_v12 = vpop.f32.mrf.mxu0  ;;  %v317_v6 = vpop.f32.mrf.mxu1 }
 0x1a1   :  { %v149_v15 = vadd.f32 %v148_v12, %v121_v11  ;;  %v268_v44 = vpack.c.bf16 %v220_v40, %v218_v37  ;;  %v318_v8 = vadd.f32 %v2481_v5, %v317_v6  ;;  %v3018_v11 = vld [vmem:[%s4160_s3 + $0x58] sm:$0xff]  ;;  %v3017_v12 = vld [vmem:[%s4160_s3 + $0x50] sm:$0xff] }
 0x1a2   :  { %380 = vmatpush.bf16.msrb.mxu3 %v3018_v11 }
 0x1a3   :  { %v222_v16 = vpack.c.bf16 %v149_v15, %v147_v13  ;;  %279 = vmatpush.bf16.msrb.mxu0 %v268_v44  ;;  %v388_v10 = vpack.c.bf16 %v318_v8, %v316_v9 }
 0x1a5   :  { %2474 = vmatmul.msk.bf16.vlgmr.msra.gmra.mxu3 %vm224_vm8, %v222_v16 }
 0x1a6   :  { %v349_v47 = vpop.f32.mrf.mxu2  ;;  %381 = vmatpush.bf16.msrb.mxu3 %v3017_v12 }
 0x1a7   :  { %v350_v49 = vadd.f32 %v2495_v48, %v349_v47 }
 0x1ae   :  { %v351_v52 = vpop.f32.mrf.mxu2 }
 0x1af   :  { %v352_v53 = vadd.f32 %v2496_v51, %v351_v52  ;;  %v3019_v51 = vld [vmem:[%s4164_s5] sm:$0xff] }
 0x1b1   :  { %v389_v54 = vpack.c.bf16 %v352_v53, %v350_v49  ;;  %v3020_v49 = vld [vmem:[%s4164_s5 + $0x8] sm:$0xff] }
 0x1b2   :  { %487 = vmatpush.bf16.msra.mxu2 %v3020_v49 }
 0x1b3   :  { %v394_v56 = vsel %vm224_vm8, %v389_v54, 0 }
 0x1b4   :  { %403 = vmatpush.bf16.xpose.msra.mxu0 %v394_v56 }
 0x1b5   :  { %2520 = vmatmul.msk.bf16.vlgmr.msrb.gmra.mxu3 %vm58_vm0, %v3286_v27 }
 0x1b6   :  { %488 = vmatpush.bf16.msra.mxu2 %v3019_v51 }
 0x228   :  { %v240_v22 = vpop.f32.mrf.mxu3 }
 0x229   :  { %v241_v23 = vadd.f32 %v240_v22, %v3361_v21 }
 0x22b   :  { %v245_v24 = vsel %vm224_vm8, %v241_v23, -inf }
 0x22c   :  { %246 = vmax.xlane.f32.xlu2 %v245_v24 }
 0x230   :  { %v242_v26 = vpop.f32.mrf.mxu3 }
 0x231   :  { %v243_v28 = vadd.f32 %v242_v26, %v3370_v25 }
 0x233   :  { %v248_v29 = vsel %vm224_vm8, %v243_v28, -inf }
 0x234   :  { %249 = vmax.xlane.f32.xlu2 %v248_v29  ;;  %v2510_v29 = vld [vmem:[%s4162_s4 + $0x50] sm:$0xff] }
 0x238   :  { %v383_v26 = vpop.f32.mrf.mxu3 }
 0x239   :  { %v384_v32 = vadd.f32 %v2510_v29, %v383_v26  ;;  %v3021_v26 = vld [vmem:[%s4164_s5 + $0x10] sm:$0xff]  ;;  %v3024_v29 = vld [vmem:[%s4164_s5 + $0x28] sm:$0xff] }
 0x240   :  { %v385_v34 = vpop.f32.mrf.mxu3 }
 0x29f   :  { %v247_v30 = vpop.xlane.xlu2 %246 }
 0x2a0   :  { %v251_v31 = vsub.f32 %v241_v23, %v247_v30  ;;  %v2511_v30 = vld [vmem:[%s4162_s4 + $0x58] sm:$0xff] }
 0x2a1   :  { %v386_v35 = vadd.f32 %v2511_v30, %v385_v34 }
 0x2a2   :  { %v253_v33 = vmul.f32 1.442695, %v251_v31 }
 0x2a3   :  { %v433_v39 = vpack.c.bf16 %v386_v35, %v384_v32 }
 0x2a4   :  { %3107 = vpow2.f32 %v253_v33 }
 0x2a5   :  { %444 = vmatpush.bf16.msra.mxu1 %v433_v39 }
 0x2a7   :  { %v250_v36 = vpop.xlane.xlu2 %249 }
 0x2a8   :  { %v252_v38 = vsub.f32 %v243_v28, %v250_v36 }
 0x2aa   :  { %v3108_v41 = vpop.eup %3107  ;;  %v255_v42 = vmul.f32 1.442695, %v252_v38 }
 0x2ab   :  { %v257_v43 = vsel %vm224_vm8, %v3108_v41, 0.0 }
 0x2ac   :  { %3109 = vpow2.f32 %v255_v42  ;;  %258 = vadd.xlane.f32.xlu0 %v257_v43 }
 0x2b2   :  { %v3110_v45 = vpop.eup %3109 }
 0x2b3   :  { %v260_v46 = vsel %vm224_vm8, %v3110_v45, 0.0 }
 0x2b4   :  { %261 = vadd.xlane.f32.xlu1 %v260_v46 }
 0x31f   :  { %v259_v57 = vpop.xlane.xlu0 %258 }
 0x320   :  { %3111 = vrcp.f32 %v259_v57 }
 0x326   :  { %v3112_v59 = vpop.eup %3111 }
 0x327   :  { %v262_v58 = vpop.xlane.xlu1 %261  ;;  %v265_v63 = vmul.f32 %v3112_v59, %v3108_v41 }
 0x328   :  { %3113 = vrcp.f32 %v262_v58 }
 0x32e   :  { %v3114_v62 = vpop.eup %3113 }
 0x32f   :  { %v266_v1 = vmul.f32 %v3114_v62, %v3110_v45 }
 0x331   :  { %v267_v4 = vpack.c.bf16 %v266_v1, %v265_v63  ;;  %v2429_v1 = vld [vmem:[%s4161_s6 + $0x40] sm:$0xff] }
 0x333   :  { %2475 = vmatmul.msk.bf16.vlgmr.msrb.gmra.mxu0 %vm224_vm8, %v267_v4 }
 0x334   :  { %609 = vmatpush.bf16.msrb.mxu0 %v3024_v29 }
 0x343   :  { %2521 = vmatmul.msk.bf16.vlgmr.msra.gmra.mxu0 %vm224_vm8, %v388_v10 }
 0x3b0   :  { %v281_v13 = vpop.f32.mrf.mxu0 }
 0x3b8   :  { %v283_v15 = vpop.f32.mrf.mxu0 }
 0x3c0   :  { %v405_v16 = vpop.f32.mrf.mxu0 }
 0x3c1   :  { %v406_v17 = vadd.f32 %v405_v16, %v3361_v21 }
 0x3c3   :  { %v410_v18 = vsel %vm224_vm8, %v406_v17, -inf }
 0x3c4   :  { %411 = vmax.xlane.f32.xlu2 %v410_v18 }
 0x3c8   :  { %v407_v19 = vpop.f32.mrf.mxu0 }
 0x3c9   :  { %v408_v20 = vadd.f32 %v407_v19, %v3370_v25 }
 0x3cb   :  { %v413_v22 = vsel %vm224_vm8, %v408_v20, -inf }
 0x3cc   :  { %414 = vmax.xlane.f32.xlu0 %v413_v22 }
 0x437   :  { %v412_v23 = vpop.xlane.xlu2 %411 }
 0x438   :  { %v416_v24 = vsub.f32 %v406_v17, %v412_v23 }
 0x43a   :  { %v418_v28 = vmul.f32 1.442695, %v416_v24 }
 0x43c   :  { %3115 = vpow2.f32 %v418_v28 }
 0x43f   :  { %v415_v31 = vpop.xlane.xlu0 %414 }
 0x440   :  { %v417_v33 = vsub.f32 %v408_v20, %v415_v31 }
 0x442   :  { %v3116_v36 = vpop.eup %3115  ;;  %v420_v37 = vmul.f32 1.442695, %v417_v33 }
 0x443   :  { %v422_v38 = vsel %vm224_vm8, %v3116_v36, 0.0 }
 0x444   :  { %3117 = vpow2.f32 %v420_v37  ;;  %423 = vadd.xlane.f32.xlu1 %v422_v38 }
 0x44a   :  { %v3118_v40 = vpop.eup %3117 }
 0x44b   :  { %v425_v41 = vsel %vm224_vm8, %v3118_v40, 0.0 }
 0x44c   :  { %426 = vadd.xlane.f32.xlu2 %v425_v41 }
 0x4b7   :  { %v424_v42 = vpop.xlane.xlu1 %423 }
 0x4b8   :  { %3119 = vrcp.f32 %v424_v42 }
 0x4be   :  { %v3120_v44 = vpop.eup %3119 }
 0x4bf   :  { %v427_v43 = vpop.xlane.xlu2 %426  ;;  %v430_v46 = vmul.f32 %v3120_v44, %v3116_v36 }
 0x4c0   :  { %3121 = vrcp.f32 %v427_v43 }
 0x4c6   :  { %v3122_v45 = vpop.eup %3121 }
 0x4c7   :  { %v431_v47 = vmul.f32 %v3122_v45, %v3118_v40 }
 0x4c9   :  { %v432_v48 = vpack.c.bf16 %v431_v47, %v430_v46  ;;  %v2425_v46 = vld [vmem:[%s4161_s6 + $0x20] sm:$0xff] }
 0x4cb   :  { %2522 = vmatmul.msk.bf16.vlgmr.msra.gmra.mxu1 %vm224_vm8, %v432_v48  ;;  %v2426_v48 = vld [vmem:[%s4161_s6 + $0x28] sm:$0xff] }
 0x548   :  { %v446_v52 = vpop.f32.mrf.mxu1 }
 0x550   :  { %v448_v53 = vpop.f32.mrf.mxu1 }
 0x551   :  { %v3081_v54 = vpack.i.bf16 %v448_v53, %v446_v52  ;;  %v2427_v53 = vld [vmem:[%s4161_s6 + $0x30] sm:$0xff] }
 0x553   :  { %3082 = vrot.lane.b32.xlu0 %v3081_v54, %s3208_s30  ;;  %v2428_v54 = vld [vmem:[%s4161_s6 + $0x38] sm:$0xff] }
 0x5c5   :  { %v3083_v56 = vpop.permute.xlu0 %3082 }
 0x5c6   :  { %v3085_v57 = vunpack.i.h.bf16 %v3083_v56  ;;  %v3084_v58 = vunpack.i.l.bf16 %v3083_v56 }
 0x5c8   :  { %v460_v59 = vsel %vm224_vm8, %v283_v15, %v3085_v57  ;;  %v459_v62 = vsel %vm224_vm8, %v281_v13, %v3084_v58 }
 0x5c9   :  { %v461_v63 = vpack.c.bf16 %v460_v59, %v459_v62  ;;  %v3023_v62 = vld [vmem:[%s4164_s5 + $0x20] sm:$0xff] }
 0x5ca   :  { %610 = vmatpush.bf16.msrb.mxu0 %v3023_v62 }
 0x5cb   :  { %2531 = vmatmul.msk.bf16.vlgmr.msra.gmra.mxu2 %vm58_vm0, %v461_v63 }
 0x64e   :  { %v490_v2 = vpop.f32.mrf.mxu2 }
 0x64f   :  { %v491_v4 = vadd.f32 %v2429_v1, %v490_v2  ;;  %v2431_v1 = vld [vmem:[%s4161_s6 + $0x50] sm:$0xff]  ;;  %v2432_v2 = vld [vmem:[%s4161_s6 + $0x58] sm:$0xff] }
 0x651   :  { %v495_v5 = vadd.f32 %v491_v4, %v3322_v60 }
 0x653   :  { %v497_v6 = vsel %vm58_vm0, %v495_v5, 0.0 }
 0x654   :  { %498 = vadd.xlane.f32.xlu1 %v497_v6 }
 0x656   :  { %v492_v8 = vpop.f32.mrf.mxu2 }
 0x657   :  { %v493_v9 = vadd.f32 %v2430_v7, %v492_v8 }
 0x659   :  { %v496_v10 = vadd.f32 %v493_v9, %v3324_v61  ;;  %v3022_v61 = vld [vmem:[%s4164_s5 + $0x18] sm:$0xff] }
 0x65a   :  { %572 = vmatpush.bf16.msra.mxu3 %v3022_v61 }
 0x65b   :  { %v500_v11 = vsel %vm58_vm0, %v496_v10, 0.0 }
 0x65c   :  { %501 = vadd.xlane.f32.xlu2 %v500_v11  ;;  %v3030_v11 = vld [vmem:[%s4160_s3 + $0x88] sm:$0xff] }
 0x65e   :  { %573 = vmatpush.bf16.msra.mxu3 %v3021_v26 }
 0x662   :  { %792 = vmatpush.bf16.msrb.mxu3 %v3030_v11 }
 0x6c7   :  { %v499_v12 = vpop.xlane.xlu1 %498 }
 0x6c8   :  { %v503_v13 = vmul.f32 %v499_v12, %v3274_v14  ;;  %v3027_v12 = vld [vmem:[%s4160_s3 + $0x70] sm:$0xff] }
 0x6ca   :  { %v505_v15 = vsub.f32 %v495_v5, %v503_v13  ;;  %v3029_v13 = vld [vmem:[%s4160_s3 + $0x80] sm:$0xff] }
 0x6cb   :  { %793 = vmatpush.bf16.msrb.mxu3 %v3029_v13 }
 0x6cc   :  { %v507_v16 = vmul.f32 %v505_v15, %v505_v15 }
 0x6ce   :  { %v509_v60 = vsel %vm58_vm0, %v507_v16, 0.0  ;;  %v3033_v16 = vld [vmem:[%s4160_s3 + $0xa0] sm:$0xff] }
 0x6cf   :  { %v502_v17 = vpop.xlane.xlu2 %501  ;;  %510 = vadd.xlane.f32.xlu1 %v509_v60  ;;  %v2433_v60 = vld [vmem:[%s4161_s6 + $0x60] sm:$0xff] }
 0x6d0   :  { %v504_v18 = vmul.f32 %v502_v17, %v3274_v14 }
 0x6d2   :  { %v506_v19 = vsub.f32 %v496_v10, %v504_v18  ;;  %v3028_v10 = vld [vmem:[%s4160_s3 + $0x78] sm:$0xff] }
 0x6d3   :  { %758 = vmatpush.bf16.msrb.mxu2 %v3028_v10 }
 0x6d4   :  { %v508_v20 = vmul.f32 %v506_v19, %v506_v19 }
 0x6d6   :  { %v512_v22 = vsel %vm58_vm0, %v508_v20, 0.0 }
 0x6d7   :  { %513 = vadd.xlane.f32.xlu2 %v512_v22  ;;  %759 = vmatpush.bf16.msrb.mxu2 %v3027_v12  ;;  %v2434_v22 = vld [vmem:[%s4161_s6 + $0x68] sm:$0xff] }
 0x742   :  { %v511_v23 = vpop.xlane.xlu1 %510 }
 0x743   :  { %v515_v24 = vmul.f32 %v511_v23, %v3274_v14 }
 0x745   :  { %v517_v28 = vadd.f32 1e-08, %v515_v24 }
 0x747   :  { %3123 = vrsqrt.f32 %v517_v28  ;;  %vm525_vm10 = vweird.f32 %v517_v28 }
 0x74a   :  { %v514_v30 = vpop.xlane.xlu2 %513 }
 0x74b   :  { %v516_v31 = vmul.f32 %v514_v30, %v3274_v14 }
 0x74d   :  { %v3124_v32 = vpop.eup %3123  ;;  %v518_v33 = vadd.f32 1e-08, %v516_v31 }
 0x74e   :  { %v520_v34 = vmul.f32 %v3124_v32, %v517_v28  ;;  %vm526_vm9 = vweird.f32 %v3124_v32 }
 0x74f   :  { %3125 = vrsqrt.f32 %v518_v33  ;;  %vm527_vm11 = vmor %vm525_vm10, %vm526_vm9  ;;  %vm535_vm13 = vweird.f32 %v518_v33 }
 0x750   :  { %v521_v35 = vmul.f32 %v3124_v32, %v520_v34 }
 0x752   :  { %v522_v36 = vmul.f32 0.5, %v521_v35 }
 0x754   :  { %v523_v37 = vsub.f32 1.5, %v522_v36 }
 0x755   :  { %v3126_v38 = vpop.eup %3125 }
 0x756   :  { %v524_v39 = vmul.f32 %v3124_v32, %v523_v37  ;;  %v530_v40 = vmul.f32 %v3126_v38, %v518_v33  ;;  %vm536_vm12 = vweird.f32 %v3126_v38  ;;  %v3025_v33 = vld [vmem:[%s4160_s3 + $0x60] sm:$0xff] }
 0x757   :  { %vm537_vm14 = vmor %vm535_vm13, %vm536_vm12 }
 0x758   :  { %v531_v41 = vmul.f32 %v3126_v38, %v530_v40  ;;  %v528_v42 = vsel %vm527_vm11, %v3124_v32, %v524_v39 }
 0x759   :  { %v539_v45 = vmul.f32 %v528_v42, %v505_v15  ;;  %v3034_v15 = vld [vmem:[%s4160_s3 + $0xa8] sm:$0xff] }
 0x75a   :  { %v532_v43 = vmul.f32 0.5, %v531_v41 }
 0x75b   :  { %v541_v51 = vmul.f32 %v2425_v46, %v539_v45  ;;  %v2592_v45 = vld [vmem:[%s4162_s4 + $0x78] sm:$0xff]  ;;  %v2607_v46 = vld [vmem:[%s4162_s4 + $0x88] sm:$0xff] }
 0x75c   :  { %v533_v44 = vsub.f32 1.5, %v532_v43  ;;  %v2591_v43 = vld [vmem:[%s4162_s4 + $0x70] sm:$0xff] }
 0x75d   :  { %v543_v57 = vadd.f32 %v2427_v53, %v541_v51 }
 0x75e   :  { %v534_v47 = vmul.f32 %v3126_v38, %v533_v44  ;;  %v2606_v44 = vld [vmem:[%s4162_s4 + $0x80] sm:$0xff] }
 0x760   :  { %v538_v49 = vsel %vm537_vm14, %v3126_v38, %v534_v47 }
 0x761   :  { %v540_v52 = vmul.f32 %v538_v49, %v506_v19 }
 0x763   :  { %v542_v56 = vmul.f32 %v2426_v48, %v540_v52 }
 0x765   :  { %v544_v58 = vadd.f32 %v2428_v54, %v542_v56 }
 0x767   :  { %v545_v59 = vpack.c.bf16 %v544_v58, %v543_v57 }
 0x769   :  { %2544 = vmatmul.msk.bf16.vlgmr.msra.gmra.mxu3 %vm58_vm0, %v545_v59 }
 0x76a   :  { %923 = vmatpush.bf16.msra.mxu3 %v3034_v15 }
 0x76e   :  { %924 = vmatpush.bf16.msra.mxu3 %v3033_v16 }
 0x7ec   :  { %v575_v63 = vpop.f32.mrf.mxu3 }
 0x7ed   :  { %v576_v4 = vadd.f32 %v2431_v1, %v575_v63  ;;  %v3031_v63 = vld [vmem:[%s4160_s3 + $0x90] sm:$0xff] }
 0x7ef   :  { %v580_v7 = vmax.f32 %v576_v4, 0.0 }
 0x7f4   :  { %v577_v5 = vpop.f32.mrf.mxu3 }
 0x7f5   :  { %v578_v6 = vadd.f32 %v2432_v2, %v577_v5 }
 0x7f7   :  { %v581_v8 = vmax.f32 %v578_v6, 0.0 }
 0x7f9   :  { %v582_v9 = vpack.c.bf16 %v581_v8, %v580_v7 }
 0x7fb   :  { %2557 = vmatmul.msk.bf16.vlgmr.msrb.gmra.mxu0 %vm58_vm0, %v582_v9 }
 0x878   :  { %v612_v17 = vpop.f32.mrf.mxu0 }
 0x879   :  { %v613_v18 = vadd.f32 %v2433_v60, %v612_v17 }
 0x87b   :  { %v617_v19 = vadd.f32 %v613_v18, %v543_v57 }
 0x87d   :  { %v619_v20 = vmul.f32 %v617_v19, %v3257_v0  ;;  %v3026_v0 = vld [vmem:[%s4160_s3 + $0x68] sm:$0xff] }
 0x87e   :  { %721 = vmatpush.bf16.msrb.mxu1 %v3026_v0 }
 0x87f   :  { %v642_v61 = vsel %vm58_vm0, %v619_v20, 0.0 }
 0x880   :  { %v614_v23 = vpop.f32.mrf.mxu0  ;;  %643 = vadd.xlane.f32.xlu1 %v642_v61  ;;  %v2558_v61 = vld [vmem:[%s4161_s6 + $0x70] sm:$0xff] }
 0x881   :  { %v615_v24 = vadd.f32 %v2434_v22, %v614_v23 }
 0x882   :  { %722 = vmatpush.bf16.msrb.mxu1 %v3025_v33 }
 0x883   :  { %v618_v26 = vadd.f32 %v615_v24, %v544_v58  ;;  %v3032_v58 = vld [vmem:[%s4160_s3 + $0x98] sm:$0xff]  ;;  %v2638_v24 = vld [vmem:[%s4162_s4 + $0xa0] sm:$0xff] }
 0x884   :  { %889 = vmatpush.bf16.msra.mxu2 %v3032_v58  ;;  %v2653_v58 = vld [vmem:[%s4162_s4 + $0xb0] sm:$0xff] }
 0x885   :  { %v620_v28 = vmul.f32 %v618_v26, %v3266_v3  ;;  %v2559_v26 = vld [vmem:[%s4161_s6 + $0x78] sm:$0xff] }
 0x887   :  { %v3503_v29 = vpack.c.bf16 %v620_v28, %v619_v20  ;;  %v645_v30 = vsel %vm58_vm0, %v620_v28, 0.0 }
 0x888   :  { %646 = vadd.xlane.f32.xlu2 %v645_v30  ;;  %890 = vmatpush.bf16.msra.mxu2 %v3031_v63 }
 0x889   :  { %2601 = vmatmul.msk.bf16.vlgmr.msrb.gmra.mxu2 %vm58_vm0, %v3503_v29  ;;  %2616 = vmatmul.msk.bf16.vlgmr.msrb.gmra.mxu3 %vm58_vm0, %v3503_v29 }
 0x899   :  { %2648 = vmatmul.msk.bf16.vlgmr.msra.gmra.mxu3 %vm58_vm0, %v3503_v29 }
 0x8f3   :  { %v644_v3 = vpop.xlane.xlu1 %643 }
 0x8f4   :  { %v648_v31 = vmul.f32 %v644_v3, %v3274_v14 }
 0x8f6   :  { %v650_v32 = vsub.f32 %v619_v20, %v648_v31  ;;  %v2639_v20 = vld [vmem:[%s4162_s4 + $0xa8] sm:$0xff]  ;;  %v2560_v31 = vld [vmem:[%s4161_s6 + $0x80] sm:$0xff] }
 0x8f8   :  { %v652_v34 = vmul.f32 %v650_v32, %v650_v32 }
 0x8fa   :  { %v654_v35 = vsel %vm58_vm0, %v652_v34, 0.0 }
 0x8fb   :  { %v647_v36 = vpop.xlane.xlu2 %646  ;;  %655 = vadd.xlane.f32.xlu0 %v654_v35 }
 0x8fc   :  { %v649_v37 = vmul.f32 %v647_v36, %v3274_v14 }
 0x8fe   :  { %v651_v38 = vsub.f32 %v620_v28, %v649_v37 }
 0x900   :  { %v653_v39 = vmul.f32 %v651_v38, %v651_v38 }
 0x902   :  { %v657_v40 = vsel %vm58_vm0, %v653_v39, 0.0 }
 0x903   :  { %658 = vadd.xlane.f32.xlu1 %v657_v40  ;;  %v3036_v40 = vld [vmem:[%s4160_s3 + $0xb8] sm:$0xff] }
 0x90c   :  { %v761_v41 = vpop.f32.mrf.mxu2  ;;  %v795_v42 = vpop.f32.mrf.mxu3 }
 0x90d   :  { %v762_v49 = vadd.f32 %v2591_v43, %v761_v41  ;;  %v796_v51 = vadd.f32 %v2606_v44, %v795_v42  ;;  %v3035_v41 = vld [vmem:[%s4160_s3 + $0xb0] sm:$0xff]  ;;  %v2576_v43 = vld [vmem:[%s4162_s4 + $0x60] sm:$0xff]  ;;  %v2577_v44 = vld [vmem:[%s4162_s4 + $0x68] sm:$0xff] }
 0x914   :  { %v763_v47 = vpop.f32.mrf.mxu2  ;;  %v797_v48 = vpop.f32.mrf.mxu3 }
 0x915   :  { %v764_v52 = vadd.f32 %v2592_v45, %v763_v47  ;;  %v798_v53 = vadd.f32 %v2607_v46, %v797_v48 }
 0x917   :  { %v801_v54 = vpack.c.bf16 %v764_v52, %v762_v49  ;;  %v845_v56 = vpack.c.bf16 %v798_v53, %v796_v51 }
 0x919   :  { %856 = vmatpush.bf16.msra.mxu1 %v845_v56  ;;  %v806_v57 = vsel %vm224_vm8, %v801_v54, 0 }
 0x91a   :  { %815 = vmatpush.bf16.xpose.msra.mxu0 %v806_v57 }
 0x91c   :  { %v926_v10 = vpop.f32.mrf.mxu3 }
 0x91d   :  { %v927_v33 = vadd.f32 %v2638_v24, %v926_v10 }
 0x922   :  { %957 = vmatpush.bf16.msrb.mxu0 %v3036_v40 }
 0x924   :  { %v928_v22 = vpop.f32.mrf.mxu3 }
 0x925   :  { %v929_v30 = vadd.f32 %v2639_v20, %v928_v22  ;;  %v2624_v22 = vld [vmem:[%s4162_s4 + $0x98] sm:$0xff] }
 0x926   :  { %958 = vmatpush.bf16.msrb.mxu0 %v3035_v41 }
 0x927   :  { %v966_v35 = vpack.c.bf16 %v929_v30, %v927_v33 }
 0x96e   :  { %v656_v59 = vpop.xlane.xlu0 %655 }
 0x96f   :  { %v660_v62 = vmul.f32 %v656_v59, %v3274_v14 }
 0x971   :  { %v662_v1 = vadd.f32 1e-08, %v660_v62 }
 0x973   :  { %3127 = vrsqrt.f32 %v662_v1  ;;  %vm670_vm1 = vweird.f32 %v662_v1 }
 0x976   :  { %v659_v2 = vpop.xlane.xlu1 %658 }
 0x977   :  { %v661_v4 = vmul.f32 %v659_v2, %v3274_v14 }
 0x979   :  { %v3128_v5 = vpop.eup %3127  ;;  %v663_v6 = vadd.f32 1e-08, %v661_v4 }
 0x97a   :  { %v665_v7 = vmul.f32 %v3128_v5, %v662_v1  ;;  %vm671_vm15 = vweird.f32 %v3128_v5 }
 0x97b   :  { %3129 = vrsqrt.f32 %v663_v6  ;;  %vm672_vm2 = vmor %vm670_vm1, %vm671_vm15  ;;  %vm680_vm4 = vweird.f32 %v663_v6 }
 0x97c   :  { %v666_v8 = vmul.f32 %v3128_v5, %v665_v7 }
 0x97e   :  { %v667_v9 = vmul.f32 0.5, %v666_v8 }
 0x980   :  { %v668_v11 = vsub.f32 1.5, %v667_v9 }
 0x981   :  { %v3130_v12 = vpop.eup %3129 }
 0x982   :  { %v669_v13 = vmul.f32 %v3128_v5, %v668_v11  ;;  %v675_v15 = vmul.f32 %v3130_v12, %v663_v6  ;;  %vm681_vm3 = vweird.f32 %v3130_v12 }
 0x983   :  { %vm682_vm5 = vmor %vm680_vm4, %vm681_vm3 }
 0x984   :  { %v676_v16 = vmul.f32 %v3130_v12, %v675_v15  ;;  %v673_v60 = vsel %vm672_vm2, %v3128_v5, %v669_v13 }
 0x985   :  { %v684_v19 = vmul.f32 %v673_v60, %v650_v32  ;;  %v2561_v32 = vld [vmem:[%s4161_s6 + $0x88] sm:$0xff] }
 0x986   :  { %v677_v17 = vmul.f32 0.5, %v676_v16 }
 0x987   :  { %v686_v0 = vmul.f32 %v2558_v61, %v684_v19 }
 0x988   :  { %v678_v18 = vsub.f32 1.5, %v677_v17 }
 0x989   :  { %v3561_v36 = vadd.f32 %v2560_v31, %v686_v0 }
 0x98a   :  { %v679_v23 = vmul.f32 %v3130_v12, %v678_v18 }
 0x98c   :  { %v683_v28 = vsel %vm682_vm5, %v3130_v12, %v679_v23  ;;  %v2623_v23 = vld [vmem:[%s4162_s4 + $0x90] sm:$0xff] }
 0x98d   :  { %v685_v3 = vmul.f32 %v683_v28, %v651_v38  ;;  %v971_v38 = vsel %vm224_vm8, %v966_v35, 0 }
 0x98f   :  { %v687_v34 = vmul.f32 %v2559_v26, %v685_v3 }
 0x991   :  { %v3563_v37 = vadd.f32 %v2561_v32, %v687_v34 }
 0x993   :  { %v690_v39 = vpack.c.bf16 %v3563_v37, %v3561_v36 }
 0x995   :  { %2586 = vmatmul.msk.bf16.vlgmr.msrb.gmra.mxu1 %vm58_vm0, %v690_v39  ;;  %2633 = vmatmul.msk.bf16.vlgmr.msra.gmra.mxu2 %vm58_vm0, %v690_v39 }
 0x996   :  { %980 = vmatpush.bf16.xpose.msrb.mxu1 %v971_v38 }
 0xa12   :  { %v724_v42 = vpop.f32.mrf.mxu1 }
 0xa13   :  { %v725_v46 = vadd.f32 %v2576_v43, %v724_v42 }
 0xa18   :  { %v892_v19 = vpop.f32.mrf.mxu2 }
 0xa19   :  { %v893_v26 = vadd.f32 %v2623_v23, %v892_v19  ;;  %v2567_v23 = vld [vmem:[%s4161_s6 + $0xb8] sm:$0xff] }
 0xa1a   :  { %v726_v45 = vpop.f32.mrf.mxu1 }
 0xa1b   :  { %v727_v47 = vadd.f32 %v2577_v44, %v726_v45 }
 0xa1d   :  { %v800_v48 = vpack.c.bf16 %v727_v47, %v725_v46  ;;  %v3043_v47 = vld [vmem:[%s4160_s3 + $0xc0] sm:$0xff] }
 0xa1f   :  { %2617 = vmatmul.msk.bf16.vlgmr.msra.gmra.mxu0 %vm224_vm8, %v800_v48 }
 0xa20   :  { %v894_v61 = vpop.f32.mrf.mxu2 }
 0xa21   :  { %v895_v24 = vadd.f32 %v2624_v22, %v894_v61 }
 0xa23   :  { %v965_v28 = vpack.c.bf16 %v895_v24, %v893_v26 }
 0xa2f   :  { %2663 = vmatmul.msk.bf16.vlgmr.msrb.gmra.mxu0 %vm58_vm0, %v3503_v29  ;;  %v2654_v29 = vld [vmem:[%s4162_s4 + $0xb8] sm:$0xff] }
 0xa9c   :  { %v817_v49 = vpop.f32.mrf.mxu0 }
 0xa9d   :  { %v818_v51 = vadd.f32 %v817_v49, %v3361_v21 }
 0xa9f   :  { %v822_v52 = vsel %vm224_vm8, %v818_v51, -inf }
 0xaa0   :  { %823 = vmax.xlane.f32.xlu2 %v822_v52 }
 0xaa4   :  { %v819_v53 = vpop.f32.mrf.mxu0 }
 0xaa5   :  { %v820_v54 = vadd.f32 %v819_v53, %v3370_v25 }
 0xaa7   :  { %v825_v56 = vsel %vm224_vm8, %v820_v54, -inf }
 0xaa8   :  { %826 = vmax.xlane.f32.xlu1 %v825_v56 }
 0xaac   :  { %v960_v57 = vpop.f32.mrf.mxu0 }
 0xaad   :  { %v961_v62 = vadd.f32 %v2653_v58, %v960_v57  ;;  %v2708_v57 = vld [vmem:[%s4161_s6 + $0xe8] sm:$0xff]  ;;  %v2707_v58 = vld [vmem:[%s4161_s6 + $0xe0] sm:$0xff] }
 0xab4   :  { %v962_v59 = vpop.f32.mrf.mxu0 }
 0xab5   :  { %v963_v63 = vadd.f32 %v2654_v29, %v962_v59  ;;  %v1276_v29 = vmul.f32 %v2708_v57, %v3312_v55  ;;  %v2710_v59 = vld [vmem:[%s4161_s6 + $0xf8] sm:$0xff] }
 0xab6   :  { %v3038_v55 = vld [vmem:[%s4164_s5 + $0x38] sm:$0xff] }
 0xab7   :  { %v1010_v1 = vpack.c.bf16 %v963_v63, %v961_v62  ;;  %v1275_v62 = vmul.f32 %v2707_v58, %v3304_v50  ;;  %v2709_v63 = vld [vmem:[%s4161_s6 + $0xf0] sm:$0xff]  ;;  %1065 = vmatpush.bf16.msrb.mxu3 %v3038_v55 }
 0xab8   :  { %v3037_v50 = vld [vmem:[%s4164_s5 + $0x30] sm:$0xff] }
 0xab9   :  { %1021 = vmatpush.bf16.msrb.mxu2 %v1010_v1  ;;  %v3636_v1 = vadd.f32 %v2710_v59, %v1276_v29 }
 0xabb   :  { %1066 = vmatpush.bf16.msrb.mxu3 %v3037_v50 }
 0xb13   :  { %v824_v2 = vpop.xlane.xlu2 %823 }
 0xb14   :  { %v828_v4 = vsub.f32 %v818_v51, %v824_v2  ;;  %v3638_v2 = vadd.f32 %v2709_v63, %v1275_v62  ;;  %v2562_v62 = vld [vmem:[%s4161_s6 + $0x90] sm:$0xff] }
 0xb16   :  { %v830_v5 = vmul.f32 1.442695, %v828_v4  ;;  %v1279_v4 = vpack.c.bf16 %v3636_v1, %v3638_v2 }
 0xb18   :  { %3131 = vpow2.f32 %v830_v5 }
 0xb1b   :  { %v827_v6 = vpop.xlane.xlu1 %826 }
 0xb1c   :  { %v829_v7 = vsub.f32 %v820_v54, %v827_v6 }
 0xb1e   :  { %v3132_v8 = vpop.eup %3131  ;;  %v832_v9 = vmul.f32 1.442695, %v829_v7 }
 0xb1f   :  { %v834_v10 = vsel %vm224_vm8, %v3132_v8, 0.0 }
 0xb20   :  { %3133 = vpow2.f32 %v832_v9  ;;  %835 = vadd.xlane.f32.xlu2 %v834_v10  ;;  %v3045_v9 = vld [vmem:[%s4160_s3 + $0xd0] sm:$0xff] }
 0xb26   :  { %v3134_v11 = vpop.eup %3133 }
 0xb27   :  { %v837_v12 = vsel %vm224_vm8, %v3134_v11, 0.0 }
 0xb28   :  { %838 = vadd.xlane.f32.xlu1 %v837_v12 }
 0xb93   :  { %v836_v13 = vpop.xlane.xlu2 %835 }
 0xb94   :  { %3135 = vrcp.f32 %v836_v13 }
 0xb9a   :  { %v3136_v16 = vpop.eup %3135 }
 0xb9b   :  { %v839_v15 = vpop.xlane.xlu1 %838  ;;  %v842_v17 = vmul.f32 %v3136_v16, %v3132_v8  ;;  %v3046_v8 = vld [vmem:[%s4160_s3 + $0xd8] sm:$0xff] }
 0xb9c   :  { %3137 = vrcp.f32 %v839_v15  ;;  %1343 = vmatpush.bf16.msra.mxu3 %v3046_v8  ;;  %v3050_v16 = vld [vmem:[%s4160_s3 + $0xf8] sm:$0xff] }
 0xba0   :  { %1344 = vmatpush.bf16.msra.mxu3 %v3045_v9 }
 0xba2   :  { %v3138_v60 = vpop.eup %3137 }
 0xba3   :  { %v843_v18 = vmul.f32 %v3138_v60, %v3134_v11 }
 0xba5   :  { %v844_v20 = vpack.c.bf16 %v843_v18, %v842_v17  ;;  %v3049_v17 = vld [vmem:[%s4160_s3 + $0xf0] sm:$0xff] }
 0xba6   :  { %v2566_v18 = vld [vmem:[%s4161_s6 + $0xb0] sm:$0xff] }
 0xba7   :  { %2618 = vmatmul.msk.bf16.vlgmr.msra.gmra.mxu1 %vm224_vm8, %v844_v20 }
 0xbb7   :  { %2664 = vmatmul.msk.bf16.vlgmr.msrb.gmra.mxu1 %vm224_vm8, %v965_v28 }
 0xc24   :  { %v3605_v30 = vpop.f32.mrf.mxu1 }
 0xc2c   :  { %v3607_v0 = vpop.f32.mrf.mxu1 }
 0xc34   :  { %v982_v3 = vpop.f32.mrf.mxu1 }
 0xc35   :  { %v983_v31 = vadd.f32 %v982_v3, %v3361_v21 }
 0xc37   :  { %v987_v32 = vsel %vm224_vm8, %v983_v31, -inf }
 0xc38   :  { %988 = vmax.xlane.f32.xlu2 %v987_v32 }
 0xc3c   :  { %v984_v33 = vpop.f32.mrf.mxu1 }
 0xc3d   :  { %v985_v34 = vadd.f32 %v984_v33, %v3370_v25  ;;  %v3044_v25 = vld [vmem:[%s4160_s3 + $0xc8] sm:$0xff] }
 0xc3e   :  { %1309 = vmatpush.bf16.msra.mxu2 %v3044_v25 }
 0xc3f   :  { %v990_v35 = vsel %vm224_vm8, %v985_v34, -inf }
 0xc40   :  { %991 = vmax.xlane.f32.xlu1 %v990_v35 }
 0xc42   :  { %1310 = vmatpush.bf16.msra.mxu2 %v3043_v47 }
 0xcab   :  { %v989_v39 = vpop.xlane.xlu2 %988 }
 0xcac   :  { %v993_v38 = vsub.f32 %v983_v31, %v989_v39 }
 0xcae   :  { %v995_v40 = vmul.f32 1.442695, %v993_v38 }
 0xcb0   :  { %3139 = vpow2.f32 %v995_v40 }
 0xcb3   :  { %v992_v41 = vpop.xlane.xlu1 %991 }
 0xcb4   :  { %v994_v42 = vsub.f32 %v985_v34, %v992_v41 }
 0xcb6   :  { %v3140_v43 = vpop.eup %3139  ;;  %v997_v44 = vmul.f32 1.442695, %v994_v42 }
 0xcb7   :  { %v999_v45 = vsel %vm224_vm8, %v3140_v43, 0.0 }
 0xcb8   :  { %3141 = vpow2.f32 %v997_v44  ;;  %1000 = vadd.xlane.f32.xlu2 %v999_v45  ;;  %v3042_v44 = vld [vmem:[%s4164_s5 + $0x58] sm:$0xff] }
 0xcb9   :  { %1187 = vmatpush.bf16.msra.mxu1 %v3042_v44 }
 0xcbe   :  { %v3142_v21 = vpop.eup %3141 }
 0xcbf   :  { %v1002_v46 = vsel %vm224_vm8, %v3142_v21, 0.0 }
 0xcc0   :  { %1003 = vadd.xlane.f32.xlu1 %v1002_v46 }
 0xd2b   :  { %v1001_v48 = vpop.xlane.xlu2 %1000 }
 0xd2c   :  { %3143 = vrcp.f32 %v1001_v48 }
 0xd32   :  { %v3144_v51 = vpop.eup %3143 }
 0xd33   :  { %v1004_v49 = vpop.xlane.xlu1 %1003  ;;  %v1007_v53 = vmul.f32 %v3144_v51, %v3140_v43  ;;  %v3039_v43 = vld [vmem:[%s4164_s5 + $0x40] sm:$0xff] }
 0xd34   :  { %3145 = vrcp.f32 %v1004_v49 }
 0xd3a   :  { %v3146_v52 = vpop.eup %3145 }
 0xd3b   :  { %v1008_v54 = vmul.f32 %v3146_v52, %v3142_v21 }
 0xd3d   :  { %v1009_v56 = vpack.c.bf16 %v1008_v54, %v1007_v53 }
 0xd3f   :  { %2665 = vmatmul.msk.bf16.vlgmr.msrb.gmra.mxu2 %vm224_vm8, %v1009_v56 }
 0xd4f   :  { %2735 = vmatmul.msk.bf16.vlgmr.msra.gmra.mxu2 %vm58_vm0, %v1279_v4 }
 0xdc2   :  { %v1023_v5 = vpop.f32.mrf.mxu2 }
 0xdca   :  { %v1025_v6 = vpop.f32.mrf.mxu2 }
 0xdcb   :  { %v3086_v7 = vpack.i.bf16 %v1025_v6, %v1023_v5  ;;  %v2564_v6 = vld [vmem:[%s4161_s6 + $0xa0] sm:$0xff] }
 0xdcd   :  { %3087 = vrot.lane.b32.xlu2 %v3086_v7, %s3208_s30  ;;  %v2565_v7 = vld [vmem:[%s4161_s6 + $0xa8] sm:$0xff] }
 0xe27   :  { %v3088_v10 = vpop.permute.xlu2 %3087 }
 0xe28   :  { %v3090_v11 = vunpack.i.h.bf16 %v3088_v10  ;;  %v3089_v12 = vunpack.i.l.bf16 %v3088_v10 }
 0xe2a   :  { %v1037_v13 = vsel %vm224_vm8, %v3607_v0, %v3090_v11  ;;  %v1036_v15 = vsel %vm224_vm8, %v3605_v30, %v3089_v12 }
 0xe2b   :  { %v1038_v60 = vpack.c.bf16 %v1037_v13, %v1036_v15  ;;  %v2740_v13 = vld [vmem:[%s4162_s4 + $0xd0] sm:$0xff]  ;;  %v2741_v15 = vld [vmem:[%s4162_s4 + $0xd8] sm:$0xff] }
 0xe2d   :  { %2678 = vmatmul.msk.bf16.vlgmr.msrb.gmra.mxu3 %vm58_vm0, %v1038_v60 }
 0xe2e   :  { %1474 = vmatpush.bf16.msrb.mxu3 %v3050_v16 }
 0xe32   :  { %1475 = vmatpush.bf16.msrb.mxu3 %v3049_v17 }
 0xe3d   :  { %2750 = vmatmul.msk.bf16.vlgmr.msra.gmra.mxu3 %vm58_vm0, %v3286_v27 }
 0xe4d   :  { %2782 = vmatmul.msk.bf16.vlgmr.msrb.gmra.mxu3 %vm58_vm0, %v1279_v4  ;;  %v2563_v4 = vld [vmem:[%s4161_s6 + $0x98] sm:$0xff] }
 0xeb0   :  { %v1068_v19 = vpop.f32.mrf.mxu3 }
 0xeb1   :  { %v1069_v20 = vadd.f32 %v2566_v18, %v1068_v19  ;;  %v3041_v19 = vld [vmem:[%s4164_s5 + $0x50] sm:$0xff] }
 0xeb2   :  { %1188 = vmatpush.bf16.msra.mxu1 %v3041_v19 }
 0xeb3   :  { %v1073_v22 = vadd.f32 %v1069_v20, %v3561_v36 }
 0xeb5   :  { %v1075_v61 = vsel %vm58_vm0, %v1073_v22, 0.0 }
 0xeb6   :  { %1076 = vadd.xlane.f32.xlu0 %v1075_v61  ;;  %v2568_v61 = vld [vmem:[%s4161_s6 + $0xc0] sm:$0xff] }
 0xeb8   :  { %v1070_v24 = vpop.f32.mrf.mxu3 }
 0xeb9   :  { %v1071_v26 = vadd.f32 %v2567_v23, %v1070_v24  ;;  %v2569_v23 = vld [vmem:[%s4161_s6 + $0xc8] sm:$0xff] }
 0xebb   :  { %v1074_v28 = vadd.f32 %v1071_v26, %v3563_v37  ;;  %v3040_v37 = vld [vmem:[%s4164_s5 + $0x48] sm:$0xff] }
 0xebc   :  { %1150 = vmatpush.bf16.msra.mxu0 %v3040_v37  ;;  %v3047_v37 = vld [vmem:[%s4160_s3 + $0xe0] sm:$0xff] }
 0xebd   :  { %v1078_v30 = vsel %vm58_vm0, %v1074_v28, 0.0 }
 0xebe   :  { %1079 = vadd.xlane.f32.xlu1 %v1078_v30 }
 0xec0   :  { %1151 = vmatpush.bf16.msra.mxu0 %v3039_v43  ;;  %v1346_v12 = vpop.f32.mrf.mxu3 }
 0xec1   :  { %v1347_v60 = vadd.f32 %v2740_v13, %v1346_v12  ;;  %v2788_v12 = vld [vmem:[%s4162_s4 + $0x108] sm:$0xff] }
 0xec8   :  { %v1348_v16 = vpop.f32.mrf.mxu3 }
 0xec9   :  { %v1349_v17 = vadd.f32 %v2741_v15, %v1348_v16 }
 0xecb   :  { %v1386_v18 = vpack.c.bf16 %v1349_v17, %v1347_v60 }
 0xecd   :  { %v1391_v20 = vsel %vm224_vm8, %v1386_v18, 0 }
 0xece   :  { %1400 = vmatpush.bf16.xpose.msrb.mxu1 %v1391_v20 }
 0xf29   :  { %v1077_v0 = vpop.xlane.xlu0 %1076 }
 0xf2a   :  { %v1081_v3 = vmul.f32 %v1077_v0, %v3274_v14 }
 0xf2c   :  { %v1083_v31 = vsub.f32 %v1073_v22, %v1081_v3  ;;  %v1312_v3 = vpop.f32.mrf.mxu2 }
 0xf2e   :  { %v1085_v32 = vmul.f32 %v1083_v31, %v1083_v31 }
 0xf30   :  { %v1087_v36 = vsel %vm58_vm0, %v1085_v32, 0.0  ;;  %v2726_v32 = vld [vmem:[%s4162_s4 + $0xc8] sm:$0xff] }
 0xf31   :  { %v1080_v33 = vpop.xlane.xlu1 %1079  ;;  %1088 = vadd.xlane.f32.xlu0 %v1087_v36 }
 0xf32   :  { %v1082_v34 = vmul.f32 %v1080_v33, %v3274_v14  ;;  %v2725_v33 = vld [vmem:[%s4162_s4 + $0xc0] sm:$0xff] }
 0xf34   :  { %v1084_v35 = vsub.f32 %v1074_v28, %v1082_v34  ;;  %v1314_v36 = vpop.f32.mrf.mxu2 }
 0xf35   :  { %v1315_v34 = vadd.f32 %v2726_v32, %v1314_v36  ;;  %v3054_v36 = vld [vmem:[%s4160_s3 + $0x118] sm:$0xff] }
 0xf36   :  { %v1086_v39 = vmul.f32 %v1084_v35, %v1084_v35 }
 0xf38   :  { %v1090_v38 = vsel %vm58_vm0, %v1086_v39, 0.0 }
 0xf39   :  { %1091 = vadd.xlane.f32.xlu1 %v1090_v38  ;;  %v3048_v38 = vld [vmem:[%s4160_s3 + $0xe8] sm:$0xff] }
 0xf3a   :  { %1377 = vmatpush.bf16.msrb.mxu0 %v3048_v38 }
 0xf3e   :  { %1378 = vmatpush.bf16.msrb.mxu0 %v3047_v37 }
 0xfa4   :  { %v1089_v40 = vpop.xlane.xlu0 %1088 }
 0xfa5   :  { %v1093_v41 = vmul.f32 %v1089_v40, %v3274_v14  ;;  %v3052_v40 = vld [vmem:[%s4160_s3 + $0x108] sm:$0xff] }
 0xfa7   :  { %v1095_v42 = vadd.f32 1e-08, %v1093_v41 }
 0xfa9   :  { %3147 = vrsqrt.f32 %v1095_v42  ;;  %vm1103_vm7 = vweird.f32 %v1095_v42 }
 0xfac   :  { %v1092_v45 = vpop.xlane.xlu1 %1091 }
 0xfad   :  { %v1094_v21 = vmul.f32 %v1092_v45, %v3274_v14  ;;  %v3759_v45 = vld [vmem:[%s4163_s1] sm:$0xff] }
 0xfaf   :  { %v3148_v46 = vpop.eup %3147  ;;  %v1096_v25 = vadd.f32 1e-08, %v1094_v21 }
 0xfb0   :  { %v1098_v47 = vmul.f32 %v3148_v46, %v1095_v42  ;;  %vm1104_vm6 = vweird.f32 %v3148_v46  ;;  %v3051_v42 = vld [vmem:[%s4160_s3 + $0x100] sm:$0xff] }
 0xfb1   :  { %3149 = vrsqrt.f32 %v1096_v25  ;;  %vm1105_vm9 = vmor %vm1103_vm7, %vm1104_vm6  ;;  %vm1113_vm11 = vweird.f32 %v1096_v25 }
 0xfb2   :  { %v1099_v48 = vmul.f32 %v3148_v46, %v1098_v47  ;;  %v3768_v47 = vld [vmem:[%s4163_s1 + $0x8] sm:$0xff] }
 0xfb4   :  { %v1100_v49 = vmul.f32 0.5, %v1099_v48 }
 0xfb6   :  { %v1101_v51 = vsub.f32 1.5, %v1100_v49 }
 0xfb7   :  { %v3150_v52 = vpop.eup %3149 }
 0xfb8   :  { %v1102_v53 = vmul.f32 %v3148_v46, %v1101_v51  ;;  %v1108_v54 = vmul.f32 %v3150_v52, %v1096_v25  ;;  %vm1114_vm10 = vweird.f32 %v3150_v52 }
 0xfb9   :  { %vm1115_vm12 = vmor %vm1113_vm11, %vm1114_vm10 }
 0xfba   :  { %v1109_v56 = vmul.f32 %v3150_v52, %v1108_v54  ;;  %v1106_v57 = vsel %vm1105_vm9, %v3148_v46, %v1102_v53 }
 0xfbb   :  { %v1117_v59 = vmul.f32 %v1106_v57, %v1083_v31 }
 0xfbc   :  { %v1110_v58 = vmul.f32 0.5, %v1109_v56  ;;  %v2756_v56 = vld [vmem:[%s4162_s4 + $0xe8] sm:$0xff] }
 0xfbd   :  { %v1119_v50 = vmul.f32 %v2562_v62, %v1117_v59 }
 0xfbe   :  { %v1111_v29 = vsub.f32 1.5, %v1110_v58 }
 0xfbf   :  { %v3707_v9 = vadd.f32 %v2564_v6, %v1119_v50 }
 0xfc0   :  { %v1112_v63 = vmul.f32 %v3150_v52, %v1111_v29 }
 0xfc2   :  { %v1116_v55 = vsel %vm1115_vm12, %v3150_v52, %v1112_v63  ;;  %v2755_v52 = vld [vmem:[%s4162_s4 + $0xe0] sm:$0xff] }
 0xfc3   :  { %v1118_v5 = vmul.f32 %v1116_v55, %v1084_v35  ;;  %v1313_v35 = vadd.f32 %v2725_v33, %v1312_v3  ;;  %v3053_v33 = vld [vmem:[%s4160_s3 + $0x110] sm:$0xff] }
 0xfc5   :  { %v1120_v8 = vmul.f32 %v2563_v4, %v1118_v5  ;;  %v1385_v39 = vpack.c.bf16 %v1315_v34, %v1313_v35 }
 0xfc7   :  { %v3709_v10 = vadd.f32 %v2565_v7, %v1120_v8 }
 0xfc9   :  { %v1123_v11 = vpack.c.bf16 %v3709_v10, %v3707_v9 }
 0xfcb   :  { %2691 = vmatmul.msk.bf16.vlgmr.msra.gmra.mxu0 %vm58_vm0, %v1123_v11  ;;  %v2787_v11 = vld [vmem:[%s4162_s4 + $0x100] sm:$0xff] }
 0xfcc   :  { %1508 = vmatpush.bf16.msra.mxu0 %v3052_v40 }
 0xfd0   :  { %1509 = vmatpush.bf16.msra.mxu0 %v3051_v42 }
 0xfdb   :  { %2765 = vmatmul.msk.bf16.vlgmr.msrb.gmra.mxu0 %vm58_vm0, %v3286_v27 }
 0xfeb   :  { %2797 = vmatmul.msk.bf16.vlgmr.msra.gmra.mxu0 %vm58_vm0, %v3286_v27 }
0x1048   :  { %v1153_v22 = vpop.f32.mrf.mxu0 }
0x1049   :  { %v1154_v24 = vadd.f32 %v2568_v61, %v1153_v22 }
0x104b   :  { %v1158_v30 = vmax.f32 %v1154_v24, 0.0  ;;  %v1477_v24 = vpop.f32.mrf.mxu3 }
0x1050   :  { %v1155_v26 = vpop.f32.mrf.mxu0 }
0x1051   :  { %v1156_v28 = vadd.f32 %v2569_v23, %v1155_v26 }
0x1053   :  { %v1159_v0 = vmax.f32 %v1156_v28, 0.0  ;;  %v2773_v28 = vld [vmem:[%s4162_s4 + $0xf8] sm:$0xff] }
0x1055   :  { %v1160_v31 = vpack.c.bf16 %v1159_v0, %v1158_v30  ;;  %v1479_v30 = vpop.f32.mrf.mxu3  ;;  %v2772_v0 = vld [vmem:[%s4162_s4 + $0xf0] sm:$0xff] }
0x1056   :  { %v1480_v3 = vadd.f32 %v2773_v28, %v1479_v30  ;;  %v2716_v30 = vld [vmem:[%s4161_s6 + $0x128] sm:$0xff] }
0x1057   :  { %2704 = vmatmul.msk.bf16.vlgmr.msra.gmra.mxu1 %vm58_vm0, %v1160_v31  ;;  %v1478_v31 = vadd.f32 %v2772_v0, %v1477_v24 }
0x1058   :  { %v1380_v51 = vpop.f32.mrf.mxu0  ;;  %1542 = vmatpush.bf16.msra.mxu1 %v3054_v36 }
0x1059   :  { %v1381_v57 = vadd.f32 %v2755_v52, %v1380_v51  ;;  %v1550_v32 = vpack.c.bf16 %v1480_v3, %v1478_v31 }
0x105c   :  { %1543 = vmatpush.bf16.msra.mxu1 %v3053_v33 }
0x1060   :  { %v1382_v29 = vpop.f32.mrf.mxu0 }
0x1061   :  { %v1383_v59 = vadd.f32 %v2756_v56, %v1382_v29 }
0x1063   :  { %v1430_v62 = vpack.c.bf16 %v1383_v59, %v1381_v57 }
0x1065   :  { %1441 = vmatpush.bf16.msrb.mxu2 %v1430_v62 }
0x1067   :  { %2766 = vmatmul.msk.bf16.vlgmr.msrb.gmra.mxu1 %vm224_vm8, %v1385_v39 }
0x1068   :  { %v1511_v8 = vpop.f32.mrf.mxu0 }
0x1069   :  { %v1512_v15 = vadd.f32 %v2787_v11, %v1511_v8  ;;  %v3056_v11 = vld [vmem:[%s4164_s5 + $0x68] sm:$0xff] }
0x106a   :  { %1650 = vmatpush.bf16.msrb.mxu0 %v3056_v11 }
0x1070   :  { %v1513_v13 = vpop.f32.mrf.mxu0 }
0x1071   :  { %v1514_v16 = vadd.f32 %v2788_v12, %v1513_v13  ;;  %v3055_v12 = vld [vmem:[%s4164_s5 + $0x60] sm:$0xff] }
0x1072   :  { %1651 = vmatpush.bf16.msrb.mxu0 %v3055_v12 }
0x1073   :  { %v1551_v60 = vpack.c.bf16 %v1514_v16, %v1512_v15 }
0x1075   :  { %v1556_v17 = vsel %vm224_vm8, %v1551_v60, 0 }
0x1076   :  { %1565 = vmatpush.bf16.xpose.msra.mxu2 %v1556_v17 }
0x1077   :  { %2812 = vmatmul.msk.bf16.vlgmr.msra.gmra.mxu1 %vm58_vm0, %v3286_v27 }
0x10d4   :  { %v3747_v41 = vpop.f32.mrf.mxu1 }
0x10dc   :  { %v3754_v43 = vpop.f32.mrf.mxu1 }
0x10e4   :  { %v1402_v44 = vpop.f32.mrf.mxu1 }
0x10e5   :  { %v1403_v21 = vadd.f32 %v3759_v45, %v1402_v44 }
0x10e7   :  { %v1407_v46 = vsel %vm224_vm8, %v1403_v21, -inf }
0x10e8   :  { %1408 = vmax.xlane.f32.xlu0 %v1407_v46  ;;  %v2802_v46 = vld [vmem:[%s4162_s4 + $0x110] sm:$0xff] }
0x10ec   :  { %v1404_v25 = vpop.f32.mrf.mxu1 }
0x10ed   :  { %v1405_v48 = vadd.f32 %v3768_v47, %v1404_v25 }
0x10ef   :  { %v1410_v49 = vsel %vm224_vm8, %v1405_v48, -inf }
0x10f0   :  { %1411 = vmax.xlane.f32.xlu1 %v1410_v49 }
0x115b   :  { %v1409_v53 = vpop.xlane.xlu0 %1408 }
0x115c   :  { %v1413_v54 = vsub.f32 %v1403_v21, %v1409_v53  ;;  %v1545_v21 = vpop.f32.mrf.mxu1 }
0x115d   :  { %v1546_v49 = vadd.f32 %v2802_v46, %v1545_v21 }
0x115e   :  { %v1415_v58 = vmul.f32 1.442695, %v1413_v54 }
0x1160   :  { %3151 = vpow2.f32 %v1415_v58 }
0x1163   :  { %v1412_v63 = vpop.xlane.xlu1 %1411 }
0x1164   :  { %v1414_v4 = vsub.f32 %v1405_v48, %v1412_v63  ;;  %v2803_v48 = vld [vmem:[%s4162_s4 + $0x118] sm:$0xff]  ;;  %v1547_v52 = vpop.f32.mrf.mxu1 }
0x1165   :  { %v1548_v53 = vadd.f32 %v2803_v48, %v1547_v52 }
0x1166   :  { %v3152_v55 = vpop.eup %3151  ;;  %v1417_v50 = vmul.f32 1.442695, %v1414_v4 }
0x1167   :  { %v1419_v5 = vsel %vm224_vm8, %v3152_v55, 0.0  ;;  %v1595_v54 = vpack.c.bf16 %v1548_v53, %v1546_v49 }
0x1168   :  { %3153 = vpow2.f32 %v1417_v50  ;;  %1420 = vadd.xlane.f32.xlu2 %v1419_v5 }
0x1169   :  { %1606 = vmatpush.bf16.msra.mxu3 %v1595_v54 }
0x116e   :  { %v3154_v6 = vpop.eup %3153 }
0x116f   :  { %v1422_v7 = vsel %vm224_vm8, %v3154_v6, 0.0 }
0x1170   :  { %1423 = vadd.xlane.f32.xlu0 %v1422_v7 }
0x11db   :  { %v1421_v18 = vpop.xlane.xlu2 %1420 }
0x11dc   :  { %3155 = vrcp.f32 %v1421_v18 }
0x11e2   :  { %v3156_v20 = vpop.eup %3155 }
0x11e3   :  { %v1424_v19 = vpop.xlane.xlu0 %1423  ;;  %v1427_v61 = vmul.f32 %v3156_v20, %v3152_v55 }
0x11e4   :  { %3157 = vrcp.f32 %v1424_v19 }
0x11ea   :  { %v3158_v22 = vpop.eup %3157 }
0x11eb   :  { %v1428_v23 = vmul.f32 %v3158_v22, %v3154_v6 }
0x11ed   :  { %v1429_v26 = vpack.c.bf16 %v1428_v23, %v1427_v61  ;;  %v2715_v61 = vld [vmem:[%s4161_s6 + $0x120] sm:$0xff] }
0x11ef   :  { %2767 = vmatmul.msk.bf16.vlgmr.msrb.gmra.mxu2 %vm224_vm8, %v1429_v26 }
0x11ff   :  { %2813 = vmatmul.msk.bf16.vlgmr.msra.gmra.mxu2 %vm224_vm8, %v1550_v32 }
0x1272   :  { %v1443_v34 = vpop.f32.mrf.mxu2 }
0x127a   :  { %v1445_v35 = vpop.f32.mrf.mxu2 }
0x1282   :  { %v1567_v39 = vpop.f32.mrf.mxu2 }
0x1283   :  { %v1568_v38 = vadd.f32 %v3759_v45, %v1567_v39 }
0x1285   :  { %v1572_v37 = vsel %vm224_vm8, %v1568_v38, -inf }
0x1286   :  { %1573 = vmax.xlane.f32.xlu1 %v1572_v37 }
0x128a   :  { %v1569_v40 = vpop.f32.mrf.mxu2 }
0x128b   :  { %v1570_v42 = vadd.f32 %v3768_v47, %v1569_v40 }
0x128d   :  { %v1575_v44 = vsel %vm224_vm8, %v1570_v42, -inf }
0x128e   :  { %1576 = vmax.xlane.f32.xlu0 %v1575_v44 }
0x12f9   :  { %v1574_v25 = vpop.xlane.xlu1 %1573 }
0x12fa   :  { %v1578_v27 = vsub.f32 %v1568_v38, %v1574_v25  ;;  %v3057_v25 = vld [vmem:[%s4164_s5 + $0x70] sm:$0xff] }
0x12fc   :  { %v1580_v51 = vmul.f32 1.442695, %v1578_v27  ;;  %v3060_v27 = vld [vmem:[%s4164_s5 + $0x88] sm:$0xff] }
0x12fd   :  { %1772 = vmatpush.bf16.msrb.mxu2 %v3060_v27 }
0x12fe   :  { %3159 = vpow2.f32 %v1580_v51 }
0x1301   :  { %v1577_v56 = vpop.xlane.xlu0 %1576 }
0x1302   :  { %v1579_v57 = vsub.f32 %v1570_v42, %v1577_v56 }
0x1304   :  { %v3160_v58 = vpop.eup %3159  ;;  %v1582_v29 = vmul.f32 1.442695, %v1579_v57 }
0x1305   :  { %v1584_v59 = vsel %vm224_vm8, %v3160_v58, 0.0 }
0x1306   :  { %3161 = vpow2.f32 %v1582_v29  ;;  %1585 = vadd.xlane.f32.xlu1 %v1584_v59 }
0x130c   :  { %v3162_v62 = vpop.eup %3161 }
0x130d   :  { %v1587_v63 = vsel %vm224_vm8, %v3162_v62, 0.0 }
0x130e   :  { %1588 = vadd.xlane.f32.xlu0 %v1587_v63 }
0x1379   :  { %v1586_v4 = vpop.xlane.xlu1 %1585 }
0x137a   :  { %3163 = vrcp.f32 %v1586_v4 }
0x1380   :  { %v3164_v50 = vpop.eup %3163 }
0x1381   :  { %v1589_v55 = vpop.xlane.xlu0 %1588  ;;  %v1592_v6 = vmul.f32 %v3164_v50, %v3160_v58 }
0x1382   :  { %3165 = vrcp.f32 %v1589_v55 }
0x1388   :  { %v3166_v5 = vpop.eup %3165 }
0x1389   :  { %v1593_v7 = vmul.f32 %v3166_v5, %v3162_v62  ;;  %v2711_v5 = vld [vmem:[%s4161_s6 + $0x100] sm:$0xff] }
0x138b   :  { %v1594_v8 = vpack.c.bf16 %v1593_v7, %v1592_v6  ;;  %v2712_v7 = vld [vmem:[%s4161_s6 + $0x108] sm:$0xff] }
0x138d   :  { %2814 = vmatmul.msk.bf16.vlgmr.msra.gmra.mxu3 %vm224_vm8, %v1594_v8 }
0x1410   :  { %v1608_v13 = vpop.f32.mrf.mxu3 }
0x1418   :  { %v1610_v15 = vpop.f32.mrf.mxu3 }
0x1419   :  { %v3091_v16 = vpack.i.bf16 %v1610_v15, %v1608_v13  ;;  %v2713_v13 = vld [vmem:[%s4161_s6 + $0x110] sm:$0xff]  ;;  %v2714_v15 = vld [vmem:[%s4161_s6 + $0x118] sm:$0xff] }
0x141b   :  { %3092 = vrot.lane.b32.xlu1 %v3091_v16, %s3208_s30 }
0x148d   :  { %v3093_v60 = vpop.permute.xlu1 %3092 }
0x148e   :  { %v3095_v17 = vunpack.i.h.bf16 %v3093_v60  ;;  %v3094_v18 = vunpack.i.l.bf16 %v3093_v60 }
0x1490   :  { %v1622_v19 = vsel %vm224_vm8, %v1445_v35, %v3095_v17  ;;  %v1621_v20 = vsel %vm224_vm8, %v1443_v34, %v3094_v18 }
0x1491   :  { %v1623_v22 = vpack.c.bf16 %v1622_v19, %v1621_v20  ;;  %v3059_v19 = vld [vmem:[%s4164_s5 + $0x80] sm:$0xff] }
0x1492   :  { %1773 = vmatpush.bf16.msrb.mxu2 %v3059_v19 }
0x1493   :  { %2827 = vmatmul.msk.bf16.vlgmr.msrb.gmra.mxu0 %vm58_vm0, %v1623_v22  ;;  %v2717_v22 = vld [vmem:[%s4161_s6 + $0x130] sm:$0xff] }
0x1510   :  { %v1653_v23 = vpop.f32.mrf.mxu0 }
0x1511   :  { %v1654_v24 = vadd.f32 %v2715_v61, %v1653_v23  ;;  %v2718_v61 = vld [vmem:[%s4161_s6 + $0x138] sm:$0xff] }
0x1513   :  { %v1658_v26 = vadd.f32 %v1654_v24, %v3638_v2 }
0x1515   :  { %v1660_v28 = vsel %vm58_vm0, %v1658_v26, 0.0 }
0x1516   :  { %1661 = vadd.xlane.f32.xlu0 %v1660_v28 }
0x1518   :  { %v1655_v0 = vpop.f32.mrf.mxu0 }
0x1519   :  { %v1656_v3 = vadd.f32 %v2716_v30, %v1655_v0 }
0x151b   :  { %v1659_v31 = vadd.f32 %v1656_v3, %v3636_v1  ;;  %v3058_v1 = vld [vmem:[%s4164_s5 + $0x78] sm:$0xff] }
0x151c   :  { %1735 = vmatpush.bf16.msrb.mxu1 %v3058_v1  ;;  %v3064_v3 = vld [vmem:[%s4160_s3 + $0x138] sm:$0xff] }
0x151d   :  { %v1663_v32 = vsel %vm58_vm0, %v1659_v31, 0.0  ;;  %1921 = vmatpush.bf16.msra.mxu0 %v3064_v3 }
0x151e   :  { %1664 = vadd.xlane.f32.xlu0 %v1663_v32  ;;  %v3063_v32 = vld [vmem:[%s4160_s3 + $0x130] sm:$0xff] }
0x1520   :  { %1736 = vmatpush.bf16.msrb.mxu1 %v3057_v25  ;;  %v3908_v25 = vld [vmem:[%s4158_s0 + $0x8] sm:$0xff] }
0x1521   :  { %1922 = vmatpush.bf16.msra.mxu0 %v3063_v32 }
0x1589   :  { %v1662_v36 = vpop.xlane.xlu0 %1661 }
0x158a   :  { %v1666_v33 = vmul.f32 %v1662_v36, %v3274_v14  ;;  %v3065_v36 = vld [vmem:[%s4160_s3 + $0x140] sm:$0xff] }
0x158c   :  { %v1668_v34 = vsub.f32 %v1658_v26, %v1666_v33  ;;  %v3070_v33 = vld [vmem:[%s4160_s3 + $0x168] sm:$0xff] }
0x158e   :  { %v1670_v35 = vmul.f32 %v1668_v34, %v1668_v34 }
0x1590   :  { %v1672_v2 = vsel %vm58_vm0, %v1670_v35, 0.0  ;;  %v2719_v35 = vld [vmem:[%s4161_s6 + $0x140] sm:$0xff] }
0x1591   :  { %1673 = vadd.xlane.f32.xlu2 %v1672_v2  ;;  %v1665_v39 = vpop.xlane.xlu0 %1664 }
0x1592   :  { %v1667_v38 = vmul.f32 %v1665_v39, %v3274_v14 }
0x1594   :  { %v1669_v37 = vsub.f32 %v1659_v31, %v1667_v38  ;;  %v3066_v31 = vld [vmem:[%s4160_s3 + $0x148] sm:$0xff] }
0x1595   :  { %1955 = vmatpush.bf16.msra.mxu1 %v3066_v31 }
0x1596   :  { %v1671_v40 = vmul.f32 %v1669_v37, %v1669_v37 }
0x1598   :  { %v1675_v42 = vsel %vm58_vm0, %v1671_v40, 0.0 }
0x1599   :  { %1676 = vadd.xlane.f32.xlu0 %v1675_v42  ;;  %1956 = vmatpush.bf16.msra.mxu1 %v3065_v36  ;;  %v2720_v42 = vld [vmem:[%s4161_s6 + $0x148] sm:$0xff] }
0x1604   :  { %v1674_v44 = vpop.xlane.xlu2 %1673 }
0x1605   :  { %v1678_v21 = vmul.f32 %v1674_v44, %v3274_v14 }
0x1607   :  { %v1680_v46 = vadd.f32 1e-08, %v1678_v21 }
0x1609   :  { %3167 = vrsqrt.f32 %v1680_v46  ;;  %vm1688_vm14 = vweird.f32 %v1680_v46 }
0x160c   :  { %v1677_v48 = vpop.xlane.xlu0 %1676 }
0x160d   :  { %v1679_v49 = vmul.f32 %v1677_v48, %v3274_v14 }
0x160f   :  { %v3168_v51 = vpop.eup %3167  ;;  %v1681_v52 = vadd.f32 1e-08, %v1679_v49 }
0x1610   :  { %v1683_v53 = vmul.f32 %v3168_v51, %v1680_v46  ;;  %vm1689_vm13 = vweird.f32 %v3168_v51 }
0x1611   :  { %3169 = vrsqrt.f32 %v1681_v52  ;;  %vm1690_vm15 = vmor %vm1688_vm14, %vm1689_vm13  ;;  %vm1698_vm2 = vweird.f32 %v1681_v52 }
0x1612   :  { %v1684_v54 = vmul.f32 %v3168_v51, %v1683_v53 }
0x1614   :  { %v1685_v56 = vmul.f32 0.5, %v1684_v54 }
0x1616   :  { %v1686_v57 = vsub.f32 1.5, %v1685_v56 }
0x1617   :  { %v3170_v58 = vpop.eup %3169 }
0x1618   :  { %v1687_v29 = vmul.f32 %v3168_v51, %v1686_v57  ;;  %v1693_v59 = vmul.f32 %v3170_v58, %v1681_v52  ;;  %vm1699_vm1 = vweird.f32 %v3170_v58  ;;  %v3061_v52 = vld [vmem:[%s4160_s3 + $0x120] sm:$0xff] }
0x1619   :  { %vm1700_vm3 = vmor %vm1698_vm2, %vm1699_vm1 }
0x161a   :  { %v1694_v62 = vmul.f32 %v3170_v58, %v1693_v59  ;;  %v1691_v63 = vsel %vm1690_vm15, %v3168_v51, %v1687_v29  ;;  %v3062_v51 = vld [vmem:[%s4160_s3 + $0x128] sm:$0xff] }
0x161b   :  { %v1702_v50 = vmul.f32 %v1691_v63, %v1668_v34  ;;  %v3069_v34 = vld [vmem:[%s4160_s3 + $0x160] sm:$0xff]  ;;  %1884 = vmatpush.bf16.msrb.mxu3 %v3062_v51  ;;  %v2855_v51 = vld [vmem:[%s4161_s6 + $0x158] sm:$0xff] }
0x161c   :  { %v1695_v4 = vmul.f32 0.5, %v1694_v62 }
0x161d   :  { %v1704_v11 = vmul.f32 %v2711_v5, %v1702_v50  ;;  %v2887_v5 = vld [vmem:[%s4162_s4 + $0x130] sm:$0xff] }
0x161e   :  { %v1696_v55 = vsub.f32 1.5, %v1695_v4 }
0x161f   :  { %v1706_v60 = vadd.f32 %v2713_v13, %v1704_v11  ;;  %1885 = vmatpush.bf16.msrb.mxu3 %v3061_v52 }
0x1620   :  { %v1697_v6 = vmul.f32 %v3170_v58, %v1696_v55 }
0x1622   :  { %v1701_v8 = vsel %vm1700_vm3, %v3170_v58, %v1697_v6  ;;  %v2902_v6 = vld [vmem:[%s4162_s4 + $0x140] sm:$0xff] }
0x1623   :  { %v1703_v12 = vmul.f32 %v1701_v8, %v1669_v37  ;;  %v3898_v37 = vld [vmem:[%s4158_s0] sm:$0xff]  ;;  %v2903_v8 = vld [vmem:[%s4162_s4 + $0x148] sm:$0xff] }
0x1625   :  { %v1705_v16 = vmul.f32 %v2712_v7, %v1703_v12  ;;  %v2888_v7 = vld [vmem:[%s4162_s4 + $0x138] sm:$0xff] }
0x1627   :  { %v1707_v17 = vadd.f32 %v2714_v15, %v1705_v16 }
0x1629   :  { %v1708_v18 = vpack.c.bf16 %v1707_v17, %v1706_v60 }
0x162b   :  { %2840 = vmatmul.msk.bf16.vlgmr.msrb.gmra.mxu1 %vm58_vm0, %v1708_v18 }
0x162c   :  { %2086 = vmatpush.bf16.msrb.mxu1 %v3070_v33 }
0x1630   :  { %2087 = vmatpush.bf16.msrb.mxu1 %v3069_v34 }
0x16a8   :  { %v1738_v20 = vpop.f32.mrf.mxu1 }
0x16a9   :  { %v1739_v23 = vadd.f32 %v2717_v22, %v1738_v20  ;;  %v3068_v20 = vld [vmem:[%s4160_s3 + $0x158] sm:$0xff] }
0x16aa   :  { %2052 = vmatpush.bf16.msrb.mxu0 %v3068_v20 }
0x16ab   :  { %v1743_v28 = vmax.f32 %v1739_v23, 0.0 }
0x16b0   :  { %v1740_v24 = vpop.f32.mrf.mxu1 }
0x16b1   :  { %v1741_v26 = vadd.f32 %v2718_v61, %v1740_v24  ;;  %v3067_v24 = vld [vmem:[%s4160_s3 + $0x150] sm:$0xff] }
0x16b2   :  { %2053 = vmatpush.bf16.msrb.mxu0 %v3067_v24 }
0x16b3   :  { %v1744_v30 = vmax.f32 %v1741_v26, 0.0 }
0x16b5   :  { %v1745_v0 = vpack.c.bf16 %v1744_v30, %v1743_v28 }
0x16b7   :  { %2853 = vmatmul.msk.bf16.vlgmr.msrb.gmra.mxu2 %vm58_vm0, %v1745_v0 }
0x173a   :  { %v1775_v2 = vpop.f32.mrf.mxu2 }
0x173b   :  { %v1776_v39 = vadd.f32 %v2719_v35, %v1775_v2 }
0x173d   :  { %v1780_v38 = vadd.f32 %v1776_v39, %v1706_v60 }
0x173f   :  { %v1782_v40 = vmul.f32 %v3898_v37, %v1780_v38 }
0x1741   :  { %v1805_v1 = vsel %vm58_vm0, %v1782_v40, 0.0 }
0x1742   :  { %v1777_v44 = vpop.f32.mrf.mxu2  ;;  %1806 = vadd.xlane.f32.xlu1 %v1805_v1 }
0x1743   :  { %v1778_v21 = vadd.f32 %v2720_v42, %v1777_v44  ;;  %v2935_v44 = vld [vmem:[%s4162_s4 + $0x168] sm:$0xff] }
0x1745   :  { %v1781_v46 = vadd.f32 %v1778_v21, %v1707_v17 }
0x1747   :  { %v1783_v27 = vmul.f32 %v3908_v25, %v1781_v46  ;;  %v2854_v46 = vld [vmem:[%s4161_s6 + $0x150] sm:$0xff] }
0x1749   :  { %v3911_v48 = vpack.c.bf16 %v1783_v27, %v1782_v40  ;;  %v1808_v49 = vsel %vm58_vm0, %v1783_v27, 0.0 }
0x174a   :  { %1809 = vadd.xlane.f32.xlu2 %v1808_v49  ;;  %v2934_v49 = vld [vmem:[%s4162_s4 + $0x160] sm:$0xff] }
0x174b   :  { %2897 = vmatmul.msk.bf16.vlgmr.msra.gmra.mxu0 %vm58_vm0, %v3911_v48  ;;  %2912 = vmatmul.msk.bf16.vlgmr.msra.gmra.mxu1 %vm58_vm0, %v3911_v48 }
0x175b   :  { %2944 = vmatmul.msk.bf16.vlgmr.msrb.gmra.mxu1 %vm58_vm0, %v3911_v48 }
0x17b5   :  { %v1807_v53 = vpop.xlane.xlu1 %1806 }
0x17b6   :  { %v1811_v54 = vmul.f32 %v1807_v53, %v3274_v14 }
0x17b8   :  { %v1813_v56 = vsub.f32 %v1782_v40, %v1811_v54 }
0x17ba   :  { %v1815_v57 = vmul.f32 %v1813_v56, %v1813_v56 }
0x17bc   :  { %v1817_v58 = vsel %vm58_vm0, %v1815_v57, 0.0  ;;  %v2856_v57 = vld [vmem:[%s4161_s6 + $0x160] sm:$0xff] }
0x17bd   :  { %v1810_v29 = vpop.xlane.xlu2 %1809  ;;  %1818 = vadd.xlane.f32.xlu0 %v1817_v58  ;;  %v2857_v58 = vld [vmem:[%s4161_s6 + $0x168] sm:$0xff] }
0x17be   :  { %v1812_v59 = vmul.f32 %v1810_v29, %v3274_v14 }
0x17c0   :  { %v1814_v62 = vsub.f32 %v1783_v27, %v1812_v59 }
0x17c2   :  { %v1816_v63 = vmul.f32 %v1814_v62, %v1814_v62 }
0x17c4   :  { %v1820_v4 = vsel %vm58_vm0, %v1816_v63, 0.0 }
0x17c5   :  { %1821 = vadd.xlane.f32.xlu2 %v1820_v4 }
0x17c8   :  { %v1924_v55 = vpop.f32.mrf.mxu0  ;;  %v1958_v50 = vpop.f32.mrf.mxu1 }
0x17c9   :  { %v1925_v13 = vadd.f32 %v2887_v5, %v1924_v55  ;;  %v1959_v15 = vadd.f32 %v2902_v6, %v1958_v50  ;;  %v3072_v5 = vld [vmem:[%s4160_s3 + $0x178] sm:$0xff]  ;;  %v3071_v6 = vld [vmem:[%s4160_s3 + $0x170] sm:$0xff] }
0x17d0   :  { %v1926_v11 = vpop.f32.mrf.mxu0  ;;  %v1960_v12 = vpop.f32.mrf.mxu1 }
0x17d1   :  { %v1927_v16 = vadd.f32 %v2888_v7, %v1926_v11  ;;  %v1961_v60 = vadd.f32 %v2903_v8, %v1960_v12  ;;  %v2872_v8 = vld [vmem:[%s4162_s4 + $0x120] sm:$0xff]  ;;  %v2873_v11 = vld [vmem:[%s4162_s4 + $0x128] sm:$0xff] }
0x17d3   :  { %v1964_v17 = vpack.c.bf16 %v1927_v16, %v1925_v13  ;;  %v2008_v18 = vpack.c.bf16 %v1961_v60, %v1959_v15 }
0x17d5   :  { %2019 = vmatpush.bf16.msra.mxu3 %v2008_v18  ;;  %v1969_v19 = vsel %vm224_vm8, %v1964_v17, 0 }
0x17d6   :  { %1978 = vmatpush.bf16.xpose.msra.mxu2 %v1969_v19 }
0x17d8   :  { %v2089_v36 = vpop.f32.mrf.mxu1 }
0x17d9   :  { %v2090_v29 = vadd.f32 %v2934_v49, %v2089_v36  ;;  %v2920_v49 = vld [vmem:[%s4162_s4 + $0x158] sm:$0xff] }
0x17de   :  { %2120 = vmatpush.bf16.msrb.mxu2 %v3072_v5 }
0x17e0   :  { %v2091_v21 = vpop.f32.mrf.mxu1 }
0x17e1   :  { %v2092_v53 = vadd.f32 %v2935_v44, %v2091_v21 }
0x17e2   :  { %2121 = vmatpush.bf16.msrb.mxu2 %v3071_v6 }
0x17e3   :  { %v2129_v63 = vpack.c.bf16 %v2092_v53, %v2090_v29 }
0x1830   :  { %v1819_v22 = vpop.xlane.xlu0 %1818 }
0x1831   :  { %v1823_v61 = vmul.f32 %v1819_v22, %v3274_v14 }
0x1833   :  { %v1825_v23 = vadd.f32 1e-08, %v1823_v61 }
0x1835   :  { %3171 = vrsqrt.f32 %v1825_v23  ;;  %vm1833_vm5 = vweird.f32 %v1825_v23 }
0x1838   :  { %v1822_v26 = vpop.xlane.xlu2 %1821 }
0x1839   :  { %v1824_v28 = vmul.f32 %v1822_v26, %v3274_v14 }
0x183b   :  { %v3172_v30 = vpop.eup %3171  ;;  %v1826_v0 = vadd.f32 1e-08, %v1824_v28 }
0x183c   :  { %v1828_v3 = vmul.f32 %v3172_v30, %v1825_v23  ;;  %vm1834_vm4 = vweird.f32 %v3172_v30  ;;  %v2949_v23 = vld [vmem:[%s4162_s4 + $0x170] sm:$0xff] }
0x183d   :  { %3173 = vrsqrt.f32 %v1826_v0  ;;  %vm1835_vm6 = vmor %vm1833_vm5, %vm1834_vm4  ;;  %vm1843_vm9 = vweird.f32 %v1826_v0 }
0x183e   :  { %v1829_v31 = vmul.f32 %v3172_v30, %v1828_v3 }
0x1840   :  { %v1830_v32 = vmul.f32 0.5, %v1829_v31 }
0x1842   :  { %v1831_v33 = vsub.f32 1.5, %v1830_v32 }
0x1843   :  { %v3174_v34 = vpop.eup %3173 }
0x1844   :  { %v1832_v35 = vmul.f32 %v3172_v30, %v1831_v33  ;;  %v1838_v2 = vmul.f32 %v3174_v34, %v1826_v0  ;;  %vm1844_vm7 = vweird.f32 %v3174_v34 }
0x1845   :  { %vm1845_vm10 = vmor %vm1843_vm9, %vm1844_vm7 }
0x1846   :  { %v1839_v39 = vmul.f32 %v3174_v34, %v1838_v2  ;;  %v1836_v38 = vsel %vm1835_vm6, %v3172_v30, %v1832_v35 }
0x1847   :  { %v1847_v1 = vmul.f32 %v1836_v38, %v1813_v56 }
0x1848   :  { %v1840_v40 = vmul.f32 0.5, %v1839_v39 }
0x1849   :  { %v1849_v54 = vmul.f32 %v2854_v46, %v1847_v1 }
0x184a   :  { %v1841_v42 = vsub.f32 1.5, %v1840_v40 }
0x184b   :  { %v3969_v4 = vadd.f32 %v2856_v57, %v1849_v54 }
0x184c   :  { %v1842_v27 = vmul.f32 %v3174_v34, %v1841_v42 }
0x184e   :  { %v1846_v52 = vsel %vm1845_vm10, %v3174_v34, %v1842_v27 }
0x184f   :  { %v1848_v56 = vmul.f32 %v1846_v52, %v1814_v62  ;;  %v2134_v62 = vsel %vm224_vm8, %v2129_v63, 0  ;;  %v2919_v52 = vld [vmem:[%s4162_s4 + $0x150] sm:$0xff] }
0x1851   :  { %v1850_v59 = vmul.f32 %v2855_v51, %v1848_v56 }
0x1853   :  { %v3971_v55 = vadd.f32 %v2857_v58, %v1850_v59 }
0x1855   :  { %v1853_v50 = vpack.c.bf16 %v3971_v55, %v3969_v4 }
0x1857   :  { %2882 = vmatmul.msk.bf16.vlgmr.msrb.gmra.mxu3 %vm58_vm0, %v1853_v50  ;;  %2929 = vmatmul.msk.bf16.vlgmr.msrb.gmra.mxu0 %vm58_vm0, %v1853_v50 }
0x1858   :  { %2143 = vmatpush.bf16.xpose.msrb.mxu3 %v2134_v62 }
0x18d4   :  { %v2055_v46 = vpop.f32.mrf.mxu0 }
0x18d5   :  { %v2056_v54 = vadd.f32 %v2919_v52, %v2055_v46 }
0x18da   :  { %v1887_v7 = vpop.f32.mrf.mxu3 }
0x18db   :  { %v1888_v13 = vadd.f32 %v2872_v8, %v1887_v7 }
0x18dc   :  { %v2057_v51 = vpop.f32.mrf.mxu0 }
0x18dd   :  { %v2058_v53 = vadd.f32 %v2920_v49, %v2057_v51 }
0x18df   :  { %v2128_v56 = vpack.c.bf16 %v2058_v53, %v2056_v54 }
0x18e2   :  { %v1889_v12 = vpop.f32.mrf.mxu3 }
0x18e3   :  { %v1890_v15 = vadd.f32 %v2873_v11, %v1889_v12 }
0x18e5   :  { %v1963_v16 = vpack.c.bf16 %v1890_v15, %v1888_v13 }
0x18e7   :  { %2913 = vmatmul.msk.bf16.vlgmr.msra.gmra.mxu2 %vm224_vm8, %v1963_v16 }
0x18f7   :  { %2959 = vmatmul.msk.bf16.vlgmr.msrb.gmra.mxu2 %vm58_vm0, %v3911_v48  ;;  %v2950_v48 = vld [vmem:[%s4162_s4 + $0x178] sm:$0xff] }
0x196a   :  { %v1980_v60 = vpop.f32.mrf.mxu2 }
0x196b   :  { %v1981_v17 = vadd.f32 %v3759_v45, %v1980_v60 }
0x196d   :  { %v1985_v18 = vsel %vm224_vm8, %v1981_v17, -inf }
0x196e   :  { %1986 = vmax.xlane.f32.xlu0 %v1985_v18 }
0x1972   :  { %v1982_v19 = vpop.f32.mrf.mxu2 }
0x1973   :  { %v1983_v20 = vadd.f32 %v3768_v47, %v1982_v19 }
0x1975   :  { %v1988_v22 = vsel %vm224_vm8, %v1983_v20, -inf }
0x1976   :  { %1989 = vmax.xlane.f32.xlu2 %v1988_v22 }
0x197a   :  { %v2123_v61 = vpop.f32.mrf.mxu2 }
0x197b   :  { %v2124_v26 = vadd.f32 %v2949_v23, %v2123_v61  ;;  %v3074_v23 = vld [vmem:[%s4164_s5 + $0x98] sm:$0xff] }
0x197c   :  { %2228 = vmatpush.bf16.msra.mxu1 %v3074_v23 }
0x1982   :  { %v2125_v24 = vpop.f32.mrf.mxu2 }
0x1983   :  { %v2126_v28 = vadd.f32 %v2950_v48, %v2125_v24  ;;  %v3073_v48 = vld [vmem:[%s4164_s5 + $0x90] sm:$0xff] }
0x1984   :  { %2229 = vmatpush.bf16.msra.mxu1 %v3073_v48 }
0x1985   :  { %v2173_v30 = vpack.c.bf16 %v2126_v28, %v2124_v26 }
0x1987   :  { %2184 = vmatpush.bf16.msra.mxu0 %v2173_v30 }
0x19e1   :  { %v1987_v0 = vpop.xlane.xlu0 %1986 }
0x19e2   :  { %v1991_v3 = vsub.f32 %v1981_v17, %v1987_v0 }
0x19e4   :  { %v1993_v31 = vmul.f32 1.442695, %v1991_v3 }
0x19e6   :  { %3175 = vpow2.f32 %v1993_v31 }
0x19e9   :  { %v1990_v32 = vpop.xlane.xlu2 %1989 }
0x19ea   :  { %v1992_v36 = vsub.f32 %v1983_v20, %v1990_v32 }
0x19ec   :  { %v3176_v33 = vpop.eup %3175  ;;  %v1995_v34 = vmul.f32 1.442695, %v1992_v36 }
0x19ed   :  { %v1997_v35 = vsel %vm224_vm8, %v3176_v33, 0.0 }
0x19ee   :  { %3177 = vpow2.f32 %v1995_v34  ;;  %1998 = vadd.xlane.f32.xlu0 %v1997_v35 }
0x19f4   :  { %v3178_v2 = vpop.eup %3177 }
0x19f5   :  { %v2000_v39 = vsel %vm224_vm8, %v3178_v2, 0.0 }
0x19f6   :  { %2001 = vadd.xlane.f32.xlu2 %v2000_v39 }
0x1a61   :  { %v1999_v38 = vpop.xlane.xlu0 %1998 }
0x1a62   :  { %3179 = vrcp.f32 %v1999_v38  ;;  %v2863_v38 = vld [vmem:[%s4161_s6 + $0x198] sm:$0xff] }
0x1a68   :  { %v3180_v42 = vpop.eup %3179 }
0x1a69   :  { %v2002_v40 = vpop.xlane.xlu2 %2001  ;;  %v2005_v44 = vmul.f32 %v3180_v42, %v3176_v33  ;;  %v2862_v33 = vld [vmem:[%s4161_s6 + $0x190] sm:$0xff] }
0x1a6a   :  { %3181 = vrcp.f32 %v2002_v40 }
0x1a70   :  { %v3182_v1 = vpop.eup %3181 }
0x1a71   :  { %v2006_v21 = vmul.f32 %v3182_v1, %v3178_v2 }
0x1a73   :  { %v2007_v27 = vpack.c.bf16 %v2006_v21, %v2005_v44  ;;  %v2570_v21 = vld [vmem:[%s4161_s6 + $0xd0] sm:$0xff] }
0x1a75   :  { %2914 = vmatmul.msk.bf16.vlgmr.msra.gmra.mxu3 %vm224_vm8, %v2007_v27  ;;  %v1191_v27 = vadd.f32 %v2570_v21, %v3747_v41 }
0x1a77   :  { %v1195_v52 = vadd.f32 %v1191_v27, %v3707_v9 }
0x1a85   :  { %2960 = vmatmul.msk.bf16.vlgmr.msrb.gmra.mxu3 %vm224_vm8, %v2128_v56 }
0x1af8   :  { %v2021_v57 = vpop.f32.mrf.mxu3 }
0x1b00   :  { %v2023_v58 = vpop.f32.mrf.mxu3 }
0x1b08   :  { %v2145_v29 = vpop.f32.mrf.mxu3 }
0x1b09   :  { %v2146_v59 = vadd.f32 %v3759_v45, %v2145_v29  ;;  %v1197_v29 = vmul.f32 %v3898_v37, %v1195_v52 }
0x1b0b   :  { %v2150_v63 = vsel %vm224_vm8, %v2146_v59, -inf }
0x1b0c   :  { %2151 = vmax.xlane.f32.xlu0 %v2150_v63  ;;  %v1204_v63 = vsel %vm58_vm0, %v1197_v29, 0.0 }
0x1b10   :  { %v2147_v50 = vpop.f32.mrf.mxu3 }
0x1b11   :  { %v2148_v62 = vadd.f32 %v3768_v47, %v2147_v50 }
0x1b13   :  { %v2153_v5 = vsel %vm224_vm8, %v2148_v62, -inf }
0x1b14   :  { %2154 = vmax.xlane.f32.xlu2 %v2153_v5 }
0x1b7f   :  { %v2152_v6 = vpop.xlane.xlu0 %2151 }
0x1b80   :  { %v2156_v7 = vsub.f32 %v2146_v59, %v2152_v6 }
0x1b82   :  { %v2158_v8 = vmul.f32 1.442695, %v2156_v7  ;;  %v3075_v7 = vld [vmem:[%s4164_s5 + $0xa0] sm:$0xff] }
0x1b84   :  { %3183 = vpow2.f32 %v2158_v8 }
0x1b87   :  { %v2155_v11 = vpop.xlane.xlu2 %2154 }
0x1b88   :  { %v2157_v12 = vsub.f32 %v2148_v62, %v2155_v11 }
0x1b8a   :  { %v3184_v13 = vpop.eup %3183  ;;  %v2160_v15 = vmul.f32 1.442695, %v2157_v12 }
0x1b8b   :  { %v2162_v16 = vsel %vm224_vm8, %v3184_v13, 0.0 }
0x1b8c   :  { %3185 = vpow2.f32 %v2160_v15  ;;  %2163 = vadd.xlane.f32.xlu0 %v2162_v16 }
0x1b92   :  { %v3186_v45 = vpop.eup %3185 }
0x1b93   :  { %v2165_v60 = vsel %vm224_vm8, %v3186_v45, 0.0 }
0x1b94   :  { %2166 = vadd.xlane.f32.xlu2 %v2165_v60 }
0x1bff   :  { %v2164_v47 = vpop.xlane.xlu0 %2163 }
0x1c00   :  { %3187 = vrcp.f32 %v2164_v47 }
0x1c06   :  { %v3188_v18 = vpop.eup %3187 }
0x1c07   :  { %v2167_v17 = vpop.xlane.xlu2 %2166  ;;  %v2170_v20 = vmul.f32 %v3188_v18, %v3184_v13 }
0x1c08   :  { %3189 = vrcp.f32 %v2167_v17 }
0x1c0e   :  { %v3190_v19 = vpop.eup %3189 }
0x1c0f   :  { %v2171_v22 = vmul.f32 %v3190_v19, %v3186_v45 }
0x1c11   :  { %v2172_v61 = vpack.c.bf16 %v2171_v22, %v2170_v20 }
0x1c13   :  { %2961 = vmatmul.msk.bf16.vlgmr.msra.gmra.mxu0 %vm224_vm8, %v2172_v61 }
0x1c90   :  { %v2186_v24 = vpop.f32.mrf.mxu0 }
0x1c98   :  { %v2188_v26 = vpop.f32.mrf.mxu0 }
0x1c99   :  { %v3096_v28 = vpack.i.bf16 %v2188_v26, %v2186_v24 }
0x1c9b   :  { %3097 = vrot.lane.b32.xlu1 %v3096_v28, %s3208_s30 }
0x1d0d   :  { %v3098_v30 = vpop.permute.xlu1 %3097 }
0x1d0e   :  { %v3100_v0 = vunpack.i.h.bf16 %v3098_v30  ;;  %v3099_v3 = vunpack.i.l.bf16 %v3098_v30 }
0x1d10   :  { %v2200_v31 = vsel %vm224_vm8, %v2023_v58, %v3100_v0  ;;  %v2199_v32 = vsel %vm224_vm8, %v2021_v57, %v3099_v3  ;;  %v2858_v0 = vld [vmem:[%s4161_s6 + $0x170] sm:$0xff] }
0x1d11   :  { %v2201_v36 = vpack.c.bf16 %v2200_v31, %v2199_v32  ;;  %v2859_v31 = vld [vmem:[%s4161_s6 + $0x178] sm:$0xff] }
0x1d13   :  { %2974 = vmatmul.msk.bf16.vlgmr.msra.gmra.mxu1 %vm58_vm0, %v2201_v36 }
0x1d90   :  { %v2231_v34 = vpop.f32.mrf.mxu1 }
0x1d91   :  { %v2232_v35 = vadd.f32 %v2862_v33, %v2231_v34  ;;  %v2860_v34 = vld [vmem:[%s4161_s6 + $0x180] sm:$0xff] }
0x1d93   :  { %v2236_v2 = vadd.f32 %v2232_v35, %v3969_v4  ;;  %v2861_v35 = vld [vmem:[%s4161_s6 + $0x188] sm:$0xff] }
0x1d95   :  { %v2238_v39 = vsel %vm58_vm0, %v2236_v2, 0.0 }
0x1d96   :  { %2239 = vadd.xlane.f32.xlu0 %v2238_v39 }
0x1d98   :  { %v2233_v40 = vpop.f32.mrf.mxu1 }
0x1d99   :  { %v2234_v42 = vadd.f32 %v2863_v38, %v2233_v40 }
0x1d9b   :  { %v2237_v1 = vadd.f32 %v2234_v42, %v3971_v55  ;;  %v2571_v55 = vld [vmem:[%s4161_s6 + $0xd8] sm:$0xff] }
0x1d9c   :  { %v1193_v57 = vadd.f32 %v2571_v55, %v3754_v43  ;;  %v3076_v43 = vld [vmem:[%s4164_s5 + $0xa8] sm:$0xff] }
0x1d9d   :  { %v2241_v44 = vsel %vm58_vm0, %v2237_v1, 0.0  ;;  %2313 = vmatpush.bf16.msra.mxu2 %v3076_v43 }
0x1d9e   :  { %2242 = vadd.xlane.f32.xlu2 %v2241_v44  ;;  %v1196_v59 = vadd.f32 %v1193_v57, %v3709_v10 }
0x1da0   :  { %v4057_v50 = vmul.f32 %v3908_v25, %v1196_v59 }
0x1da1   :  { %2314 = vmatpush.bf16.msra.mxu2 %v3075_v7 }
0x1da2   :  { %v1207_v62 = vsel %vm58_vm0, %v4057_v50, 0.0 }
0x1e09   :  { %v2240_v46 = vpop.xlane.xlu0 %2239 }
0x1e0a   :  { %v2244_v4 = vmul.f32 %v2240_v46, %v3274_v14 }
0x1e0c   :  { %v2246_v49 = vsub.f32 %v2236_v2, %v2244_v4  ;;  %v3077_v4 = vld [vmem:[%s4164_s5 + $0xb0] sm:$0xff] }
0x1e0e   :  { %v2248_v51 = vmul.f32 %v2246_v49, %v2246_v49 }
0x1e10   :  { %v2250_v53 = vsel %vm58_vm0, %v2248_v51, 0.0 }
0x1e11   :  { %v2243_v54 = vpop.xlane.xlu2 %2242  ;;  %2251 = vadd.xlane.f32.xlu0 %v2250_v53 }
0x1e12   :  { %v2245_v56 = vmul.f32 %v2243_v54, %v3274_v14  ;;  %v1199_v54 = vld [vmem:[%s4165_s7] sm:$0xff] }
0x1e14   :  { %v2247_v58 = vsub.f32 %v2237_v1, %v2245_v56  ;;  %v3078_v1 = vld [vmem:[%s4164_s5 + $0xb8] sm:$0xff] }
0x1e15   :  { %2350 = vmatpush.bf16.msra.mxu3 %v3078_v1 }
0x1e16   :  { %v2249_v41 = vmul.f32 %v2247_v58, %v2247_v58 }
0x1e18   :  { %v2253_v9 = vsel %vm58_vm0, %v2249_v41, 0.0 }
0x1e19   :  { %2254 = vadd.xlane.f32.xlu2 %v2253_v9  ;;  %1205 = vadd.xlane.f32.xlu0 %v1204_v63  ;;  %v2864_v9 = vld [vmem:[%s4161_s6 + $0x1a0] sm:$0xff]  ;;  %v2865_v63 = vld [vmem:[%s4161_s6 + $0x1a8] sm:$0xff] }
0x1e1a   :  { %2351 = vmatpush.bf16.msra.mxu3 %v3077_v4 }
0x1e21   :  { %1208 = vadd.xlane.f32.xlu2 %v1207_v62 }
0x1e84   :  { %v2252_v5 = vpop.xlane.xlu0 %2251 }
0x1e85   :  { %v2256_v10 = vmul.f32 %v2252_v5, %v3274_v14 }
0x1e87   :  { %v2258_v6 = vadd.f32 1e-08, %v2256_v10 }
0x1e89   :  { %3191 = vrsqrt.f32 %v2258_v6  ;;  %vm2266_vm11 = vweird.f32 %v2258_v6 }
0x1e8c   :  { %v2255_v8 = vpop.xlane.xlu2 %2254  ;;  %v1206_v11 = vpop.xlane.xlu0 %1205 }
0x1e8d   :  { %v2257_v12 = vmul.f32 %v2255_v8, %v3274_v14  ;;  %v1210_v13 = vmul.f32 %v1206_v11, %v3274_v14  ;;  %v2866_v8 = vld [vmem:[%s4161_s6 + $0x1b0] sm:$0xff] }
0x1e8f   :  { %v3192_v15 = vpop.eup %3191  ;;  %v2259_v16 = vadd.f32 1e-08, %v2257_v12  ;;  %v1212_v45 = vsub.f32 %v1197_v29, %v1210_v13 }
0x1e90   :  { %v2261_v60 = vmul.f32 %v3192_v15, %v2258_v6  ;;  %vm2267_vm8 = vweird.f32 %v3192_v15 }
0x1e91   :  { %3193 = vrsqrt.f32 %v2259_v16  ;;  %v1214_v47 = vmul.f32 %v1212_v45, %v1212_v45  ;;  %vm2268_vm12 = vmor %vm2266_vm11, %vm2267_vm8  ;;  %vm2276_vm14 = vweird.f32 %v2259_v16 }
0x1e92   :  { %v2262_v17 = vmul.f32 %v3192_v15, %v2261_v60 }
0x1e93   :  { %v1216_v18 = vsel %vm58_vm0, %v1214_v47, 0.0 }
0x1e94   :  { %v2263_v19 = vmul.f32 0.5, %v2262_v17  ;;  %1217 = vadd.xlane.f32.xlu2 %v1216_v18  ;;  %v1209_v42 = vpop.xlane.xlu2 %1208 }
0x1e95   :  { %v1211_v17 = vmul.f32 %v1209_v42, %v3274_v14 }
0x1e96   :  { %v2264_v20 = vsub.f32 1.5, %v2263_v19 }
0x1e97   :  { %v3194_v22 = vpop.eup %3193 }
0x1e98   :  { %v2265_v61 = vmul.f32 %v3192_v15, %v2264_v20  ;;  %v2271_v23 = vmul.f32 %v3194_v22, %v2259_v16  ;;  %vm2277_vm13 = vweird.f32 %v3194_v22  ;;  %v2867_v16 = vld [vmem:[%s4161_s6 + $0x1b8] sm:$0xff]  ;;  %v1213_v20 = vsub.f32 %v4057_v50, %v1211_v17 }
0x1e99   :  { %vm2278_vm15 = vmor %vm2276_vm14, %vm2277_vm13 }
0x1e9a   :  { %v2272_v48 = vmul.f32 %v3194_v22, %v2271_v23  ;;  %v2269_v24 = vsel %vm2268_vm12, %v3192_v15, %v2265_v61 }
0x1e9b   :  { %v2280_v30 = vmul.f32 %v2269_v24, %v2246_v49 }
0x1e9c   :  { %v2273_v26 = vmul.f32 0.5, %v2272_v48 }
0x1e9d   :  { %v2282_v36 = vmul.f32 %v2858_v0, %v2280_v30 }
0x1e9e   :  { %v2274_v28 = vsub.f32 1.5, %v2273_v26 }
0x1e9f   :  { %v2284_v39 = vadd.f32 %v2860_v34, %v2282_v36 }
0x1ea0   :  { %v2275_v3 = vmul.f32 %v3194_v22, %v2274_v28 }
0x1ea2   :  { %v2279_v32 = vsel %vm2278_vm15, %v3194_v22, %v2275_v3 }
0x1ea3   :  { %v2281_v33 = vmul.f32 %v2279_v32, %v2247_v58  ;;  %v2705_v58 = vld [vmem:[%s4165_s7 + $0x10] sm:$0xff] }
0x1ea5   :  { %v2283_v2 = vmul.f32 %v2859_v31, %v2281_v33 }
0x1ea7   :  { %v2285_v38 = vadd.f32 %v2861_v35, %v2283_v2 }
0x1ea9   :  { %v2286_v40 = vpack.c.bf16 %v2285_v38, %v2284_v39 }
0x1eab   :  { %2987 = vmatmul.msk.bf16.vlgmr.msra.gmra.mxu2 %vm58_vm0, %v2286_v40  ;;  %v1200_v40 = vld [vmem:[%s4165_s7 + $0x8] sm:$0xff] }
0x1f07   :  { %v1218_v44 = vpop.xlane.xlu2 %1217 }
0x1f08   :  { %v1222_v21 = vmul.f32 %v1218_v44, %v3274_v14  ;;  %v2706_v44 = vld [vmem:[%s4165_s7 + $0x18] sm:$0xff] }
0x1f0a   :  { %v1224_v46 = vadd.f32 1e-08, %v1222_v21 }
0x1f0c   :  { %3195 = vrsqrt.f32 %v1224_v46  ;;  %vm1232_vm2 = vweird.f32 %v1224_v46 }
0x1f12   :  { %v3196_v27 = vpop.eup %3195 }
0x1f13   :  { %v1227_v49 = vmul.f32 %v3196_v27, %v1224_v46  ;;  %vm1233_vm1 = vweird.f32 %v3196_v27 }
0x1f14   :  { %vm1234_vm3 = vmor %vm1232_vm2, %vm1233_vm1 }
0x1f15   :  { %v1228_v51 = vmul.f32 %v3196_v27, %v1227_v49 }
0x1f17   :  { %v1229_v52 = vmul.f32 0.5, %v1228_v51 }
0x1f19   :  { %v1230_v53 = vsub.f32 1.5, %v1229_v52 }
0x1f1b   :  { %v1231_v55 = vmul.f32 %v3196_v27, %v1230_v53 }
0x1f1d   :  { %v1235_v56 = vsel %vm1234_vm3, %v3196_v27, %v1231_v55 }
0x1f1e   :  { %v1246_v57 = vmul.f32 %v1235_v56, %v1212_v45 }
0x1f20   :  { %v1248_v29 = vmul.f32 %v1246_v57, %v1199_v54 }
0x1f22   :  { %v1250_v41 = vadd.f32 %v2705_v58, %v1248_v29 }
0x1f24   :  { %1252 = vst.msk [vmem:[%s4166_s8] sm:$0xff] %vm58_vm0, %v1250_v41 }
0x1f2e   :  { %v2316_v59 = vpop.f32.mrf.mxu2 }
0x1f2f   :  { %v2317_v62 = vadd.f32 %v2864_v9, %v2316_v59  ;;  %v3001_v9 = vld [vmem:[%s4165_s7 + $0x20] sm:$0xff] }
0x1f31   :  { %v2321_v10 = vmax.f32 %v2317_v62, 0.0 }
0x1f36   :  { %v2318_v43 = vpop.f32.mrf.mxu2 }
0x1f37   :  { %v2319_v5 = vadd.f32 %v2865_v63, %v2318_v43  ;;  %v3003_v43 = vld [vmem:[%s4165_s7 + $0x30] sm:$0xff] }
0x1f39   :  { %v2322_v6 = vmax.f32 %v2319_v5, 0.0 }
0x1f3b   :  { %v2323_v7 = vpack.c.bf16 %v2322_v6, %v2321_v10 }
0x1f3d   :  { %3000 = vmatmul.msk.bf16.vlgmr.msra.gmra.mxu3 %vm58_vm0, %v2323_v7 }
0x1fc0   :  { %v2353_v11 = vpop.f32.mrf.mxu3 }
0x1fc1   :  { %v2354_v12 = vadd.f32 %v2866_v8, %v2353_v11  ;;  %v3002_v11 = vld [vmem:[%s4165_s7 + $0x28] sm:$0xff] }
0x1fc3   :  { %v2358_v13 = vadd.f32 %v2354_v12, %v2284_v39 }
0x1fc5   :  { %v2360_v15 = vmul.f32 %v3898_v37, %v2358_v13  ;;  %v1215_v37 = vmul.f32 %v1213_v20, %v1213_v20 }
0x1fc7   :  { %v2368_v45 = vsel %vm58_vm0, %v2360_v15, 0.0  ;;  %v1219_v61 = vsel %vm58_vm0, %v1215_v37, 0.0 }
0x1fc8   :  { %v2355_v60 = vpop.f32.mrf.mxu3  ;;  %2369 = vadd.xlane.f32.xlu1 %v2368_v45 }
0x1fc9   :  { %v2356_v47 = vadd.f32 %v2867_v16, %v2355_v60 }
0x1fcb   :  { %v2359_v18 = vadd.f32 %v2356_v47, %v2285_v38 }
0x1fcd   :  { %v2361_v19 = vmul.f32 %v3908_v25, %v2359_v18 }
0x1fcf   :  { %v2371_v22 = vsel %vm58_vm0, %v2361_v19, 0.0 }
0x1fd0   :  { %2372 = vadd.xlane.f32.xlu0 %v2371_v22 }
0x1fd8   :  { %1220 = vadd.xlane.f32.xlu0 %v1219_v61 }
0x203b   :  { %v2370_v23 = vpop.xlane.xlu1 %2369 }
0x203c   :  { %v2374_v48 = vmul.f32 %v2370_v23, %v3274_v14 }
0x203e   :  { %v2376_v24 = vsub.f32 %v2360_v15, %v2374_v48  ;;  %v3004_v15 = vld [vmem:[%s4165_s7 + $0x38] sm:$0xff] }
0x2040   :  { %v2378_v26 = vmul.f32 %v2376_v24, %v2376_v24 }
0x2042   :  { %v2380_v28 = vsel %vm58_vm0, %v2378_v26, 0.0 }
0x2043   :  { %2381 = vadd.xlane.f32.xlu2 %v2380_v28  ;;  %v2373_v30 = vpop.xlane.xlu0 %2372 }
0x2044   :  { %v2375_v25 = vmul.f32 %v2373_v30, %v3274_v14 }
0x2046   :  { %v2377_v0 = vsub.f32 %v2361_v19, %v2375_v25 }
0x2048   :  { %v2379_v50 = vmul.f32 %v2377_v0, %v2377_v0 }
0x204a   :  { %v2383_v3 = vsel %vm58_vm0, %v2379_v50, 0.0 }
0x204b   :  { %2384 = vadd.xlane.f32.xlu0 %v2383_v3  ;;  %v1221_v31 = vpop.xlane.xlu0 %1220 }
0x204c   :  { %v1223_v32 = vmul.f32 %v1221_v31, %v3274_v14 }
0x204e   :  { %v1225_v36 = vadd.f32 1e-08, %v1223_v32 }
0x2050   :  { %3197 = vrsqrt.f32 %v1225_v36  ;;  %vm1242_vm5 = vweird.f32 %v1225_v36 }
0x2056   :  { %v3198_v33 = vpop.eup %3197 }
0x2057   :  { %v1237_v34 = vmul.f32 %v3198_v33, %v1225_v36  ;;  %vm1243_vm4 = vweird.f32 %v3198_v33 }
0x2058   :  { %vm1244_vm6 = vmor %vm1242_vm5, %vm1243_vm4 }
0x2059   :  { %v1238_v35 = vmul.f32 %v3198_v33, %v1237_v34 }
0x205b   :  { %v1239_v2 = vmul.f32 0.5, %v1238_v35 }
0x205d   :  { %v1240_v39 = vsub.f32 1.5, %v1239_v2 }
0x205f   :  { %v1241_v38 = vmul.f32 %v3198_v33, %v1240_v39 }
0x2061   :  { %v1245_v42 = vsel %vm1244_vm6, %v3198_v33, %v1241_v38 }
0x2062   :  { %v1247_v1 = vmul.f32 %v1245_v42, %v1213_v20 }
0x2064   :  { %v1249_v21 = vmul.f32 %v1247_v1, %v1200_v40 }
0x2066   :  { %v1251_v46 = vadd.f32 %v2706_v44, %v1249_v21 }
0x2068   :  { %1253 = vst.msk [vmem:[%s4166_s8 + $0x8] sm:$0xff] %vm58_vm0, %v1251_v46 }
0x20b6   :  { %v2382_v4 = vpop.xlane.xlu2 %2381 }
0x20b7   :  { %v2386_v27 = vmul.f32 %v2382_v4, %v3274_v14 }
0x20b9   :  { %v2388_v49 = vadd.f32 1e-08, %v2386_v27 }
0x20bb   :  { %3199 = vrsqrt.f32 %v2388_v49  ;;  %vm2396_vm9 = vweird.f32 %v2388_v49 }
0x20be   :  { %v2385_v51 = vpop.xlane.xlu0 %2384 }
0x20bf   :  { %v2387_v52 = vmul.f32 %v2385_v51, %v3274_v14 }
0x20c1   :  { %v3200_v53 = vpop.eup %3199  ;;  %v2389_v55 = vadd.f32 1e-08, %v2387_v52 }
0x20c2   :  { %v2391_v54 = vmul.f32 %v3200_v53, %v2388_v49  ;;  %vm2397_vm7 = vweird.f32 %v3200_v53 }
0x20c3   :  { %3201 = vrsqrt.f32 %v2389_v55  ;;  %vm2398_vm10 = vmor %vm2396_vm9, %vm2397_vm7  ;;  %vm2406_vm11 = vweird.f32 %v2389_v55 }
0x20c4   :  { %v2392_v56 = vmul.f32 %v3200_v53, %v2391_v54 }
0x20c6   :  { %v2393_v57 = vmul.f32 0.5, %v2392_v56 }
0x20c8   :  { %v2394_v58 = vsub.f32 1.5, %v2393_v57 }
0x20c9   :  { %v3202_v29 = vpop.eup %3201 }
0x20ca   :  { %v2395_v41 = vmul.f32 %v3200_v53, %v2394_v58  ;;  %v2401_v59 = vmul.f32 %v3202_v29, %v2389_v55  ;;  %vm2407_vm8 = vweird.f32 %v3202_v29 }
0x20cb   :  { %vm2408_vm12 = vmor %vm2406_vm11, %vm2407_vm8 }
0x20cc   :  { %v2399_v63 = vsel %vm2398_vm10, %v3200_v53, %v2395_v41  ;;  %v2402_v62 = vmul.f32 %v3202_v29, %v2401_v59 }
0x20cd   :  { %v2410_v14 = vmul.f32 %v2399_v63, %v2376_v24 }
0x20ce   :  { %v2403_v5 = vmul.f32 0.5, %v2402_v62 }
0x20cf   :  { %v2412_v10 = vmul.f32 %v3001_v9, %v2410_v14 }
0x20d0   :  { %v2404_v6 = vsub.f32 1.5, %v2403_v5 }
0x20d1   :  { %v2414_v7 = vadd.f32 %v3003_v43, %v2412_v10 }
0x20d2   :  { %v2405_v8 = vmul.f32 %v3202_v29, %v2404_v6 }
0x20d3   :  { %3005 = vst.msk [vmem:[%s4166_s8 + $0x10] sm:$0xff] %vm58_vm0, %v2414_v7 }
0x20d4   :  { %v2409_v12 = vsel %vm2408_vm12, %v3202_v29, %v2405_v8 }
0x20d5   :  { %v2411_v13 = vmul.f32 %v2409_v12, %v2377_v0 }
0x20d7   :  { %v2413_v16 = vmul.f32 %v3002_v11, %v2411_v13 }
0x20d9   :  { %v2415_v45 = vadd.f32 %v3004_v15, %v2413_v16 }
0x20db   :  { %3006 = vst.msk [vmem:[%s4166_s8 + $0x18] sm:$0xff] %vm58_vm0, %v2415_v45 }

</bundles_post_ra>
